<compile_context>
chip_gen: v6e
topology: v6e:2x2x1
jax: 0.10.0
libtpu: 0.0.40
codegen_flags: <defaults>
</compile_context>

<pallas_src>
import functools

import jax
import jax.numpy as jnp
import numpy as np
from jax import lax
from jax.experimental import pallas as pl
from jax.experimental.pallas import tpu as pltpu


# -----------------------------------------------------------------------------
# Host-side parameter prep (numpy; tiny, done once per distinct N_z)
# -----------------------------------------------------------------------------
def _init_conv_bn(key, cin, cout, k=3):
    """Synthetic Conv3d + eval-mode BN3d parameters (matches module shapes)."""
    kw_, kg = jax.random.split(key)
    w = 0.05 * jax.random.normal(kw_, (k, k, k, cin, cout), jnp.float32)
    gamma = 1.0 + 0.1 * jax.random.normal(kg, (cout,), jnp.float32)
    beta = jnp.zeros((cout,), jnp.float32)
    mean = jnp.zeros((cout,), jnp.float32)
    var = jnp.ones((cout,), jnp.float32)
    return (w, gamma, beta, mean, var)


def _fold_bn_into_conv(w, gamma, beta, mean, var, eps=1e-5):
    """Fold eval-mode BN scale into conv weights -> ((3,3,3,Cin,Cout), (Cout,))."""
    w, gamma, beta, mean, var = (np.asarray(a, np.float32)
                                 for a in (w, gamma, beta, mean, var))
    scale = gamma / np.sqrt(var + eps)
    shift = beta - mean * scale
    return (w * scale).astype(np.float32), shift.astype(np.float32)


def _band_weights_stride1(wf, Wp):
    """Fold the kw taps of a stride-1 conv into 9 banded (Wp*Cin, Wp*Cout) mats.

    Output column (wp_out*Cout + co) of tap (kd, kh) receives
    W[kd, kh, kw, ci, co] from input column ((wp_out - 1 + kw)*Cin + ci).
    Columns at padded z positions produce garbage and are masked in-kernel.
    """
    _, _, _, cin, cout = wf.shape
    M = np.zeros((9, Wp * cin, Wp * cout), np.float32)
    for kd in range(3):
        for kh in range(3):
            t = kd * 3 + kh
            for wp_out in range(Wp):
                for kw in range(3):
                    wp_in = wp_out - 1 + kw
                    if 0 <= wp_in < Wp:
                        M[t, wp_in * cin:(wp_in + 1) * cin,
                          wp_out * cout:(wp_out + 1) * cout] = wf[kd, kh, kw]
    return M


def _band_weights_stride2(wf, Wp, Wo):
    """Same banding for the stride-(1,1,2) conv, emitting only the Wo outputs."""
    _, _, _, cin, cout = wf.shape
    M = np.zeros((9, Wp * cin, Wo * cout), np.float32)
    for kd in range(3):
        for kh in range(3):
            t = kd * 3 + kh
            for j in range(Wo):                      # stride-2 output index
                for kw in range(3):
                    wp_in = 2 * j + kw               # padded-grid input index
                    M[t, wp_in * cin:(wp_in + 1) * cin,
                      j * cout:(j + 1) * cout] = wf[kd, kh, kw]
    return M


def _interior_mask(D, H, W, C):
    """f32 mask over the (Dp*Hp, Wp*C) pencil grid: 1 at interior voxels."""
    Dp, Hp, Wp = D + 2, H + 2, W + 2
    row = np.zeros((Dp * Hp, 1), np.float32)
    col = np.zeros((1, Wp * C), np.float32)
    for dp in range(1, D + 1):
        for hp in range(1, H + 1):
            row[dp * Hp + hp, 0] = 1.0
    for wp in range(1, W + 1):
        col[0, wp * C:(wp + 1) * C] = 1.0
    return row * col


# -----------------------------------------------------------------------------
# Fused Pallas kernel: ResModule + strided ConvModule + z mean-pool
# -----------------------------------------------------------------------------
def _fused_neck_pallas(x_pencil, w0b, s0, w1b, s1, w2b, s2, mask, D, H, W):
    N, NR, WC = x_pencil.shape
    Dp, Hp, Wp = D + 2, H + 2, W + 2
    assert NR == Dp * Hp and WC % Wp == 0
    C0 = WC // Wp
    Wo = (W - 1) // 2 + 1                       # stride-2 conv output length
    WOC = s2.shape[1]
    Cout = WOC // Wo

    # Max |row offset| of a (kd, kh) tap is Hp + 1; round the halo up to a
    # sublane multiple so the interior write starts vreg-aligned.
    PAD_R = ((Hp + 1 + 7) // 8) * 8
    NTOT = NR + 2 * PAD_R
    tap_offs = [(kd - 1) * Hp + (kh - 1) for kd in range(3) for kh in range(3)]

    def conv9(src_ref, w_ref, s_ref, out_cols):
        # BN shift folded into the accumulator init; 9 banded-K matmuls.
        acc = jnp.zeros((NR, out_cols), jnp.float32) + s_ref[...]
        for t, off in enumerate(tap_offs):
            r0 = PAD_R + off
            acc = acc + jnp.dot(src_ref[r0:r0 + NR, :], w_ref[t],
                                preferred_element_type=jnp.float32)
        return acc

    def kernel(x_ref, w0_ref, s0_ref, w1_ref, s1_ref, w2_ref, s2_ref,
               mask_ref, o_ref, buf0, buf1, buf2):
        # Zero ONLY the halo rows (unconditional: safe under megacore grid
        # partitioning).  Interior rows are fully overwritten every step and
        # padded grid rows are forced to exact zero by the select below.
        halo = jnp.zeros((PAD_R, WC), jnp.float32)
        for buf in (buf0, buf1, buf2):
            buf[0:PAD_R, :] = halo
            buf[PAD_R + NR:NTOT, :] = halo

        xin = x_ref[...]                        # (NR, WC) padded input pencils
        m = mask_ref[...] > 0.5
        buf0[PAD_R:PAD_R + NR, :] = xin

        # --- ResModule.conv0: Conv3d + BN + ReLU -----------------------------
        y0 = jnp.where(m, jnp.maximum(conv9(buf0, w0_ref, s0_ref, WC), 0.0), 0.0)
        buf1[PAD_R:PAD_R + NR, :] = y0

        # --- ResModule.conv1: Conv3d + BN, + identity, ReLU -------------------
        y1 = jnp.where(
            m, jnp.maximum(conv9(buf1, w1_ref, s1_ref, WC) + xin, 0.0), 0.0)
        buf2[PAD_R:PAD_R + NR, :] = y1

        # --- ConvModule: Conv3d stride (1,1,2) + BN + ReLU ---------------------
        # (banded weights emit only the Wo even-z outputs), then mean over z
        # as a lane-slice + sum -- no dense pooling matrix.
        y2 = jnp.maximum(conv9(buf2, w2_ref, s2_ref, WOC), 0.0)    # (NR, Wo*Cout)
        pooled = y2[:, 0:Cout]
        for j in range(1, Wo):
            pooled = pooled + y2[:, j * Cout:(j + 1) * Cout]
        # TODO(synk): at production sizes emit a channels-major lane-dense
        # output block; at Cout=8 this 3 KB store is negligible.
        o_ref[...] = pooled * (1.0 / Wo)

    flops_per_n = 2 * 9 * NR * WC * (WC + WC + WOC)
    bytes_accessed = 4 * (x_pencil.size + w0b.size + w1b.size + w2b.size
                          + s0.size + s1.size + s2.size + mask.size
                          + N * NR * Cout)

    grid_spec = pltpu.PrefetchScalarGridSpec(
        num_scalar_prefetch=0,
        grid=(N,),
        in_specs=[
            pl.BlockSpec((None, NR, WC), lambda n: (n, 0, 0)),    # x pencils
            pl.BlockSpec((9, WC, WC), lambda n: (0, 0, 0)),       # banded w0
            pl.BlockSpec((1, WC), lambda n: (0, 0)),              # shift0 (tiled)
            pl.BlockSpec((9, WC, WC), lambda n: (0, 0, 0)),       # banded w1
            pl.BlockSpec((1, WC), lambda n: (0, 0)),              # shift1
            pl.BlockSpec((9, WC, WOC), lambda n: (0, 0, 0)),      # banded w2
            pl.BlockSpec((1, WOC), lambda n: (0, 0)),             # shift2
            pl.BlockSpec((NR, WC), lambda n: (0, 0)),             # interior mask
        ],
        out_specs=pl.BlockSpec((None, NR, Cout), lambda n: (n, 0, 0)),
        scratch_shapes=[pltpu.VMEM((NTOT, WC), jnp.float32) for _ in range(3)],
    )

    return pl.pallas_call(
        kernel,
        out_shape=jax.ShapeDtypeStruct((N, NR, Cout), jnp.float32),
        grid_spec=grid_spec,
        compiler_params=pltpu.CompilerParams(
            dimension_semantics=("parallel",)),
        cost_estimate=pl.CostEstimate(
            flops=int(N * flops_per_n),
            transcendentals=0,
            bytes_accessed=int(bytes_accessed)),
    )(x_pencil, w0b, s0, w1b, s1, w2b, s2, mask)


# -----------------------------------------------------------------------------
# Forward (jitted): layout glue only (channel slice, pad, reshape, transpose)
# -----------------------------------------------------------------------------
@functools.partial(jax.jit, static_argnames=("num_frames",))
def dfm_neck_mean_pool_forward(params, x, *, num_frames):
    N, c_tot, D, H, W = x.shape
    Dp, Hp, Wp = D + 2, H + 2, W + 2
    Wo = (W - 1) // 2 + 1
    C0 = params["s0"].shape[1] // Wp
    assert c_tot == C0 * num_frames

    # Mono-branch input: channel slice -> channels-last -> zero pad -> pencils.
    # Stays inside this jit so XLA fuses the pad into the transpose copy.
    x0 = jnp.transpose(x[:, :C0], (0, 2, 3, 4, 1))            # (N, D, H, W, C0)
    xp = jnp.pad(x0, ((0, 0), (1, 1), (1, 1), (1, 1), (0, 0)))
    x_pencil = xp.reshape(N, Dp * Hp, Wp * C0)

    mask = jnp.asarray(_interior_mask(D, H, W, C0))

    bev = _fused_neck_pallas(x_pencil, params["w0"], params["s0"],
                             params["w1"], params["s1"],
                             params["w2"], params["s2"], mask,
                             D, H, W)                          # (N, Dp*Hp, Cout)
    Cout = bev.shape[-1]
    bev = bev.reshape(N, Dp, Hp, Cout)[:, 1:D + 1, 1:H + 1, :]  # (N, D, H, C)
    bev = jnp.transpose(bev, (0, 3, 2, 1))                      # (N, C, N_y, N_x)
    return [bev]


class DfMNeckMeanPoolPallas:
    """Pallas/TPU port of DfMNeckMeanPool.forward (eval-mode BatchNorm3d)."""

    def __init__(self, in_channels, out_channels, num_frames=2,
                 key=jax.random.PRNGKey(0)):
        if not isinstance(in_channels, (list, tuple)):
            in_channels = [in_channels, in_channels * 2, in_channels * 4]
        self.in_channels = list(in_channels)
        self.out_channels = out_channels
        self.num_frames = num_frames
        c0 = self.in_channels[0]
        keys = jax.random.split(key, 3)
        self.raw_params = dict(
            res_conv0=_init_conv_bn(keys[0], c0, c0),
            res_conv1=_init_conv_bn(keys[1], c0, c0),
            down=_init_conv_bn(keys[2], c0, out_channels),
        )
        # Eval-mode BN folded once on host; banded weights are built per N_z.
        self._folded = {k: _fold_bn_into_conv(*v)
                        for k, v in self.raw_params.items()}
        self._banded_cache = {}

    def _get_params(self, W):
        if W not in self._banded_cache:
            Wp = W + 2
            Wo = (W - 1) // 2 + 1
            w0f, s0 = self._folded["res_conv0"]
            w1f, s1 = self._folded["res_conv1"]
            w2f, s2 = self._folded["down"]
            self._banded_cache[W] = dict(
                w0=jnp.asarray(_band_weights_stride1(w0f, Wp)),
                s0=jnp.asarray(np.tile(s0, Wp)[None, :]),
                w1=jnp.asarray(_band_weights_stride1(w1f, Wp)),
                s1=jnp.asarray(np.tile(s1, Wp)[None, :]),
                w2=jnp.asarray(_band_weights_stride2(w2f, Wp, Wo)),
                s2=jnp.asarray(np.tile(s2, Wo)[None, :]),
            )
        return self._banded_cache[W]

    def __call__(self, x):
        return dfm_neck_mean_pool_forward(self._get_params(x.shape[-1]), x,
                                          num_frames=self.num_frames)


# -----------------------------------------------------------------------------
# Pure-XLA reference of the same forward pass (validation only)
# -----------------------------------------------------------------------------
def _reference_forward(raw_params, x, c0, eps=1e-5):
    def conv_bn(h, p, stride, relu):
        w, gamma, beta, mean, var = p
        w_oidhw = jnp.transpose(w, (4, 3, 0, 1, 2))           # (Cout,Cin,kd,kh,kw)
        y = lax.conv_general_dilated(
            h, w_oidhw, window_strides=stride, padding=[(1, 1)] * 3,
            dimension_numbers=("NCDHW", "OIDHW", "NCDHW"),
            precision=lax.Precision.HIGHEST)
        scale = gamma / jnp.sqrt(var + eps)
        shift = beta - mean * scale
        y = y * scale.reshape(1, -1, 1, 1, 1) + shift.reshape(1, -1, 1, 1, 1)
        return jnp.maximum(y, 0.0) if relu else y

    x0 = x[:, :c0]                                            # (N, C0, D, H, W)
    y = conv_bn(x0, raw_params["res_conv0"], (1, 1, 1), True)
    y = conv_bn(y, raw_params["res_conv1"], (1, 1, 1), False)
    y = jnp.maximum(y + x0, 0.0)
    y = conv_bn(y, raw_params["down"], (1, 1, 2), True)       # (N, Cout, D, H, Wo)
    y = y.mean(axis=4)                                        # (N, Cout, D, H)
    return jnp.swapaxes(y, -1, -2)                            # (N, Cout, N_y, N_x)


if __name__ == "__main__":
    key = jax.random.PRNGKey(0)
    k_param, k_x = jax.random.split(key)

    in_channels = 4          # -> [4, 8, 16]; only in_channels[0] is used here
    out_channels = 8
    num_frames = 2           # module default: input carries C0*num_frames chans

    neck = DfMNeckMeanPoolPallas(in_channels, out_channels,
                                 num_frames=num_frames, key=k_param)

    N, Nx, Ny, Nz = 2, 8, 8, 12
    x = jax.random.normal(
        k_x, (N, in_channels * num_frames, Nx, Ny, Nz), jnp.float32)

    out = neck(x)
    out = [jax.block_until_ready(o) for o in out]
    assert out[0].shape == (N, out_channels, Ny, Nx)
    assert bool(jnp.all(jnp.isfinite(out[0])))

    # cross-check the fused Pallas kernel against a pure-XLA reference
    ref = jax.block_until_ready(
        _reference_forward(neck.raw_params, x, neck.in_channels[0]))
    np.testing.assert_allclose(np.asarray(out[0]), np.asarray(ref),
                               rtol=1e-3, atol=1e-6)

    print("KERNEL_OK")
</pallas_src>

<mosaic_0001>
module attributes {stable_mosaic.version = 11 : i64} {
  func.func @kernel(%arg0: i32, %arg1: memref<1x100x56xf32, #tpu.memory_space<vmem>>, %arg2: memref<9x56x56xf32, #tpu.memory_space<vmem>>, %arg3: memref<1x56xf32, #tpu.memory_space<vmem>>, %arg4: memref<9x56x56xf32, #tpu.memory_space<vmem>>, %arg5: memref<1x56xf32, #tpu.memory_space<vmem>>, %arg6: memref<9x56x48xf32, #tpu.memory_space<vmem>>, %arg7: memref<1x48xf32, #tpu.memory_space<vmem>>, %arg8: memref<100x56xf32, #tpu.memory_space<vmem>>, %arg9: memref<1x100x8xf32, #tpu.memory_space<vmem>>, %arg10: memref<132x56xf32, #tpu.memory_space<vmem>>, %arg11: memref<132x56xf32, #tpu.memory_space<vmem>>, %arg12: memref<132x56xf32, #tpu.memory_space<vmem>>) attributes {dimension_semantics = [#tpu.dimension_semantics<parallel>], iteration_bounds = array<i64: 2>, scalar_prefetch = 0 : i64, scratch_operands = 3 : i64, tpu.core_type = #tpu.core_type<tc>, window_params = [{transform_indices = @transform_0, window_bounds = array<i64: 1, 100, 56>}, {pipeline_mode = #tpu.pipeline_mode<synchronous>, transform_indices = @transform_1, window_bounds = array<i64: 9, 56, 56>}, {pipeline_mode = #tpu.pipeline_mode<synchronous>, transform_indices = @transform_2, window_bounds = array<i64: 1, 56>}, {pipeline_mode = #tpu.pipeline_mode<synchronous>, transform_indices = @transform_3, window_bounds = array<i64: 9, 56, 56>}, {pipeline_mode = #tpu.pipeline_mode<synchronous>, transform_indices = @transform_4, window_bounds = array<i64: 1, 56>}, {pipeline_mode = #tpu.pipeline_mode<synchronous>, transform_indices = @transform_5, window_bounds = array<i64: 9, 56, 48>}, {pipeline_mode = #tpu.pipeline_mode<synchronous>, transform_indices = @transform_6, window_bounds = array<i64: 1, 48>}, {pipeline_mode = #tpu.pipeline_mode<synchronous>, transform_indices = @transform_7, window_bounds = array<i64: 100, 56>}, {transform_indices = @transform_8, window_bounds = array<i64: 1, 100, 8>}]} {
    %cst = arith.constant 0.000000e+00 : f32
    %0 = vector.broadcast %cst : f32 to vector<16x56xf32>
    %c0 = arith.constant 0 : index
    %c0_0 = arith.constant 0 : index
    %1 = vector.load %arg10[%c0, %c0_0] : memref<132x56xf32, #tpu.memory_space<vmem>>, vector<16x56xf32>
    tpu.vector_store %arg10[%c0, %c0_0], %0 {strides = array<i32>} : memref<132x56xf32, #tpu.memory_space<vmem>>, vector<16x56xf32>,
    %c116 = arith.constant 116 : index
    %c0_1 = arith.constant 0 : index
    %2 = vector.load %arg10[%c116, %c0_1] : memref<132x56xf32, #tpu.memory_space<vmem>>, vector<16x56xf32>
    tpu.vector_store %arg10[%c116, %c0_1], %0 {strides = array<i32>} : memref<132x56xf32, #tpu.memory_space<vmem>>, vector<16x56xf32>,
    %c0_2 = arith.constant 0 : index
    %c0_3 = arith.constant 0 : index
    %3 = vector.load %arg11[%c0_2, %c0_3] : memref<132x56xf32, #tpu.memory_space<vmem>>, vector<16x56xf32>
    tpu.vector_store %arg11[%c0_2, %c0_3], %0 {strides = array<i32>} : memref<132x56xf32, #tpu.memory_space<vmem>>, vector<16x56xf32>,
    %c116_4 = arith.constant 116 : index
    %c0_5 = arith.constant 0 : index
    %4 = vector.load %arg11[%c116_4, %c0_5] : memref<132x56xf32, #tpu.memory_space<vmem>>, vector<16x56xf32>
    tpu.vector_store %arg11[%c116_4, %c0_5], %0 {strides = array<i32>} : memref<132x56xf32, #tpu.memory_space<vmem>>, vector<16x56xf32>,
    %c0_6 = arith.constant 0 : index
    %c0_7 = arith.constant 0 : index
    %5 = vector.load %arg12[%c0_6, %c0_7] : memref<132x56xf32, #tpu.memory_space<vmem>>, vector<16x56xf32>
    tpu.vector_store %arg12[%c0_6, %c0_7], %0 {strides = array<i32>} : memref<132x56xf32, #tpu.memory_space<vmem>>, vector<16x56xf32>,
    %c116_8 = arith.constant 116 : index
    %c0_9 = arith.constant 0 : index
    %6 = vector.load %arg12[%c116_8, %c0_9] : memref<132x56xf32, #tpu.memory_space<vmem>>, vector<16x56xf32>
    tpu.vector_store %arg12[%c116_8, %c0_9], %0 {strides = array<i32>} : memref<132x56xf32, #tpu.memory_space<vmem>>, vector<16x56xf32>,
    %c0_10 = arith.constant 0 : index
    %c0_11 = arith.constant 0 : index
    %c0_12 = arith.constant 0 : index
    %7 = vector.load %arg1[%c0_10, %c0_11, %c0_12] : memref<1x100x56xf32, #tpu.memory_space<vmem>>, vector<1x100x56xf32>
    %8 = vector.shape_cast %7 : vector<1x100x56xf32> to vector<100x56xf32>
    %c0_13 = arith.constant 0 : index
    %c0_14 = arith.constant 0 : index
    %9 = vector.load %arg8[%c0_13, %c0_14] : memref<100x56xf32, #tpu.memory_space<vmem>>, vector<100x56xf32>
    %cst_15 = arith.constant 5.000000e-01 : f32
    %10 = vector.broadcast %cst_15 : f32 to vector<100x56xf32>
    %11 = arith.cmpf ogt, %9, %10 : vector<100x56xf32>
    %c16 = arith.constant 16 : index
    %c0_16 = arith.constant 0 : index
    %12 = vector.load %arg10[%c16, %c0_16] : memref<132x56xf32, #tpu.memory_space<vmem>>, vector<100x56xf32>
    tpu.vector_store %arg10[%c16, %c0_16], %8 {strides = array<i32>} : memref<132x56xf32, #tpu.memory_space<vmem>>, vector<100x56xf32>,
    %cst_17 = arith.constant 0.000000e+00 : f32
    %13 = vector.broadcast %cst_17 : f32 to vector<100x56xf32>
    %c0_18 = arith.constant 0 : index
    %c0_19 = arith.constant 0 : index
    %14 = vector.load %arg3[%c0_18, %c0_19] : memref<1x56xf32, #tpu.memory_space<vmem>>, vector<1x56xf32>
    %15 = vector.broadcast %14 : vector<1x56xf32> to vector<100x56xf32>
    %16 = arith.addf %13, %15 : vector<100x56xf32>
    %c5 = arith.constant 5 : index
    %c0_20 = arith.constant 0 : index
    %17 = vector.load %arg10[%c5, %c0_20] : memref<132x56xf32, #tpu.memory_space<vmem>>, vector<100x56xf32>
    %c0_21 = arith.constant 0 : index
    %c0_22 = arith.constant 0 : index
    %c0_23 = arith.constant 0 : index
    %18 = vector.load %arg2[%c0_21, %c0_22, %c0_23] : memref<9x56x56xf32, #tpu.memory_space<vmem>>, vector<1x56x56xf32>
    %19 = vector.shape_cast %18 : vector<1x56x56xf32> to vector<56x56xf32>
    %cst_24 = arith.constant dense<0.000000e+00> : vector<100x56xf32>
    %20 = tpu.matmul %17, %19, %cst_24 {dimension_numbers = #tpu.dot_dimension_numbers<[1], [0], [0], [1], [0, 0, 1, 1], [], []>} : vector<100x56xf32>, vector<56x56xf32>, vector<100x56xf32> -> vector<100x56xf32>
    %21 = arith.addf %16, %20 : vector<100x56xf32>
    %c6 = arith.constant 6 : index
    %c0_25 = arith.constant 0 : index
    %22 = vector.load %arg10[%c6, %c0_25] : memref<132x56xf32, #tpu.memory_space<vmem>>, vector<100x56xf32>
    %c1 = arith.constant 1 : index
    %c0_26 = arith.constant 0 : index
    %c0_27 = arith.constant 0 : index
    %23 = vector.load %arg2[%c1, %c0_26, %c0_27] : memref<9x56x56xf32, #tpu.memory_space<vmem>>, vector<1x56x56xf32>
    %24 = vector.shape_cast %23 : vector<1x56x56xf32> to vector<56x56xf32>
    %cst_28 = arith.constant dense<0.000000e+00> : vector<100x56xf32>
    %25 = tpu.matmul %22, %24, %cst_28 {dimension_numbers = #tpu.dot_dimension_numbers<[1], [0], [0], [1], [0, 0, 1, 1], [], []>} : vector<100x56xf32>, vector<56x56xf32>, vector<100x56xf32> -> vector<100x56xf32>
    %26 = arith.addf %21, %25 : vector<100x56xf32>
    %c7 = arith.constant 7 : index
    %c0_29 = arith.constant 0 : index
    %27 = vector.load %arg10[%c7, %c0_29] : memref<132x56xf32, #tpu.memory_space<vmem>>, vector<100x56xf32>
    %c2 = arith.constant 2 : index
    %c0_30 = arith.constant 0 : index
    %c0_31 = arith.constant 0 : index
    %28 = vector.load %arg2[%c2, %c0_30, %c0_31] : memref<9x56x56xf32, #tpu.memory_space<vmem>>, vector<1x56x56xf32>
    %29 = vector.shape_cast %28 : vector<1x56x56xf32> to vector<56x56xf32>
    %cst_32 = arith.constant dense<0.000000e+00> : vector<100x56xf32>
    %30 = tpu.matmul %27, %29, %cst_32 {dimension_numbers = #tpu.dot_dimension_numbers<[1], [0], [0], [1], [0, 0, 1, 1], [], []>} : vector<100x56xf32>, vector<56x56xf32>, vector<100x56xf32> -> vector<100x56xf32>
    %31 = arith.addf %26, %30 : vector<100x56xf32>
    %c15 = arith.constant 15 : index
    %c0_33 = arith.constant 0 : index
    %32 = vector.load %arg10[%c15, %c0_33] : memref<132x56xf32, #tpu.memory_space<vmem>>, vector<100x56xf32>
    %c3 = arith.constant 3 : index
    %c0_34 = arith.constant 0 : index
    %c0_35 = arith.constant 0 : index
    %33 = vector.load %arg2[%c3, %c0_34, %c0_35] : memref<9x56x56xf32, #tpu.memory_space<vmem>>, vector<1x56x56xf32>
    %34 = vector.shape_cast %33 : vector<1x56x56xf32> to vector<56x56xf32>
    %cst_36 = arith.constant dense<0.000000e+00> : vector<100x56xf32>
    %35 = tpu.matmul %32, %34, %cst_36 {dimension_numbers = #tpu.dot_dimension_numbers<[1], [0], [0], [1], [0, 0, 1, 1], [], []>} : vector<100x56xf32>, vector<56x56xf32>, vector<100x56xf32> -> vector<100x56xf32>
    %36 = arith.addf %31, %35 : vector<100x56xf32>
    %c16_37 = arith.constant 16 : index
    %c0_38 = arith.constant 0 : index
    %37 = vector.load %arg10[%c16_37, %c0_38] : memref<132x56xf32, #tpu.memory_space<vmem>>, vector<100x56xf32>
    %c4 = arith.constant 4 : index
    %c0_39 = arith.constant 0 : index
    %c0_40 = arith.constant 0 : index
    %38 = vector.load %arg2[%c4, %c0_39, %c0_40] : memref<9x56x56xf32, #tpu.memory_space<vmem>>, vector<1x56x56xf32>
    %39 = vector.shape_cast %38 : vector<1x56x56xf32> to vector<56x56xf32>
    %cst_41 = arith.constant dense<0.000000e+00> : vector<100x56xf32>
    %40 = tpu.matmul %37, %39, %cst_41 {dimension_numbers = #tpu.dot_dimension_numbers<[1], [0], [0], [1], [0, 0, 1, 1], [], []>} : vector<100x56xf32>, vector<56x56xf32>, vector<100x56xf32> -> vector<100x56xf32>
    %41 = arith.addf %36, %40 : vector<100x56xf32>
    %c17 = arith.constant 17 : index
    %c0_42 = arith.constant 0 : index
    %42 = vector.load %arg10[%c17, %c0_42] : memref<132x56xf32, #tpu.memory_space<vmem>>, vector<100x56xf32>
    %c5_43 = arith.constant 5 : index
    %c0_44 = arith.constant 0 : index
    %c0_45 = arith.constant 0 : index
    %43 = vector.load %arg2[%c5_43, %c0_44, %c0_45] : memref<9x56x56xf32, #tpu.memory_space<vmem>>, vector<1x56x56xf32>
    %44 = vector.shape_cast %43 : vector<1x56x56xf32> to vector<56x56xf32>
    %cst_46 = arith.constant dense<0.000000e+00> : vector<100x56xf32>
    %45 = tpu.matmul %42, %44, %cst_46 {dimension_numbers = #tpu.dot_dimension_numbers<[1], [0], [0], [1], [0, 0, 1, 1], [], []>} : vector<100x56xf32>, vector<56x56xf32>, vector<100x56xf32> -> vector<100x56xf32>
    %46 = arith.addf %41, %45 : vector<100x56xf32>
    %c25 = arith.constant 25 : index
    %c0_47 = arith.constant 0 : index
    %47 = vector.load %arg10[%c25, %c0_47] : memref<132x56xf32, #tpu.memory_space<vmem>>, vector<100x56xf32>
    %c6_48 = arith.constant 6 : index
    %c0_49 = arith.constant 0 : index
    %c0_50 = arith.constant 0 : index
    %48 = vector.load %arg2[%c6_48, %c0_49, %c0_50] : memref<9x56x56xf32, #tpu.memory_space<vmem>>, vector<1x56x56xf32>
    %49 = vector.shape_cast %48 : vector<1x56x56xf32> to vector<56x56xf32>
    %cst_51 = arith.constant dense<0.000000e+00> : vector<100x56xf32>
    %50 = tpu.matmul %47, %49, %cst_51 {dimension_numbers = #tpu.dot_dimension_numbers<[1], [0], [0], [1], [0, 0, 1, 1], [], []>} : vector<100x56xf32>, vector<56x56xf32>, vector<100x56xf32> -> vector<100x56xf32>
    %51 = arith.addf %46, %50 : vector<100x56xf32>
    %c26 = arith.constant 26 : index
    %c0_52 = arith.constant 0 : index
    %52 = vector.load %arg10[%c26, %c0_52] : memref<132x56xf32, #tpu.memory_space<vmem>>, vector<100x56xf32>
    %c7_53 = arith.constant 7 : index
    %c0_54 = arith.constant 0 : index
    %c0_55 = arith.constant 0 : index
    %53 = vector.load %arg2[%c7_53, %c0_54, %c0_55] : memref<9x56x56xf32, #tpu.memory_space<vmem>>, vector<1x56x56xf32>
    %54 = vector.shape_cast %53 : vector<1x56x56xf32> to vector<56x56xf32>
    %cst_56 = arith.constant dense<0.000000e+00> : vector<100x56xf32>
    %55 = tpu.matmul %52, %54, %cst_56 {dimension_numbers = #tpu.dot_dimension_numbers<[1], [0], [0], [1], [0, 0, 1, 1], [], []>} : vector<100x56xf32>, vector<56x56xf32>, vector<100x56xf32> -> vector<100x56xf32>
    %56 = arith.addf %51, %55 : vector<100x56xf32>
    %c27 = arith.constant 27 : index
    %c0_57 = arith.constant 0 : index
    %57 = vector.load %arg10[%c27, %c0_57] : memref<132x56xf32, #tpu.memory_space<vmem>>, vector<100x56xf32>
    %c8 = arith.constant 8 : index
    %c0_58 = arith.constant 0 : index
    %c0_59 = arith.constant 0 : index
    %58 = vector.load %arg2[%c8, %c0_58, %c0_59] : memref<9x56x56xf32, #tpu.memory_space<vmem>>, vector<1x56x56xf32>
    %59 = vector.shape_cast %58 : vector<1x56x56xf32> to vector<56x56xf32>
    %cst_60 = arith.constant dense<0.000000e+00> : vector<100x56xf32>
    %60 = tpu.matmul %57, %59, %cst_60 {dimension_numbers = #tpu.dot_dimension_numbers<[1], [0], [0], [1], [0, 0, 1, 1], [], []>} : vector<100x56xf32>, vector<56x56xf32>, vector<100x56xf32> -> vector<100x56xf32>
    %61 = arith.addf %56, %60 : vector<100x56xf32>
    %cst_61 = arith.constant 0.000000e+00 : f32
    %62 = vector.broadcast %cst_61 : f32 to vector<100x56xf32>
    %63 = arith.maximumf %61, %62 : vector<100x56xf32>
    %cst_62 = arith.constant 0.000000e+00 : f32
    %64 = vector.broadcast %cst_62 : f32 to vector<100x56xf32>
    %65 = arith.select %11, %63, %64 : vector<100x56xi1>, vector<100x56xf32>
    %c16_63 = arith.constant 16 : index
    %c0_64 = arith.constant 0 : index
    %66 = vector.load %arg11[%c16_63, %c0_64] : memref<132x56xf32, #tpu.memory_space<vmem>>, vector<100x56xf32>
    tpu.vector_store %arg11[%c16_63, %c0_64], %65 {strides = array<i32>} : memref<132x56xf32, #tpu.memory_space<vmem>>, vector<100x56xf32>,
    %cst_65 = arith.constant 0.000000e+00 : f32
    %67 = vector.broadcast %cst_65 : f32 to vector<100x56xf32>
    %c0_66 = arith.constant 0 : index
    %c0_67 = arith.constant 0 : index
    %68 = vector.load %arg5[%c0_66, %c0_67] : memref<1x56xf32, #tpu.memory_space<vmem>>, vector<1x56xf32>
    %69 = vector.broadcast %68 : vector<1x56xf32> to vector<100x56xf32>
    %70 = arith.addf %67, %69 : vector<100x56xf32>
    %c5_68 = arith.constant 5 : index
    %c0_69 = arith.constant 0 : index
    %71 = vector.load %arg11[%c5_68, %c0_69] : memref<132x56xf32, #tpu.memory_space<vmem>>, vector<100x56xf32>
    %c0_70 = arith.constant 0 : index
    %c0_71 = arith.constant 0 : index
    %c0_72 = arith.constant 0 : index
    %72 = vector.load %arg4[%c0_70, %c0_71, %c0_72] : memref<9x56x56xf32, #tpu.memory_space<vmem>>, vector<1x56x56xf32>
    %73 = vector.shape_cast %72 : vector<1x56x56xf32> to vector<56x56xf32>
    %cst_73 = arith.constant dense<0.000000e+00> : vector<100x56xf32>
    %74 = tpu.matmul %71, %73, %cst_73 {dimension_numbers = #tpu.dot_dimension_numbers<[1], [0], [0], [1], [0, 0, 1, 1], [], []>} : vector<100x56xf32>, vector<56x56xf32>, vector<100x56xf32> -> vector<100x56xf32>
    %75 = arith.addf %70, %74 : vector<100x56xf32>
    %c6_74 = arith.constant 6 : index
    %c0_75 = arith.constant 0 : index
    %76 = vector.load %arg11[%c6_74, %c0_75] : memref<132x56xf32, #tpu.memory_space<vmem>>, vector<100x56xf32>
    %c1_76 = arith.constant 1 : index
    %c0_77 = arith.constant 0 : index
    %c0_78 = arith.constant 0 : index
    %77 = vector.load %arg4[%c1_76, %c0_77, %c0_78] : memref<9x56x56xf32, #tpu.memory_space<vmem>>, vector<1x56x56xf32>
    %78 = vector.shape_cast %77 : vector<1x56x56xf32> to vector<56x56xf32>
    %cst_79 = arith.constant dense<0.000000e+00> : vector<100x56xf32>
    %79 = tpu.matmul %76, %78, %cst_79 {dimension_numbers = #tpu.dot_dimension_numbers<[1], [0], [0], [1], [0, 0, 1, 1], [], []>} : vector<100x56xf32>, vector<56x56xf32>, vector<100x56xf32> -> vector<100x56xf32>
    %80 = arith.addf %75, %79 : vector<100x56xf32>
    %c7_80 = arith.constant 7 : index
    %c0_81 = arith.constant 0 : index
    %81 = vector.load %arg11[%c7_80, %c0_81] : memref<132x56xf32, #tpu.memory_space<vmem>>, vector<100x56xf32>
    %c2_82 = arith.constant 2 : index
    %c0_83 = arith.constant 0 : index
    %c0_84 = arith.constant 0 : index
    %82 = vector.load %arg4[%c2_82, %c0_83, %c0_84] : memref<9x56x56xf32, #tpu.memory_space<vmem>>, vector<1x56x56xf32>
    %83 = vector.shape_cast %82 : vector<1x56x56xf32> to vector<56x56xf32>
    %cst_85 = arith.constant dense<0.000000e+00> : vector<100x56xf32>
    %84 = tpu.matmul %81, %83, %cst_85 {dimension_numbers = #tpu.dot_dimension_numbers<[1], [0], [0], [1], [0, 0, 1, 1], [], []>} : vector<100x56xf32>, vector<56x56xf32>, vector<100x56xf32> -> vector<100x56xf32>
    %85 = arith.addf %80, %84 : vector<100x56xf32>
    %c15_86 = arith.constant 15 : index
    %c0_87 = arith.constant 0 : index
    %86 = vector.load %arg11[%c15_86, %c0_87] : memref<132x56xf32, #tpu.memory_space<vmem>>, vector<100x56xf32>
    %c3_88 = arith.constant 3 : index
    %c0_89 = arith.constant 0 : index
    %c0_90 = arith.constant 0 : index
    %87 = vector.load %arg4[%c3_88, %c0_89, %c0_90] : memref<9x56x56xf32, #tpu.memory_space<vmem>>, vector<1x56x56xf32>
    %88 = vector.shape_cast %87 : vector<1x56x56xf32> to vector<56x56xf32>
    %cst_91 = arith.constant dense<0.000000e+00> : vector<100x56xf32>
    %89 = tpu.matmul %86, %88, %cst_91 {dimension_numbers = #tpu.dot_dimension_numbers<[1], [0], [0], [1], [0, 0, 1, 1], [], []>} : vector<100x56xf32>, vector<56x56xf32>, vector<100x56xf32> -> vector<100x56xf32>
    %90 = arith.addf %85, %89 : vector<100x56xf32>
    %c16_92 = arith.constant 16 : index
    %c0_93 = arith.constant 0 : index
    %91 = vector.load %arg11[%c16_92, %c0_93] : memref<132x56xf32, #tpu.memory_space<vmem>>, vector<100x56xf32>
    %c4_94 = arith.constant 4 : index
    %c0_95 = arith.constant 0 : index
    %c0_96 = arith.constant 0 : index
    %92 = vector.load %arg4[%c4_94, %c0_95, %c0_96] : memref<9x56x56xf32, #tpu.memory_space<vmem>>, vector<1x56x56xf32>
    %93 = vector.shape_cast %92 : vector<1x56x56xf32> to vector<56x56xf32>
    %cst_97 = arith.constant dense<0.000000e+00> : vector<100x56xf32>
    %94 = tpu.matmul %91, %93, %cst_97 {dimension_numbers = #tpu.dot_dimension_numbers<[1], [0], [0], [1], [0, 0, 1, 1], [], []>} : vector<100x56xf32>, vector<56x56xf32>, vector<100x56xf32> -> vector<100x56xf32>
    %95 = arith.addf %90, %94 : vector<100x56xf32>
    %c17_98 = arith.constant 17 : index
    %c0_99 = arith.constant 0 : index
    %96 = vector.load %arg11[%c17_98, %c0_99] : memref<132x56xf32, #tpu.memory_space<vmem>>, vector<100x56xf32>
    %c5_100 = arith.constant 5 : index
    %c0_101 = arith.constant 0 : index
    %c0_102 = arith.constant 0 : index
    %97 = vector.load %arg4[%c5_100, %c0_101, %c0_102] : memref<9x56x56xf32, #tpu.memory_space<vmem>>, vector<1x56x56xf32>
    %98 = vector.shape_cast %97 : vector<1x56x56xf32> to vector<56x56xf32>
    %cst_103 = arith.constant dense<0.000000e+00> : vector<100x56xf32>
    %99 = tpu.matmul %96, %98, %cst_103 {dimension_numbers = #tpu.dot_dimension_numbers<[1], [0], [0], [1], [0, 0, 1, 1], [], []>} : vector<100x56xf32>, vector<56x56xf32>, vector<100x56xf32> -> vector<100x56xf32>
    %100 = arith.addf %95, %99 : vector<100x56xf32>
    %c25_104 = arith.constant 25 : index
    %c0_105 = arith.constant 0 : index
    %101 = vector.load %arg11[%c25_104, %c0_105] : memref<132x56xf32, #tpu.memory_space<vmem>>, vector<100x56xf32>
    %c6_106 = arith.constant 6 : index
    %c0_107 = arith.constant 0 : index
    %c0_108 = arith.constant 0 : index
    %102 = vector.load %arg4[%c6_106, %c0_107, %c0_108] : memref<9x56x56xf32, #tpu.memory_space<vmem>>, vector<1x56x56xf32>
    %103 = vector.shape_cast %102 : vector<1x56x56xf32> to vector<56x56xf32>
    %cst_109 = arith.constant dense<0.000000e+00> : vector<100x56xf32>
    %104 = tpu.matmul %101, %103, %cst_109 {dimension_numbers = #tpu.dot_dimension_numbers<[1], [0], [0], [1], [0, 0, 1, 1], [], []>} : vector<100x56xf32>, vector<56x56xf32>, vector<100x56xf32> -> vector<100x56xf32>
    %105 = arith.addf %100, %104 : vector<100x56xf32>
    %c26_110 = arith.constant 26 : index
    %c0_111 = arith.constant 0 : index
    %106 = vector.load %arg11[%c26_110, %c0_111] : memref<132x56xf32, #tpu.memory_space<vmem>>, vector<100x56xf32>
    %c7_112 = arith.constant 7 : index
    %c0_113 = arith.constant 0 : index
    %c0_114 = arith.constant 0 : index
    %107 = vector.load %arg4[%c7_112, %c0_113, %c0_114] : memref<9x56x56xf32, #tpu.memory_space<vmem>>, vector<1x56x56xf32>
    %108 = vector.shape_cast %107 : vector<1x56x56xf32> to vector<56x56xf32>
    %cst_115 = arith.constant dense<0.000000e+00> : vector<100x56xf32>
    %109 = tpu.matmul %106, %108, %cst_115 {dimension_numbers = #tpu.dot_dimension_numbers<[1], [0], [0], [1], [0, 0, 1, 1], [], []>} : vector<100x56xf32>, vector<56x56xf32>, vector<100x56xf32> -> vector<100x56xf32>
    %110 = arith.addf %105, %109 : vector<100x56xf32>
    %c27_116 = arith.constant 27 : index
    %c0_117 = arith.constant 0 : index
    %111 = vector.load %arg11[%c27_116, %c0_117] : memref<132x56xf32, #tpu.memory_space<vmem>>, vector<100x56xf32>
    %c8_118 = arith.constant 8 : index
    %c0_119 = arith.constant 0 : index
    %c0_120 = arith.constant 0 : index
    %112 = vector.load %arg4[%c8_118, %c0_119, %c0_120] : memref<9x56x56xf32, #tpu.memory_space<vmem>>, vector<1x56x56xf32>
    %113 = vector.shape_cast %112 : vector<1x56x56xf32> to vector<56x56xf32>
    %cst_121 = arith.constant dense<0.000000e+00> : vector<100x56xf32>
    %114 = tpu.matmul %111, %113, %cst_121 {dimension_numbers = #tpu.dot_dimension_numbers<[1], [0], [0], [1], [0, 0, 1, 1], [], []>} : vector<100x56xf32>, vector<56x56xf32>, vector<100x56xf32> -> vector<100x56xf32>
    %115 = arith.addf %110, %114 : vector<100x56xf32>
    %116 = arith.addf %115, %8 : vector<100x56xf32>
    %cst_122 = arith.constant 0.000000e+00 : f32
    %117 = vector.broadcast %cst_122 : f32 to vector<100x56xf32>
    %118 = arith.maximumf %116, %117 : vector<100x56xf32>
    %cst_123 = arith.constant 0.000000e+00 : f32
    %119 = vector.broadcast %cst_123 : f32 to vector<100x56xf32>
    %120 = arith.select %11, %118, %119 : vector<100x56xi1>, vector<100x56xf32>
    %c16_124 = arith.constant 16 : index
    %c0_125 = arith.constant 0 : index
    %121 = vector.load %arg12[%c16_124, %c0_125] : memref<132x56xf32, #tpu.memory_space<vmem>>, vector<100x56xf32>
    tpu.vector_store %arg12[%c16_124, %c0_125], %120 {strides = array<i32>} : memref<132x56xf32, #tpu.memory_space<vmem>>, vector<100x56xf32>,
    %cst_126 = arith.constant 0.000000e+00 : f32
    %122 = vector.broadcast %cst_126 : f32 to vector<100x48xf32>
    %c0_127 = arith.constant 0 : index
    %c0_128 = arith.constant 0 : index
    %123 = vector.load %arg7[%c0_127, %c0_128] : memref<1x48xf32, #tpu.memory_space<vmem>>, vector<1x48xf32>
    %124 = vector.broadcast %123 : vector<1x48xf32> to vector<100x48xf32>
    %125 = arith.addf %122, %124 : vector<100x48xf32>
    %c5_129 = arith.constant 5 : index
    %c0_130 = arith.constant 0 : index
    %126 = vector.load %arg12[%c5_129, %c0_130] : memref<132x56xf32, #tpu.memory_space<vmem>>, vector<100x56xf32>
    %c0_131 = arith.constant 0 : index
    %c0_132 = arith.constant 0 : index
    %c0_133 = arith.constant 0 : index
    %127 = vector.load %arg6[%c0_131, %c0_132, %c0_133] : memref<9x56x48xf32, #tpu.memory_space<vmem>>, vector<1x56x48xf32>
    %128 = vector.shape_cast %127 : vector<1x56x48xf32> to vector<56x48xf32>
    %cst_134 = arith.constant dense<0.000000e+00> : vector<100x48xf32>
    %129 = tpu.matmul %126, %128, %cst_134 {dimension_numbers = #tpu.dot_dimension_numbers<[1], [0], [0], [1], [0, 0, 1, 1], [], []>} : vector<100x56xf32>, vector<56x48xf32>, vector<100x48xf32> -> vector<100x48xf32>
    %130 = arith.addf %125, %129 : vector<100x48xf32>
    %c6_135 = arith.constant 6 : index
    %c0_136 = arith.constant 0 : index
    %131 = vector.load %arg12[%c6_135, %c0_136] : memref<132x56xf32, #tpu.memory_space<vmem>>, vector<100x56xf32>
    %c1_137 = arith.constant 1 : index
    %c0_138 = arith.constant 0 : index
    %c0_139 = arith.constant 0 : index
    %132 = vector.load %arg6[%c1_137, %c0_138, %c0_139] : memref<9x56x48xf32, #tpu.memory_space<vmem>>, vector<1x56x48xf32>
    %133 = vector.shape_cast %132 : vector<1x56x48xf32> to vector<56x48xf32>
    %cst_140 = arith.constant dense<0.000000e+00> : vector<100x48xf32>
    %134 = tpu.matmul %131, %133, %cst_140 {dimension_numbers = #tpu.dot_dimension_numbers<[1], [0], [0], [1], [0, 0, 1, 1], [], []>} : vector<100x56xf32>, vector<56x48xf32>, vector<100x48xf32> -> vector<100x48xf32>
    %135 = arith.addf %130, %134 : vector<100x48xf32>
    %c7_141 = arith.constant 7 : index
    %c0_142 = arith.constant 0 : index
    %136 = vector.load %arg12[%c7_141, %c0_142] : memref<132x56xf32, #tpu.memory_space<vmem>>, vector<100x56xf32>
    %c2_143 = arith.constant 2 : index
    %c0_144 = arith.constant 0 : index
    %c0_145 = arith.constant 0 : index
    %137 = vector.load %arg6[%c2_143, %c0_144, %c0_145] : memref<9x56x48xf32, #tpu.memory_space<vmem>>, vector<1x56x48xf32>
    %138 = vector.shape_cast %137 : vector<1x56x48xf32> to vector<56x48xf32>
    %cst_146 = arith.constant dense<0.000000e+00> : vector<100x48xf32>
    %139 = tpu.matmul %136, %138, %cst_146 {dimension_numbers = #tpu.dot_dimension_numbers<[1], [0], [0], [1], [0, 0, 1, 1], [], []>} : vector<100x56xf32>, vector<56x48xf32>, vector<100x48xf32> -> vector<100x48xf32>
    %140 = arith.addf %135, %139 : vector<100x48xf32>
    %c15_147 = arith.constant 15 : index
    %c0_148 = arith.constant 0 : index
    %141 = vector.load %arg12[%c15_147, %c0_148] : memref<132x56xf32, #tpu.memory_space<vmem>>, vector<100x56xf32>
    %c3_149 = arith.constant 3 : index
    %c0_150 = arith.constant 0 : index
    %c0_151 = arith.constant 0 : index
    %142 = vector.load %arg6[%c3_149, %c0_150, %c0_151] : memref<9x56x48xf32, #tpu.memory_space<vmem>>, vector<1x56x48xf32>
    %143 = vector.shape_cast %142 : vector<1x56x48xf32> to vector<56x48xf32>
    %cst_152 = arith.constant dense<0.000000e+00> : vector<100x48xf32>
    %144 = tpu.matmul %141, %143, %cst_152 {dimension_numbers = #tpu.dot_dimension_numbers<[1], [0], [0], [1], [0, 0, 1, 1], [], []>} : vector<100x56xf32>, vector<56x48xf32>, vector<100x48xf32> -> vector<100x48xf32>
    %145 = arith.addf %140, %144 : vector<100x48xf32>
    %c16_153 = arith.constant 16 : index
    %c0_154 = arith.constant 0 : index
    %146 = vector.load %arg12[%c16_153, %c0_154] : memref<132x56xf32, #tpu.memory_space<vmem>>, vector<100x56xf32>
    %c4_155 = arith.constant 4 : index
    %c0_156 = arith.constant 0 : index
    %c0_157 = arith.constant 0 : index
    %147 = vector.load %arg6[%c4_155, %c0_156, %c0_157] : memref<9x56x48xf32, #tpu.memory_space<vmem>>, vector<1x56x48xf32>
    %148 = vector.shape_cast %147 : vector<1x56x48xf32> to vector<56x48xf32>
    %cst_158 = arith.constant dense<0.000000e+00> : vector<100x48xf32>
    %149 = tpu.matmul %146, %148, %cst_158 {dimension_numbers = #tpu.dot_dimension_numbers<[1], [0], [0], [1], [0, 0, 1, 1], [], []>} : vector<100x56xf32>, vector<56x48xf32>, vector<100x48xf32> -> vector<100x48xf32>
    %150 = arith.addf %145, %149 : vector<100x48xf32>
    %c17_159 = arith.constant 17 : index
    %c0_160 = arith.constant 0 : index
    %151 = vector.load %arg12[%c17_159, %c0_160] : memref<132x56xf32, #tpu.memory_space<vmem>>, vector<100x56xf32>
    %c5_161 = arith.constant 5 : index
    %c0_162 = arith.constant 0 : index
    %c0_163 = arith.constant 0 : index
    %152 = vector.load %arg6[%c5_161, %c0_162, %c0_163] : memref<9x56x48xf32, #tpu.memory_space<vmem>>, vector<1x56x48xf32>
    %153 = vector.shape_cast %152 : vector<1x56x48xf32> to vector<56x48xf32>
    %cst_164 = arith.constant dense<0.000000e+00> : vector<100x48xf32>
    %154 = tpu.matmul %151, %153, %cst_164 {dimension_numbers = #tpu.dot_dimension_numbers<[1], [0], [0], [1], [0, 0, 1, 1], [], []>} : vector<100x56xf32>, vector<56x48xf32>, vector<100x48xf32> -> vector<100x48xf32>
    %155 = arith.addf %150, %154 : vector<100x48xf32>
    %c25_165 = arith.constant 25 : index
    %c0_166 = arith.constant 0 : index
    %156 = vector.load %arg12[%c25_165, %c0_166] : memref<132x56xf32, #tpu.memory_space<vmem>>, vector<100x56xf32>
    %c6_167 = arith.constant 6 : index
    %c0_168 = arith.constant 0 : index
    %c0_169 = arith.constant 0 : index
    %157 = vector.load %arg6[%c6_167, %c0_168, %c0_169] : memref<9x56x48xf32, #tpu.memory_space<vmem>>, vector<1x56x48xf32>
    %158 = vector.shape_cast %157 : vector<1x56x48xf32> to vector<56x48xf32>
    %cst_170 = arith.constant dense<0.000000e+00> : vector<100x48xf32>
    %159 = tpu.matmul %156, %158, %cst_170 {dimension_numbers = #tpu.dot_dimension_numbers<[1], [0], [0], [1], [0, 0, 1, 1], [], []>} : vector<100x56xf32>, vector<56x48xf32>, vector<100x48xf32> -> vector<100x48xf32>
    %160 = arith.addf %155, %159 : vector<100x48xf32>
    %c26_171 = arith.constant 26 : index
    %c0_172 = arith.constant 0 : index
    %161 = vector.load %arg12[%c26_171, %c0_172] : memref<132x56xf32, #tpu.memory_space<vmem>>, vector<100x56xf32>
    %c7_173 = arith.constant 7 : index
    %c0_174 = arith.constant 0 : index
    %c0_175 = arith.constant 0 : index
    %162 = vector.load %arg6[%c7_173, %c0_174, %c0_175] : memref<9x56x48xf32, #tpu.memory_space<vmem>>, vector<1x56x48xf32>
    %163 = vector.shape_cast %162 : vector<1x56x48xf32> to vector<56x48xf32>
    %cst_176 = arith.constant dense<0.000000e+00> : vector<100x48xf32>
    %164 = tpu.matmul %161, %163, %cst_176 {dimension_numbers = #tpu.dot_dimension_numbers<[1], [0], [0], [1], [0, 0, 1, 1], [], []>} : vector<100x56xf32>, vector<56x48xf32>, vector<100x48xf32> -> vector<100x48xf32>
    %165 = arith.addf %160, %164 : vector<100x48xf32>
    %c27_177 = arith.constant 27 : index
    %c0_178 = arith.constant 0 : index
    %166 = vector.load %arg12[%c27_177, %c0_178] : memref<132x56xf32, #tpu.memory_space<vmem>>, vector<100x56xf32>
    %c8_179 = arith.constant 8 : index
    %c0_180 = arith.constant 0 : index
    %c0_181 = arith.constant 0 : index
    %167 = vector.load %arg6[%c8_179, %c0_180, %c0_181] : memref<9x56x48xf32, #tpu.memory_space<vmem>>, vector<1x56x48xf32>
    %168 = vector.shape_cast %167 : vector<1x56x48xf32> to vector<56x48xf32>
    %cst_182 = arith.constant dense<0.000000e+00> : vector<100x48xf32>
    %169 = tpu.matmul %166, %168, %cst_182 {dimension_numbers = #tpu.dot_dimension_numbers<[1], [0], [0], [1], [0, 0, 1, 1], [], []>} : vector<100x56xf32>, vector<56x48xf32>, vector<100x48xf32> -> vector<100x48xf32>
    %170 = arith.addf %165, %169 : vector<100x48xf32>
    %cst_183 = arith.constant 0.000000e+00 : f32
    %171 = vector.broadcast %cst_183 : f32 to vector<100x48xf32>
    %172 = arith.maximumf %170, %171 : vector<100x48xf32>
    %173 = vector.extract_strided_slice %172 {offsets = [0, 0], sizes = [100, 8], strides = [1, 1]} : vector<100x48xf32> to vector<100x8xf32>
    %174 = vector.extract_strided_slice %172 {offsets = [0, 8], sizes = [100, 8], strides = [1, 1]} : vector<100x48xf32> to vector<100x8xf32>
    %175 = arith.addf %173, %174 : vector<100x8xf32>
    %176 = vector.extract_strided_slice %172 {offsets = [0, 16], sizes = [100, 8], strides = [1, 1]} : vector<100x48xf32> to vector<100x8xf32>
    %177 = arith.addf %175, %176 : vector<100x8xf32>
    %178 = vector.extract_strided_slice %172 {offsets = [0, 24], sizes = [100, 8], strides = [1, 1]} : vector<100x48xf32> to vector<100x8xf32>
    %179 = arith.addf %177, %178 : vector<100x8xf32>
    %180 = vector.extract_strided_slice %172 {offsets = [0, 32], sizes = [100, 8], strides = [1, 1]} : vector<100x48xf32> to vector<100x8xf32>
    %181 = arith.addf %179, %180 : vector<100x8xf32>
    %182 = vector.extract_strided_slice %172 {offsets = [0, 40], sizes = [100, 8], strides = [1, 1]} : vector<100x48xf32> to vector<100x8xf32>
    %183 = arith.addf %181, %182 : vector<100x8xf32>
    %cst_184 = arith.constant 0.166666672 : f32
    %184 = vector.broadcast %cst_184 : f32 to vector<100x8xf32>
    %185 = arith.mulf %183, %184 : vector<100x8xf32>
    %c0_185 = arith.constant 0 : index
    %c0_186 = arith.constant 0 : index
    %c0_187 = arith.constant 0 : index
    %186 = vector.load %arg9[%c0_185, %c0_186, %c0_187] : memref<1x100x8xf32, #tpu.memory_space<vmem>>, vector<1x100x8xf32>
    %187 = vector.shape_cast %186 : vector<1x100x8xf32> to vector<100x8xf32>
    %188 = vector.shape_cast %185 : vector<100x8xf32> to vector<1x100x8xf32>
    tpu.vector_store %arg9[%c0_185, %c0_186, %c0_187], %188 {strides = array<i32>} : memref<1x100x8xf32, #tpu.memory_space<vmem>>, vector<1x100x8xf32>,
    return
  }
  func.func @transform_0(%arg0: i32) -> (i32, i32, i32) {
    %c0_i32 = arith.constant 0 : i32
    %c0_i32_0 = arith.constant 0 : i32
    %c0_i32_1 = arith.constant 0 : i32
    return %arg0, %c0_i32, %c0_i32_0 : i32, i32, i32
  }
  func.func @transform_1(%arg0: i32) -> (i32, i32, i32) {
    %c0_i32 = arith.constant 0 : i32
    %c0_i32_0 = arith.constant 0 : i32
    %c0_i32_1 = arith.constant 0 : i32
    %c0_i32_2 = arith.constant 0 : i32
    return %c0_i32, %c0_i32_0, %c0_i32_1 : i32, i32, i32
  }
  func.func @transform_2(%arg0: i32) -> (i32, i32) {
    %c0_i32 = arith.constant 0 : i32
    %c0_i32_0 = arith.constant 0 : i32
    %c0_i32_1 = arith.constant 0 : i32
    return %c0_i32, %c0_i32_0 : i32, i32
  }
  func.func @transform_3(%arg0: i32) -> (i32, i32, i32) {
    %c0_i32 = arith.constant 0 : i32
    %c0_i32_0 = arith.constant 0 : i32
    %c0_i32_1 = arith.constant 0 : i32
    %c0_i32_2 = arith.constant 0 : i32
    return %c0_i32, %c0_i32_0, %c0_i32_1 : i32, i32, i32
  }
  func.func @transform_4(%arg0: i32) -> (i32, i32) {
    %c0_i32 = arith.constant 0 : i32
    %c0_i32_0 = arith.constant 0 : i32
    %c0_i32_1 = arith.constant 0 : i32
    return %c0_i32, %c0_i32_0 : i32, i32
  }
  func.func @transform_5(%arg0: i32) -> (i32, i32, i32) {
    %c0_i32 = arith.constant 0 : i32
    %c0_i32_0 = arith.constant 0 : i32
    %c0_i32_1 = arith.constant 0 : i32
    %c0_i32_2 = arith.constant 0 : i32
    return %c0_i32, %c0_i32_0, %c0_i32_1 : i32, i32, i32
  }
  func.func @transform_6(%arg0: i32) -> (i32, i32) {
    %c0_i32 = arith.constant 0 : i32
    %c0_i32_0 = arith.constant 0 : i32
    %c0_i32_1 = arith.constant 0 : i32
    return %c0_i32, %c0_i32_0 : i32, i32
  }
  func.func @transform_7(%arg0: i32) -> (i32, i32) {
    %c0_i32 = arith.constant 0 : i32
    %c0_i32_0 = arith.constant 0 : i32
    %c0_i32_1 = arith.constant 0 : i32
    return %c0_i32, %c0_i32_0 : i32, i32
  }
  func.func @transform_8(%arg0: i32) -> (i32, i32, i32) {
    %c0_i32 = arith.constant 0 : i32
    %c0_i32_0 = arith.constant 0 : i32
    %c0_i32_1 = arith.constant 0 : i32
    return %arg0, %c0_i32, %c0_i32_0 : i32, i32, i32
  }
}

</mosaic_0001>

<bundles_post_ra>
// kernel: dfm_neck_mean_pool_forward.1
= control target key start
LH: loop header
LB: loop body
LE: loop exit
PB: predicated region body
PF: predicated region fallthrough
CT: control target
= control target key end

     0   :  { %s8926_s27 = smov 0   ;;  %s11915_s0 = inlined_call_operand.vmem [shape: f32[2,100,56], index: 0, kind: input, shape index: {}]   ;;  %s11916_s1 = inlined_call_operand.vmem [shape: f32[9,56,56], index: 1, kind: input, shape index: {}]   ;;  %s11917_s2 = inlined_call_operand.vmem [shape: f32[1,56], index: 2, kind: input, shape index: {}]   ;;  %s11918_s3 = inlined_call_operand.vmem [shape: f32[9,56,56], index: 3, kind: input, shape index: {}]   ;;  %s11919_s4 = inlined_call_operand.vmem [shape: f32[1,56], index: 4, kind: input, shape index: {}]   ;;  %s11920_s5 = inlined_call_operand.vmem [shape: f32[9,56,48], index: 5, kind: input, shape index: {}]   ;;  %s11921_s6 = inlined_call_operand.vmem [shape: f32[1,48], index: 6, kind: input, shape index: {}]   ;;  %s11922_s7 = inlined_call_operand.vmem [shape: f32[100,56], index: 7, kind: input, shape index: {}]   ;;  %s11923_s8 = inlined_call_operand.vmem [shape: f32[2,100,8], index: 8, kind: output, shape index: {}]  }
   0x1 LB: > { %s6334_s28 = sadd.s32 4294967295, %s8872_s27   ;;  %p6338_p0 = scmp.ge.s32.totalorder %s8872_s27, 1  ;;  %s8872_s27 = sphi %s8926_s27, %s18_s27  }
   0x2   : > { %p262_p1 = scmp.lt.s32.totalorder %s8872_s27, 3 }
   0x4   : > { %p263_p2 = pnand %p6338_p0, %p262_p1 }
   0x6   : > { %266 = sbr.rel (%p263_p2) target bundleno = 1481 (0x5c9), region = 52 }
   0xb   : > { %v399_v0 = vld [vmem:[%s11916_s1 + $0x30] sm:$0xff]  ;;  %vm306_vm0 = vcmask 457728   ;;  %v11924_v1 = vmov 0.0   ;;  %v398_v2 = vld [vmem:[%s11916_s1 + $0x28] sm:$0xff]  ;;  %p296_p3 = scmp.lt.s32.totalorder %s6334_s28, 1  ;;  %v397_v3 = vld [vmem:[%s11916_s1 + $0x20] sm:$0xff] }
   0xc   : > { %7405 = vmatprep.subr.mxu0 %v11924_v1  ;;  %8836 = vmatprep.subr.mxu1 %v11924_v1  ;;  %307 = vst.msk [vmem:[#allocation2] sm:$0xff] %vm306_vm0, %v11924_v1  ;;  %308 = vst.msk [vmem:[#allocation2 + $0x8] sm:$0xff] %vm306_vm0, %v11924_v1  ;;  %v396_v4 = vld [vmem:[%s11916_s1 + $0x18] sm:$0xff]  ;;  %v395_v5 = vld [vmem:[%s11916_s1 + $0x10] sm:$0xff]  ;;  %vm8875_vm1 = vmmov 0   ;;  %vm370_vm2 = vcmask 453632  }
   0xd   : > { %309 = vst.msk [vmem:[#allocation2 + $0x74] sm:$0xff] %vm306_vm0, %v11924_v1  ;;  %310 = vst.msk [vmem:[#allocation2 + $0x7c] sm:$0xff] %vm306_vm0, %v11924_v1  ;;  %7406 = vmatpush3.msra.mxu0 %v399_v0  ;;  %8843 = vmatpush3.msra.mxu1 %v399_v0  ;;  %s11969_s28 = smov (!%p296_p3, %s6334_s28), 1  ;;  %v394_v6 = vld [vmem:[%s11916_s1 + $0x8] sm:$0xff]  ;;  %v393_v9 = vld [vmem:[%s11916_s1] sm:$0xff]  ;;  %s8876_s23 = smov 112  }
   0xe   : > { %311 = vst.msk [vmem:[#allocation3] sm:$0xff] %vm306_vm0, %v11924_v1  ;;  %312 = vst.msk [vmem:[#allocation3 + $0x8] sm:$0xff] %vm306_vm0, %v11924_v1  ;;  %7407 = vmatprep.subr.mxu0 %v11924_v1  ;;  %8837 = vmatprep.subr.mxu1 %v11924_v1  ;;  %s8850_s15 = smul.u32 104, %s11969_s28  ;;  %v6381_v21 = vld [vmem:[%s11916_s1 + $0xa0] sm:$0xff]  ;;  %v6361_v23 = vld [vmem:[%s11916_s1 + $0x68] sm:$0xff]  ;;  %s8877_s24 = smov 120  }
   0xf   : > { %313 = vst.msk [vmem:[#allocation3 + $0x74] sm:$0xff] %vm306_vm0, %v11924_v1  ;;  %314 = vst.msk [vmem:[#allocation3 + $0x7c] sm:$0xff] %vm306_vm0, %v11924_v1  ;;  %7408 = vmatpush3.msra.mxu0 %v398_v2  ;;  %8844 = vmatpush3.msra.mxu1 %v398_v2  ;;  %v6380_v26 = vld [vmem:[%s11916_s1 + $0x98] sm:$0xff]  ;;  %v6360_v27 = vld [vmem:[%s11916_s1 + $0x60] sm:$0xff]  ;;  %s8878_s25 = smov 96   ;;  %s8879_s26 = smov 104  }
  0x10   : > { %315 = vst.msk [vmem:[#allocation4] sm:$0xff] %vm306_vm0, %v11924_v1  ;;  %316 = vst.msk [vmem:[#allocation4 + $0x8] sm:$0xff] %vm306_vm0, %v11924_v1  ;;  %7409 = vmatprep.subr.mxu0 %v11924_v1  ;;  %8838 = vmatprep.subr.mxu1 %v11924_v1  ;;  %s8989_s20 = scalar_lea.vmem %s11915_s0, %s8850_s15  ;;  %v6379_v30 = vld [vmem:[%s11916_s1 + $0x90] sm:$0xff]  ;;  %v6359_v31 = vld [vmem:[%s11916_s1 + $0x58] sm:$0xff]  ;;  %s8880_s29 = smov 88  }
  0x11   : > { %317 = vst.msk [vmem:[#allocation4 + $0x74] sm:$0xff] %vm306_vm0, %v11924_v1  ;;  %318 = vst.msk [vmem:[#allocation4 + $0x7c] sm:$0xff] %vm306_vm0, %v11924_v1  ;;  %7410 = vmatpush3.msra.mxu0 %v397_v3  ;;  %8845 = vmatpush3.msra.mxu1 %v397_v3  ;;  %v8995_v7 = vld [vmem:[%s8989_s20 + $0x28] sm:$0xff]  ;;  %v8998_v8 = vld [vmem:[%s8989_s20 + $0x30] sm:$0xff]  ;;  %s11867_s10 = scalar_lea.vmem %s11923_s8, %s8850_s15 }
  0x12   : > { %7411 = vmatprep.subr.mxu0 %v11924_v1  ;;  %8839 = vmatprep.subr.mxu1 %v11924_v1  ;;  %363 = vst.msk [vmem:[#allocation2 + $0x38] sm:$0xff] %vm306_vm0, %v8995_v7  ;;  %364 = vst.msk [vmem:[#allocation2 + $0x40] sm:$0xff] %vm306_vm0, %v8998_v8  ;;  %v9010_v10 = vld [vmem:[%s8989_s20] sm:$0xff]  ;;  %v9013_v11 = vld [vmem:[%s8989_s20 + $0x38] sm:$0xff] }
  0x13   : > { %7412 = vmatpush3.msra.mxu0 %v396_v4  ;;  %8846 = vmatpush3.msra.mxu1 %v396_v4  ;;  %v9016_v12 = vld [vmem:[%s8989_s20 + $0x8] sm:$0xff]  ;;  %358 = vst.msk [vmem:[#allocation2 + $0x10] sm:$0xff] %vm306_vm0, %v9010_v10  ;;  %365 = vst.msk [vmem:[#allocation2 + $0x48] sm:$0xff] %vm306_vm0, %v9013_v11  ;;  %v9025_v13 = vld [vmem:[%s8989_s20 + $0x40] sm:$0xff] }
  0x14   : > { %7413 = vmatprep.subr.mxu0 %v11924_v1  ;;  %8840 = vmatprep.subr.mxu1 %v11924_v1  ;;  %359 = vst.msk [vmem:[#allocation2 + $0x18] sm:$0xff] %vm306_vm0, %v9016_v12  ;;  %v9028_v14 = vld [vmem:[%s8989_s20 + $0x10] sm:$0xff]  ;;  %v9031_v15 = vld [vmem:[%s8989_s20 + $0x48] sm:$0xff]  ;;  %366 = vst.msk [vmem:[#allocation2 + $0x50] sm:$0xff] %vm306_vm0, %v9025_v13 }
  0x15   : > { %7414 = vmatpush3.msra.mxu0 %v395_v5  ;;  %8847 = vmatpush3.msra.mxu1 %v395_v5  ;;  %11935 = vst [vmem:[#allocation5_spill] sm:$0xff] %v9031_v15  ;;  %360 = vst.msk [vmem:[#allocation2 + $0x20] sm:$0xff] %vm306_vm0, %v9028_v14  ;;  %v9042_v16 = vld [vmem:[%s8989_s20 + $0x18] sm:$0xff]  ;;  %v9045_v17 = vld [vmem:[%s8989_s20 + $0x50] sm:$0xff] }
  0x16   : > { %7415 = vmatprep.subr.mxu0 %v11924_v1  ;;  %8841 = vmatprep.subr.mxu1 %v11924_v1  ;;  %367 = vst.msk [vmem:[#allocation2 + $0x58] sm:$0xff] %vm306_vm0, %v9031_v15  ;;  %11936 = vst [vmem:[#allocation6_spill] sm:$0xff] %v9045_v17  ;;  %v9048_v18 = vld [vmem:[%s8989_s20 + $0x20] sm:$0xff]  ;;  %v9057_v20 = vld [vmem:[%s8989_s20 + $0x58] sm:$0xff] }
  0x17   : > { %7416 = vmatpush3.msra.mxu0 %v394_v6  ;;  %8848 = vmatpush3.msra.mxu1 %v394_v6  ;;  %v380_v19 = vld [vmem:[#allocation2 + $0x5] sm:$0xff]  ;;  %361 = vst.msk [vmem:[#allocation2 + $0x28] sm:$0xff] %vm306_vm0, %v9042_v16  ;;  %368 = vst.msk [vmem:[#allocation2 + $0x60] sm:$0xff] %vm306_vm0, %v9045_v17  ;;  %v6358_v35 = vld [vmem:[%s11916_s1 + $0x50] sm:$0xff] }
  0x18   : > { %362 = vst.msk [vmem:[#allocation2 + $0x30] sm:$0xff] %vm306_vm0, %v9048_v18  ;;  %11937 = vst [vmem:[#allocation7_spill] sm:$0xff] %v9057_v20  ;;  %7417 = vmatprep.subr.mxu0 %v11924_v1  ;;  %8842 = vmatprep.subr.mxu1 %v11924_v1  ;;  %v6378_v34 = vld [vmem:[%s11916_s1 + $0x88] sm:$0xff]  ;;  %v6377_v39 = vld [vmem:[%s11916_s1 + $0x80] sm:$0xff] }
  0x19   : > { %369 = vst.msk [vmem:[#allocation2 + $0x68] sm:$0xff] %vm306_vm0, %v9057_v20  ;;  %7418 = vmatpush3.msra.mxu0 %v393_v9  ;;  %7419 = vmatprep.mubr.msk.f32.mxu0 %vm8875_vm1, %v11924_v1  ;;  %v387_v22 = vld [vmem:[#allocation2 + $0x3d] sm:$0xff]  ;;  %v6357_v38 = vld [vmem:[%s11916_s1 + $0x48] sm:$0xff]  ;;  %v6375_v48 = vld [vmem:[%s11916_s1 + $0x70] sm:$0xff] }
  0x1a   : > { %8849 = vmatpush3.msra.mxu1 %v393_v9  ;;  %7420 = vmatmul.mubr.msk.f32.vlgmr.msra.gmra.mxu0 %vm306_vm0, %v380_v19  ;;  %v381_v24 = vld [vmem:[#allocation2 + $0xd] sm:$0xff]  ;;  %v388_v25 = vld [vmem:[#allocation2 + $0x45] sm:$0xff]  ;;  %v6376_v43 = vld [vmem:[%s11916_s1 + $0x78] sm:$0xff] }
  0x1b   : > { %7440 = vmatprep.mubr.msk.f32.mxu1 %vm8875_vm1, %v11924_v1  ;;  %7511 = vmatprep.subr.mxu0 %v11924_v1  ;;  %v382_v28 = vld [vmem:[#allocation2 + $0x15] sm:$0xff]  ;;  %v389_v29 = vld [vmem:[#allocation2 + $0x4d] sm:$0xff]  ;;  %v6356_v42 = vld [vmem:[%s11916_s1 + $0x40] sm:$0xff] }
  0x1c   : > { %7441 = vmatmul.mubr.msk.f32.vlgmr.msra.gmra.mxu1 %vm306_vm0, %v387_v22  ;;  %7512 = vmatpush3.msra.mxu0 %v6381_v21  ;;  %v383_v32 = vld [vmem:[#allocation2 + $0x1d] sm:$0xff]  ;;  %v582_v47 = vld [vmem:[#allocation2 + $0x6] sm:$0xff]  ;;  %v583_v51 = vld [vmem:[#allocation2 + $0xe] sm:$0xff] }
  0x1d   : > { %7458 = vmatprep.subr.mxu1 %v11924_v1  ;;  %7422 = vmatprep.mubr.msk.f32.mxu0 %vm8875_vm1, %v11924_v1  ;;  %v390_v33 = vld [vmem:[#allocation2 + $0x55] sm:$0xff]  ;;  %v9151_v46 = vld [vmem:[%s8989_s20 + $0x60] sm:$0xf]  ;;  %v785_v50 = vld [vmem:[#allocation2 + $0x7] sm:$0xff] }
  0x1e   : > { %7459 = vmatpush3.msra.mxu1 %v6361_v23  ;;  %7423 = vmatmul.mubr.msk.f32.gmra.mxu0 %vm306_vm0, %v381_v24  ;;  %v384_v36 = vld [vmem:[#allocation2 + $0x25] sm:$0xff]  ;;  %v391_v37 = vld [vmem:[#allocation2 + $0x5d] sm:$0xff]  ;;  %11938 = vst [vmem:[#allocation8_spill] sm:$0xff] %v9151_v46  ;;  %371 = vst.msk [vmem:[#allocation2 + $0x70] sm:$0xf] %vm370_vm2, %v9151_v46 }
  0x1f   : > { %7443 = vmatprep.mubr.msk.f32.mxu1 %vm8875_vm1, %v11924_v1  ;;  %7513 = vmatprep.subr.mxu0 %v11924_v1  ;;  %v385_v40 = vld [vmem:[#allocation2 + $0x2d] sm:$0xff]  ;;  %v386_v44 = vld [vmem:[#allocation2 + $0x35] sm:$0xff]  ;;  %v585_v59 = vld [vmem:[#allocation2 + $0x1e] sm:$0xff] }
  0x20   : > { %7444 = vmatmul.mubr.msk.f32.gmra.mxu1 %vm306_vm0, %v388_v25  ;;  %7514 = vmatpush3.msra.mxu0 %v6380_v26  ;;  %v392_v41 = vld [vmem:[#allocation2 + $0x65] sm:$0xf]  ;;  %v6355_v45 = vld [vmem:[%s11916_s1 + $0x38] sm:$0xff]  ;;  %v6421_v52 = vld [vmem:[%s11916_s1 + $0x110] sm:$0xff] }
  0x21   : > { %7460 = vmatprep.subr.mxu1 %v11924_v1  ;;  %7425 = vmatprep.mubr.msk.f32.mxu0 %vm8875_vm1, %v11924_v1  ;;  %v6401_v49 = vld [vmem:[%s11916_s1 + $0xd8] sm:$0xff]  ;;  %v9180_v53 = vld [vmem:[#allocation2 + $0xf] sm:$0xff]  ;;  %v6419_v60 = vld [vmem:[%s11916_s1 + $0x100] sm:$0xff] }
  0x22   : > { %7461 = vmatpush3.msra.mxu1 %v6360_v27  ;;  %7426 = vmatmul.mubr.msk.f32.gmra.mxu0 %vm306_vm0, %v382_v28  ;;  %v6400_v54 = vld [vmem:[%s11916_s1 + $0xd0] sm:$0xff]  ;;  %v6420_v56 = vld [vmem:[%s11916_s1 + $0x108] sm:$0xff]  ;;  %v9216_v61 = vld [vmem:[#allocation2 + $0x1f] sm:$0xff] }
  0x23   : > { %7446 = vmatprep.mubr.msk.f32.mxu1 %vm8875_vm1, %v11924_v1  ;;  %7515 = vmatprep.subr.mxu0 %v11924_v1  ;;  %v584_v55 = vld [vmem:[#allocation2 + $0x16] sm:$0xff]  ;;  %v6399_v58 = vld [vmem:[%s11916_s1 + $0xc8] sm:$0xff]  ;;  %v6398_v62 = vld [vmem:[%s11916_s1 + $0xc0] sm:$0xff] }
  0x24   : > { %7447 = vmatmul.mubr.msk.f32.gmra.mxu1 %vm306_vm0, %v389_v29  ;;  %7462 = vmatprep.subr.mxu1 %v11924_v1  ;;  %v9199_v57 = vld [vmem:[#allocation2 + $0x17] sm:$0xff]  ;;  %v586_v63 = vld [vmem:[#allocation2 + $0x26] sm:$0xff]  ;;  %v587_v4 = vld [vmem:[#allocation2 + $0x2e] sm:$0xff] }
  0x25   : > { %7516 = vmatpush3.msra.mxu0 %v6379_v30  ;;  %7463 = vmatpush3.msra.mxu1 %v6359_v31  ;;  %v6418_v0 = vld [vmem:[%s11916_s1 + $0xf8] sm:$0xff]  ;;  %v9233_v2 = vld [vmem:[#allocation2 + $0x27] sm:$0xff]  ;;  %v6417_v5 = vld [vmem:[%s11916_s1 + $0xf0] sm:$0xff] }
  0x26   : > { %7428 = vmatprep.mubr.msk.f32.mxu0 %vm8875_vm1, %v11924_v1  ;;  %7449 = vmatprep.mubr.msk.f32.mxu1 %vm8875_vm1, %v11924_v1  ;;  %v6397_v3 = vld [vmem:[%s11916_s1 + $0xb8] sm:$0xff]  ;;  %v9250_v6 = vld [vmem:[#allocation2 + $0x2f] sm:$0xff]  ;;  %v6415_v25 = vld [vmem:[%s11916_s1 + $0xe0] sm:$0xff] }
  0x27   : > { %7429 = vmatmul.mubr.msk.f32.gmra.mxu0 %vm306_vm0, %v383_v32  ;;  %7517 = vmatprep.subr.mxu0 %v11924_v1  ;;  %v6396_v9 = vld [vmem:[%s11916_s1 + $0xb0] sm:$0xff]  ;;  %v6416_v21 = vld [vmem:[%s11916_s1 + $0xe8] sm:$0xff]  ;;  %v589_v24 = vld [vmem:[#allocation2 + $0x3e] sm:$0xff] }
  0x28   : > { %7450 = vmatmul.mubr.msk.f32.gmra.mxu1 %vm306_vm0, %v390_v33  ;;  %7464 = vmatprep.subr.mxu1 %v11924_v1  ;;  %v588_v19 = vld [vmem:[#allocation2 + $0x36] sm:$0xff]  ;;  %v6395_v23 = vld [vmem:[%s11916_s1 + $0xa8] sm:$0xff]  ;;  %v9284_v26 = vld [vmem:[#allocation2 + $0x3f] sm:$0xff] }
  0x29   : > { %7518 = vmatpush3.msra.mxu0 %v6378_v34  ;;  %7465 = vmatpush3.msra.mxu1 %v6358_v35  ;;  %v9267_v22 = vld [vmem:[#allocation2 + $0x37] sm:$0xff]  ;;  %v590_v27 = vld [vmem:[#allocation2 + $0x46] sm:$0xff]  ;;  %v591_v29 = vld [vmem:[#allocation2 + $0x4e] sm:$0xff] }
  0x2a   : > { %7431 = vmatprep.mubr.msk.f32.mxu0 %vm8875_vm1, %v11924_v1  ;;  %7452 = vmatprep.mubr.msk.f32.mxu1 %vm8875_vm1, %v11924_v1  ;;  %v9295_v28 = vld [vmem:[#allocation2 + $0x47] sm:$0xff]  ;;  %v9304_v30 = vld [vmem:[#allocation2 + $0x4f] sm:$0xff]  ;;  %v9313_v32 = vld [vmem:[#allocation2 + $0x57] sm:$0xff] }
  0x2b   : > { %7432 = vmatmul.mubr.msk.f32.gmra.mxu0 %vm306_vm0, %v384_v36  ;;  %7466 = vmatprep.subr.mxu1 %v11924_v1  ;;  %v592_v31 = vld [vmem:[#allocation2 + $0x56] sm:$0xff]  ;;  %v593_v33 = vld [vmem:[#allocation2 + $0x5e] sm:$0xff]  ;;  %v594_v35 = vld [vmem:[#allocation2 + $0x66] sm:$0xf] }
  0x2c   : > { %7519 = vmatprep.subr.mxu0 %v11924_v1  ;;  %7453 = vmatmul.mubr.msk.f32.gmra.mxu1 %vm306_vm0, %v391_v37  ;;  %v9322_v34 = vld [vmem:[#allocation2 + $0x5f] sm:$0xff]  ;;  %v797_v36 = vld [vmem:[#allocation2 + $0x67] sm:$0xf] }
  0x2d   : > { %7467 = vmatpush3.msra.mxu1 %v6357_v38  ;;  %7520 = vmatpush3.msra.mxu0 %v6377_v39  ;;  %v6441_v37 = vld [vmem:[%s11916_s1 + $0x148] sm:$0xff]  ;;  %v1191_v38 = vld [vmem:[#allocation2 + $0x10] sm:$0xff]  ;;  %v6440_v39 = vld [vmem:[%s11916_s1 + $0x140] sm:$0xff] }
  0x2e   : > { %7434 = vmatprep.mubr.msk.f32.mxu0 %vm8875_vm1, %v11924_v1  ;;  %7455 = vmatprep.mubr.msk.f32.mxu1 %vm8875_vm1, %v11924_v1 }
  0x2f   : > { %7435 = vmatmul.mubr.msk.f32.gmra.mxu0 %vm306_vm0, %v385_v40  ;;  %7468 = vmatprep.subr.mxu1 %v11924_v1  ;;  %v6461_v40 = vld [vmem:[%s11916_s1 + $0x180] sm:$0xff] }
  0x30   : > { %7521 = vmatprep.subr.mxu0 %v11924_v1  ;;  %7456 = vmatmul.mubr.msk.f32.gmra.mxu1 %vm306_vm0, %v392_v41  ;;  %v1192_v41 = vld [vmem:[#allocation2 + $0x18] sm:$0xff] }
  0x31   : > { %7469 = vmatpush3.msra.mxu1 %v6356_v42  ;;  %7522 = vmatpush3.msra.mxu0 %v6376_v43  ;;  %v6439_v42 = vld [vmem:[%s11916_s1 + $0x138] sm:$0xff] }
  0x32   : > { %7437 = vmatprep.mubr.msk.f32.mxu0 %vm8875_vm1, %v11924_v1  ;;  %7470 = vmatprep.subr.mxu1 %v11924_v1  ;;  %v6460_v43 = vld [vmem:[%s11916_s1 + $0x178] sm:$0xff] }
  0x33   : > { %7438 = vmatmul.mubr.msk.f32.gmra.mxu0 %vm306_vm0, %v386_v44  ;;  %7471 = vmatpush3.msra.mxu1 %v6355_v45  ;;  %v1193_v44 = vld [vmem:[#allocation2 + $0x20] sm:$0xff]  ;;  %v6438_v45 = vld [vmem:[%s11916_s1 + $0x130] sm:$0xff] }
  0x34   : > { %7472 = vmatprep.mubr.msk.f32.mxu1 %vm8875_vm1, %v11924_v1  ;;  %7523 = vmatprep.subr.mxu0 %v11924_v1 }
  0x35   : > { %7473 = vmatmul.mubr.msk.f32.vlgmr.msra.gmra.mxu1 %vm306_vm0, %v582_v47  ;;  %7524 = vmatpush3.msra.mxu0 %v6375_v48  ;;  %v6459_v47 = vld [vmem:[%s11916_s1 + $0x170] sm:$0xff]  ;;  %v1194_v48 = vld [vmem:[#allocation2 + $0x28] sm:$0xff] }
  0x36   : > { %7564 = vmatprep.subr.mxu1 %v11924_v1  ;;  %7525 = vmatprep.mubr.msk.f32.mxu0 %vm8875_vm1, %v11924_v1 }
  0x37   : > { %7565 = vmatpush3.msra.mxu1 %v6401_v49  ;;  %7475 = vmatprep.mubr.msk.f32.mxu1 %vm8875_vm1, %v11924_v1  ;;  %v6437_v49 = vld [vmem:[%s11916_s1 + $0x128] sm:$0xff] }
  0x38   : > { %7526 = vmatmul.mubr.msk.f32.vlgmr.msra.gmra.mxu0 %vm306_vm0, %v785_v50  ;;  %7617 = vmatprep.subr.mxu0 %v11924_v1  ;;  %v6458_v50 = vld [vmem:[%s11916_s1 + $0x168] sm:$0xff] }
  0x39   : > { %7476 = vmatmul.mubr.msk.f32.gmra.mxu1 %vm306_vm0, %v583_v51  ;;  %7618 = vmatpush3.msra.mxu0 %v6421_v52  ;;  %v1195_v51 = vld [vmem:[#allocation2 + $0x30] sm:$0xff]  ;;  %v6436_v52 = vld [vmem:[%s11916_s1 + $0x120] sm:$0xff] }
  0x3a   : > { %7528 = vmatprep.mubr.msk.f32.mxu0 %vm8875_vm1, %v11924_v1  ;;  %7478 = vmatprep.mubr.msk.f32.mxu1 %vm8875_vm1, %v11924_v1 }
  0x3b   : > { %7566 = vmatprep.subr.mxu1 %v11924_v1  ;;  %7619 = vmatprep.subr.mxu0 %v11924_v1 }
  0x3c   : > { %7529 = vmatmul.mubr.msk.f32.gmra.mxu0 %vm306_vm0, %v9180_v53  ;;  %7567 = vmatpush3.msra.mxu1 %v6400_v54  ;;  %v1196_v54 = vld [vmem:[#allocation2 + $0x38] sm:$0xff] }
  0x3d   : > { %7479 = vmatmul.mubr.msk.f32.gmra.mxu1 %vm306_vm0, %v584_v55  ;;  %7531 = vmatprep.mubr.msk.f32.mxu0 %vm8875_vm1, %v11924_v1  ;;  %v6435_v55 = vld [vmem:[%s11916_s1 + $0x118] sm:$0xff] }
  0x3e   : > { %7481 = vmatprep.mubr.msk.f32.mxu1 %vm8875_vm1, %v11924_v1  ;;  %7620 = vmatpush3.msra.mxu0 %v6420_v56  ;;  %v6456_v56 = vld [vmem:[%s11916_s1 + $0x158] sm:$0xff] }
  0x3f   : > { %7568 = vmatprep.subr.mxu1 %v11924_v1  ;;  %7621 = vmatprep.subr.mxu0 %v11924_v1 }
  0x40   : > { %7532 = vmatmul.mubr.msk.f32.gmra.mxu0 %vm306_vm0, %v9199_v57  ;;  %7569 = vmatpush3.msra.mxu1 %v6399_v58  ;;  %v6455_v58 = vld [vmem:[%s11916_s1 + $0x150] sm:$0xff] }
  0x41   : > { %7482 = vmatmul.mubr.msk.f32.gmra.mxu1 %vm306_vm0, %v585_v59  ;;  %7534 = vmatprep.mubr.msk.f32.mxu0 %vm8875_vm1, %v11924_v1  ;;  %v1198_v59 = vld [vmem:[#allocation2 + $0x48] sm:$0xff] }
  0x42   : > { %7484 = vmatprep.mubr.msk.f32.mxu1 %vm8875_vm1, %v11924_v1  ;;  %7622 = vmatpush3.msra.mxu0 %v6419_v60  ;;  %v1199_v60 = vld [vmem:[#allocation2 + $0x50] sm:$0xff] }
  0x43   : > { %7570 = vmatprep.subr.mxu1 %v11924_v1  ;;  %7623 = vmatprep.subr.mxu0 %v11924_v1 }
  0x44   : > { %7535 = vmatmul.mubr.msk.f32.gmra.mxu0 %vm306_vm0, %v9216_v61  ;;  %7571 = vmatpush3.msra.mxu1 %v6398_v62  ;;  %v1201_v62 = vld [vmem:[#allocation2 + $0x60] sm:$0xff] }
  0x45   : > { %7485 = vmatmul.mubr.msk.f32.gmra.mxu1 %vm306_vm0, %v586_v63  ;;  %7537 = vmatprep.mubr.msk.f32.mxu0 %vm8875_vm1, %v11924_v1  ;;  %v999_v63 = vld [vmem:[#allocation2 + $0x67] sm:$0xff] }
  0x46   : > { %7487 = vmatprep.mubr.msk.f32.mxu1 %vm8875_vm1, %v11924_v1  ;;  %7624 = vmatpush3.msra.mxu0 %v6418_v0  ;;  %v1202_v0 = vld [vmem:[#allocation2 + $0x68] sm:$0xff] }
  0x47   : > { %7572 = vmatprep.subr.mxu1 %v11924_v1  ;;  %7625 = vmatprep.subr.mxu0 %v11924_v1 }
  0x48   : > { %7538 = vmatmul.mubr.msk.f32.gmra.mxu0 %vm306_vm0, %v9233_v2  ;;  %7573 = vmatpush3.msra.mxu1 %v6397_v3  ;;  %v1203_v3 = vld [vmem:[#allocation2 + $0x70] sm:$0xf] }
  0x49   : > { %7488 = vmatmul.mubr.msk.f32.gmra.mxu1 %vm306_vm0, %v587_v4  ;;  %7540 = vmatprep.mubr.msk.f32.mxu0 %vm8875_vm1, %v11924_v1  ;;  %v1394_v4 = vld [vmem:[#allocation2 + $0x11] sm:$0xff] }
  0x4a   : > { %7490 = vmatprep.mubr.msk.f32.mxu1 %vm8875_vm1, %v11924_v1  ;;  %7626 = vmatpush3.msra.mxu0 %v6417_v5  ;;  %v6481_v5 = vld [vmem:[%s11916_s1 + $0x1b8] sm:$0xff] }
  0x4b   : > { %7574 = vmatprep.subr.mxu1 %v11924_v1  ;;  %7627 = vmatprep.subr.mxu0 %v11924_v1 }
  0x4c   : > { %7541 = vmatmul.mubr.msk.f32.gmra.mxu0 %vm306_vm0, %v9250_v6  ;;  %7575 = vmatpush3.msra.mxu1 %v6396_v9  ;;  %v6480_v9 = vld [vmem:[%s11916_s1 + $0x1b0] sm:$0xff] }
  0x4d   : > { %7491 = vmatmul.mubr.msk.f32.gmra.mxu1 %vm306_vm0, %v588_v19  ;;  %7543 = vmatprep.mubr.msk.f32.mxu0 %vm8875_vm1, %v11924_v1  ;;  %v6501_v19 = vld [vmem:[%s11916_s1 + $0x1f0] sm:$0xff] }
  0x4e   : > { %7493 = vmatprep.mubr.msk.f32.mxu1 %vm8875_vm1, %v11924_v1  ;;  %7628 = vmatpush3.msra.mxu0 %v6416_v21  ;;  %v1598_v21 = vld [vmem:[#allocation2 + $0x21] sm:$0xff] }
  0x4f   : > { %7576 = vmatprep.subr.mxu1 %v11924_v1  ;;  %7629 = vmatprep.subr.mxu0 %v11924_v1 }
  0x50   : > { %7544 = vmatmul.mubr.msk.f32.gmra.mxu0 %vm306_vm0, %v9267_v22  ;;  %7577 = vmatpush3.msra.mxu1 %v6395_v23  ;;  %v6500_v23 = vld [vmem:[%s11916_s1 + $0x1e8] sm:$0xff] }
  0x51   : > { %7494 = vmatmul.mubr.msk.f32.gmra.mxu1 %vm306_vm0, %v589_v24  ;;  %7546 = vmatprep.mubr.msk.f32.mxu0 %vm8875_vm1, %v11924_v1  ;;  %v1599_v24 = vld [vmem:[#allocation2 + $0x29] sm:$0xff] }
  0x52   : > { %7496 = vmatprep.mubr.msk.f32.mxu1 %vm8875_vm1, %v11924_v1  ;;  %7630 = vmatpush3.msra.mxu0 %v6415_v25  ;;  %v6478_v25 = vld [vmem:[%s11916_s1 + $0x1a0] sm:$0xff] }
  0x53   : > { %7670 = vmatprep.subr.mxu1 %v11924_v1  ;;  %7723 = vmatprep.subr.mxu0 %v11924_v1 }
  0x54   : > { %7547 = vmatmul.mubr.msk.f32.gmra.mxu0 %vm306_vm0, %v9284_v26 }
  0x55   : > { %7497 = vmatmul.mubr.msk.f32.gmra.mxu1 %vm306_vm0, %v590_v27  ;;  %7549 = vmatprep.mubr.msk.f32.mxu0 %vm8875_vm1, %v11924_v1  ;;  %v1600_v27 = vld [vmem:[#allocation2 + $0x31] sm:$0xff] }
  0x56   : > { %7499 = vmatprep.mubr.msk.f32.mxu1 %vm8875_vm1, %v11924_v1 }
  0x58   : > { %7550 = vmatmul.mubr.msk.f32.gmra.mxu0 %vm306_vm0, %v9295_v28 }
  0x59   : > { %7500 = vmatmul.mubr.msk.f32.gmra.mxu1 %vm306_vm0, %v591_v29  ;;  %7552 = vmatprep.mubr.msk.f32.mxu0 %vm8875_vm1, %v11924_v1  ;;  %v6498_v29 = vld [vmem:[%s11916_s1 + $0x1d8] sm:$0xff] }
  0x5a   : > { %7502 = vmatprep.mubr.msk.f32.mxu1 %vm8875_vm1, %v11924_v1 }
  0x5c   : > { %7553 = vmatmul.mubr.msk.f32.gmra.mxu0 %vm306_vm0, %v9304_v30 }
  0x5d   : > { %7503 = vmatmul.mubr.msk.f32.gmra.mxu1 %vm306_vm0, %v592_v31  ;;  %7555 = vmatprep.mubr.msk.f32.mxu0 %vm8875_vm1, %v11924_v1  ;;  %v6476_v31 = vld [vmem:[%s11916_s1 + $0x190] sm:$0xff] }
  0x5e   : > { %7505 = vmatprep.mubr.msk.f32.mxu1 %vm8875_vm1, %v11924_v1 }
  0x60   : > { %7556 = vmatmul.mubr.msk.f32.gmra.mxu0 %vm306_vm0, %v9313_v32 }
  0x61   : > { %7506 = vmatmul.mubr.msk.f32.gmra.mxu1 %vm306_vm0, %v593_v33  ;;  %7558 = vmatprep.mubr.msk.f32.mxu0 %vm8875_vm1, %v11924_v1  ;;  %v1602_v33 = vld [vmem:[#allocation2 + $0x41] sm:$0xff] }
  0x62   : > { %7508 = vmatprep.mubr.msk.f32.mxu1 %vm8875_vm1, %v11924_v1 }
  0x64   : > { %7559 = vmatmul.mubr.msk.f32.gmra.mxu0 %vm306_vm0, %v9322_v34 }
  0x65   : > { %7509 = vmatmul.mubr.msk.f32.gmra.mxu1 %vm306_vm0, %v594_v35  ;;  %7561 = vmatprep.mubr.msk.f32.mxu0 %vm8875_vm1, %v11924_v1  ;;  %v6496_v35 = vld [vmem:[%s11916_s1 + $0x1c8] sm:$0xff] }
  0x66   : > { %7578 = vmatprep.mubr.msk.f32.mxu1 %vm8875_vm1, %v11924_v1 }
  0x68   : > { %7562 = vmatmul.mubr.msk.f32.gmra.mxu0 %vm306_vm0, %v797_v36  ;;  %v1603_v36 = vld [vmem:[#allocation2 + $0x49] sm:$0xff] }
  0x69   : > { %7579 = vmatmul.mubr.msk.f32.vlgmr.msra.gmra.mxu1 %vm306_vm0, %v9180_v53  ;;  %7631 = vmatprep.mubr.msk.f32.mxu0 %vm8875_vm1, %v11924_v1  ;;  %v6457_v53 = vld [vmem:[%s11916_s1 + $0x160] sm:$0xff] }
  0x6a   : > { %7671 = vmatpush3.msra.mxu1 %v6441_v37  ;;  %7581 = vmatprep.mubr.msk.f32.mxu1 %vm8875_vm1, %v11924_v1  ;;  %v6495_v37 = vld [vmem:[%s11916_s1 + $0x1c0] sm:$0xff] }
  0x6b   : > { %7672 = vmatprep.subr.mxu1 %v11924_v1 }
  0x6c   : > { %7632 = vmatmul.mubr.msk.f32.vlgmr.msra.gmra.mxu0 %vm306_vm0, %v1191_v38  ;;  %7673 = vmatpush3.msra.mxu1 %v6440_v39  ;;  %v1604_v38 = vld [vmem:[#allocation2 + $0x51] sm:$0xff]  ;;  %v1605_v39 = vld [vmem:[#allocation2 + $0x59] sm:$0xff] }
  0x6d   : > { %7582 = vmatmul.mubr.msk.f32.gmra.mxu1 %vm306_vm0, %v9199_v57  ;;  %7724 = vmatpush3.msra.mxu0 %v6461_v40  ;;  %v1197_v57 = vld [vmem:[#allocation2 + $0x40] sm:$0xff] }
  0x6e   : > { %7634 = vmatprep.mubr.msk.f32.mxu0 %vm8875_vm1, %v11924_v1  ;;  %7584 = vmatprep.mubr.msk.f32.mxu1 %vm8875_vm1, %v11924_v1  ;;  %v1606_v40 = vld [vmem:[#allocation2 + $0x61] sm:$0xff] }
  0x6f   : > { %7725 = vmatprep.subr.mxu0 %v11924_v1  ;;  %7674 = vmatprep.subr.mxu1 %v11924_v1 }
  0x70   : > { %7635 = vmatmul.mubr.msk.f32.gmra.mxu0 %vm306_vm0, %v1192_v41  ;;  %7675 = vmatpush3.msra.mxu1 %v6439_v42  ;;  %v1607_v41 = vld [vmem:[#allocation2 + $0x69] sm:$0xff]  ;;  %v1608_v42 = vld [vmem:[#allocation2 + $0x71] sm:$0xff] }
  0x71   : > { %7585 = vmatmul.mubr.msk.f32.gmra.mxu1 %vm306_vm0, %v9216_v61  ;;  %7637 = vmatprep.mubr.msk.f32.mxu0 %vm8875_vm1, %v11924_v1  ;;  %v1200_v61 = vld [vmem:[#allocation2 + $0x58] sm:$0xff] }
  0x72   : > { %7587 = vmatprep.mubr.msk.f32.mxu1 %vm8875_vm1, %v11924_v1  ;;  %7726 = vmatpush3.msra.mxu0 %v6460_v43  ;;  %v1406_v43 = vld [vmem:[#allocation2 + $0x71] sm:$0xf] }
  0x73   : > { %7727 = vmatprep.subr.mxu0 %v11924_v1  ;;  %7676 = vmatprep.subr.mxu1 %v11924_v1 }
  0x74   : > { %7638 = vmatmul.mubr.msk.f32.gmra.mxu0 %vm306_vm0, %v1193_v44  ;;  %7677 = vmatpush3.msra.mxu1 %v6438_v45  ;;  %v1609_v44 = vld [vmem:[#allocation2 + $0x79] sm:$0xf] }
  0x75   : > { %7588 = vmatmul.mubr.msk.f32.gmra.mxu1 %vm306_vm0, %v9233_v2  ;;  %7640 = vmatprep.mubr.msk.f32.mxu0 %vm8875_vm1, %v11924_v1  ;;  %v1000_v2 = vld [vmem:[#allocation2 + $0x6f] sm:$0xf]  ;;  %v1800_v45 = vld [vmem:[#allocation2 + $0x1a] sm:$0xff] }
  0x76   : > { %7590 = vmatprep.mubr.msk.f32.mxu1 %vm8875_vm1, %v11924_v1  ;;  %7728 = vmatpush3.msra.mxu0 %v6459_v47  ;;  %v2003_v47 = vld [vmem:[#allocation2 + $0x1b] sm:$0xff] }
  0x77   : > { %7729 = vmatprep.subr.mxu0 %v11924_v1  ;;  %7678 = vmatprep.subr.mxu1 %v11924_v1 }
  0x78   : > { %7641 = vmatmul.mubr.msk.f32.gmra.mxu0 %vm306_vm0, %v1194_v48  ;;  %7679 = vmatpush3.msra.mxu1 %v6437_v49  ;;  %v1801_v48 = vld [vmem:[#allocation2 + $0x22] sm:$0xff] }
  0x79   : > { %7591 = vmatmul.mubr.msk.f32.gmra.mxu1 %vm306_vm0, %v9250_v6  ;;  %7643 = vmatprep.mubr.msk.f32.mxu0 %vm8875_vm1, %v11924_v1  ;;  %v1597_v6 = vld [vmem:[#allocation2 + $0x19] sm:$0xff]  ;;  %v2004_v49 = vld [vmem:[#allocation2 + $0x23] sm:$0xff] }
  0x7a   : > { %7593 = vmatprep.mubr.msk.f32.mxu1 %vm8875_vm1, %v11924_v1  ;;  %7730 = vmatpush3.msra.mxu0 %v6458_v50  ;;  %v1802_v50 = vld [vmem:[#allocation2 + $0x2a] sm:$0xff] }
  0x7b   : > { %7731 = vmatprep.subr.mxu0 %v11924_v1  ;;  %7680 = vmatprep.subr.mxu1 %v11924_v1 }
  0x7c   : > { %7644 = vmatmul.mubr.msk.f32.gmra.mxu0 %vm306_vm0, %v1195_v51  ;;  %7681 = vmatpush3.msra.mxu1 %v6436_v52  ;;  %v2005_v51 = vld [vmem:[#allocation2 + $0x2b] sm:$0xff] }
  0x7d   : > { %7594 = vmatmul.mubr.msk.f32.gmra.mxu1 %vm306_vm0, %v9267_v22  ;;  %7646 = vmatprep.mubr.msk.f32.mxu0 %vm8875_vm1, %v11924_v1  ;;  %v6479_v22 = vld [vmem:[%s11916_s1 + $0x1a8] sm:$0xff] }
  0x7e   : > { %7596 = vmatprep.mubr.msk.f32.mxu1 %vm8875_vm1, %v11924_v1  ;;  %7732 = vmatpush3.msra.mxu0 %v6457_v53  ;;  %v1803_v53 = vld [vmem:[#allocation2 + $0x32] sm:$0xff] }
  0x7f   : > { %7733 = vmatprep.subr.mxu0 %v11924_v1  ;;  %7682 = vmatprep.subr.mxu1 %v11924_v1 }
  0x80   : > { %7647 = vmatmul.mubr.msk.f32.gmra.mxu0 %vm306_vm0, %v1196_v54  ;;  %7683 = vmatpush3.msra.mxu1 %v6435_v55 }
  0x81   : > { %7597 = vmatmul.mubr.msk.f32.gmra.mxu1 %vm306_vm0, %v9284_v26  ;;  %7649 = vmatprep.mubr.msk.f32.mxu0 %vm8875_vm1, %v11924_v1  ;;  %v6499_v26 = vld [vmem:[%s11916_s1 + $0x1e0] sm:$0xff] }
  0x82   : > { %7599 = vmatprep.mubr.msk.f32.mxu1 %vm8875_vm1, %v11924_v1  ;;  %7734 = vmatpush3.msra.mxu0 %v6456_v56  ;;  %v2006_v56 = vld [vmem:[#allocation2 + $0x33] sm:$0xff] }
  0x83   : > { %7735 = vmatprep.subr.mxu0 %v11924_v1  ;;  %7776 = vmatprep.subr.mxu1 %v11924_v1 }
  0x84   : > { %7650 = vmatmul.mubr.msk.f32.gmra.mxu0 %vm306_vm0, %v1197_v57 }
  0x85   : > { %7600 = vmatmul.mubr.msk.f32.gmra.mxu1 %vm306_vm0, %v9295_v28  ;;  %7652 = vmatprep.mubr.msk.f32.mxu0 %vm8875_vm1, %v11924_v1  ;;  %v6477_v28 = vld [vmem:[%s11916_s1 + $0x198] sm:$0xff] }
  0x86   : > { %7602 = vmatprep.mubr.msk.f32.mxu1 %vm8875_vm1, %v11924_v1  ;;  %7736 = vmatpush3.msra.mxu0 %v6455_v58 }
  0x87   : > { %7829 = vmatprep.subr.mxu0 %v11924_v1 }
  0x88   : > { %7653 = vmatmul.mubr.msk.f32.gmra.mxu0 %vm306_vm0, %v1198_v59  ;;  %v1804_v59 = vld [vmem:[#allocation2 + $0x3a] sm:$0xff] }
  0x89   : > { %7603 = vmatmul.mubr.msk.f32.gmra.mxu1 %vm306_vm0, %v9304_v30  ;;  %7655 = vmatprep.mubr.msk.f32.mxu0 %vm8875_vm1, %v11924_v1  ;;  %v1601_v30 = vld [vmem:[#allocation2 + $0x39] sm:$0xff] }
  0x8a   : > { %7605 = vmatprep.mubr.msk.f32.mxu1 %vm8875_vm1, %v11924_v1 }
  0x8c   : > { %7656 = vmatmul.mubr.msk.f32.gmra.mxu0 %vm306_vm0, %v1199_v60 }
  0x8d   : > { %7606 = vmatmul.mubr.msk.f32.gmra.mxu1 %vm306_vm0, %v9313_v32  ;;  %7658 = vmatprep.mubr.msk.f32.mxu0 %vm8875_vm1, %v11924_v1  ;;  %v6497_v32 = vld [vmem:[%s11916_s1 + $0x1d0] sm:$0xff] }
  0x8e   : > { %7608 = vmatprep.mubr.msk.f32.mxu1 %vm8875_vm1, %v11924_v1 }
  0x90   : > { %7659 = vmatmul.mubr.msk.f32.gmra.mxu0 %vm306_vm0, %v1200_v61 }
  0x91   : > { %7609 = vmatmul.mubr.msk.f32.gmra.mxu1 %vm306_vm0, %v9322_v34  ;;  %7661 = vmatprep.mubr.msk.f32.mxu0 %vm8875_vm1, %v11924_v1  ;;  %v6475_v34 = vld [vmem:[%s11916_s1 + $0x188] sm:$0xff] }
  0x92   : > { %7611 = vmatprep.mubr.msk.f32.mxu1 %vm8875_vm1, %v11924_v1 }
  0x94   : > { %7662 = vmatmul.mubr.msk.f32.gmra.mxu0 %vm306_vm0, %v1201_v62  ;;  %v2007_v62 = vld [vmem:[#allocation2 + $0x3b] sm:$0xff] }
  0x95   : > { %7612 = vmatmul.mubr.msk.f32.gmra.mxu1 %vm306_vm0, %v999_v63  ;;  %7664 = vmatprep.mubr.msk.f32.mxu0 %vm8875_vm1, %v11924_v1 }
  0x96   : > { %7614 = vmatprep.mubr.msk.f32.mxu1 %vm8875_vm1, %v11924_v1 }
  0x98   : > { %7665 = vmatmul.mubr.msk.f32.gmra.mxu0 %vm306_vm0, %v1202_v0 }
  0x99   : > { %7615 = vmatmul.mubr.msk.f32.gmra.mxu1 %vm306_vm0, %v1000_v2  ;;  %7667 = vmatprep.mubr.msk.f32.mxu0 %vm8875_vm1, %v11924_v1  ;;  %v1805_v2 = vld [vmem:[#allocation2 + $0x42] sm:$0xff] }
  0x9a   : > { %7684 = vmatprep.mubr.msk.f32.mxu1 %vm8875_vm1, %v11924_v1 }
  0x9c   : > { %7668 = vmatmul.mubr.msk.f32.gmra.mxu0 %vm306_vm0, %v1203_v3 }
  0x9d   : > { %7685 = vmatmul.mubr.msk.f32.vlgmr.msra.gmra.mxu1 %vm306_vm0, %v1394_v4  ;;  %7737 = vmatprep.mubr.msk.f32.mxu0 %vm8875_vm1, %v11924_v1 }
  0x9e   : > { %7777 = vmatpush3.msra.mxu1 %v6481_v5  ;;  %7687 = vmatprep.mubr.msk.f32.mxu1 %vm8875_vm1, %v11924_v1  ;;  %v2008_v5 = vld [vmem:[#allocation2 + $0x43] sm:$0xff] }
  0x9f   : > { %7778 = vmatprep.subr.mxu1 %v11924_v1 }
  0xa0   : > { %7738 = vmatmul.mubr.msk.f32.vlgmr.msra.gmra.mxu0 %vm306_vm0, %v1597_v6  ;;  %7779 = vmatpush3.msra.mxu1 %v6480_v9  ;;  %v1806_v9 = vld [vmem:[#allocation2 + $0x4a] sm:$0xff] }
  0xa1   : > { %7688 = vmatmul.mubr.msk.f32.gmra.mxu1 %vm306_vm0, %v1597_v6  ;;  %7830 = vmatpush3.msra.mxu0 %v6501_v19 }
  0xa2   : > { %7740 = vmatprep.mubr.msk.f32.mxu0 %vm8875_vm1, %v11924_v1  ;;  %7690 = vmatprep.mubr.msk.f32.mxu1 %vm8875_vm1, %v11924_v1 }
  0xa3   : > { %7831 = vmatprep.subr.mxu0 %v11924_v1  ;;  %7780 = vmatprep.subr.mxu1 %v11924_v1 }
  0xa4   : > { %7741 = vmatmul.mubr.msk.f32.gmra.mxu0 %vm306_vm0, %v1598_v21  ;;  %7781 = vmatpush3.msra.mxu1 %v6479_v22 }
  0xa5   : > { %7691 = vmatmul.mubr.msk.f32.gmra.mxu1 %vm306_vm0, %v1598_v21  ;;  %7743 = vmatprep.mubr.msk.f32.mxu0 %vm8875_vm1, %v11924_v1 }
  0xa6   : > { %7693 = vmatprep.mubr.msk.f32.mxu1 %vm8875_vm1, %v11924_v1  ;;  %7832 = vmatpush3.msra.mxu0 %v6500_v23  ;;  %v2009_v23 = vld [vmem:[#allocation2 + $0x4b] sm:$0xff] }
  0xa7   : > { %7833 = vmatprep.subr.mxu0 %v11924_v1  ;;  %7782 = vmatprep.subr.mxu1 %v11924_v1 }
  0xa8   : > { %7744 = vmatmul.mubr.msk.f32.gmra.mxu0 %vm306_vm0, %v1599_v24  ;;  %7783 = vmatpush3.msra.mxu1 %v6478_v25  ;;  %v1807_v25 = vld [vmem:[#allocation2 + $0x52] sm:$0xff] }
  0xa9   : > { %7694 = vmatmul.mubr.msk.f32.gmra.mxu1 %vm306_vm0, %v1599_v24  ;;  %7746 = vmatprep.mubr.msk.f32.mxu0 %vm8875_vm1, %v11924_v1 }
  0xaa   : > { %7696 = vmatprep.mubr.msk.f32.mxu1 %vm8875_vm1, %v11924_v1  ;;  %7834 = vmatpush3.msra.mxu0 %v6499_v26 }
  0xab   : > { %7835 = vmatprep.subr.mxu0 %v11924_v1  ;;  %7784 = vmatprep.subr.mxu1 %v11924_v1 }
  0xac   : > { %7747 = vmatmul.mubr.msk.f32.gmra.mxu0 %vm306_vm0, %v1600_v27  ;;  %7785 = vmatpush3.msra.mxu1 %v6477_v28 }
  0xad   : > { %7697 = vmatmul.mubr.msk.f32.gmra.mxu1 %vm306_vm0, %v1600_v27  ;;  %7749 = vmatprep.mubr.msk.f32.mxu0 %vm8875_vm1, %v11924_v1  ;;  %v2272_v27 = vld [vmem:[%s11918_s3 + $0x30] sm:$0xff] }
  0xae   : > { %7699 = vmatprep.mubr.msk.f32.mxu1 %vm8875_vm1, %v11924_v1  ;;  %7836 = vmatpush3.msra.mxu0 %v6498_v29 }
  0xaf   : > { %7837 = vmatprep.subr.mxu0 %v11924_v1  ;;  %7786 = vmatprep.subr.mxu1 %v11924_v1 }
  0xb0   : > { %7750 = vmatmul.mubr.msk.f32.gmra.mxu0 %vm306_vm0, %v1601_v30  ;;  %7787 = vmatpush3.msra.mxu1 %v6476_v31 }
  0xb1   : > { %7700 = vmatmul.mubr.msk.f32.gmra.mxu1 %vm306_vm0, %v1601_v30  ;;  %7752 = vmatprep.mubr.msk.f32.mxu0 %vm8875_vm1, %v11924_v1  ;;  %v2010_v30 = vld [vmem:[#allocation2 + $0x53] sm:$0xff] }
  0xb2   : > { %7702 = vmatprep.mubr.msk.f32.mxu1 %vm8875_vm1, %v11924_v1  ;;  %7838 = vmatpush3.msra.mxu0 %v6497_v32  ;;  %v1808_v32 = vld [vmem:[#allocation2 + $0x5a] sm:$0xff] }
  0xb3   : > { %7839 = vmatprep.subr.mxu0 %v11924_v1  ;;  %7788 = vmatprep.subr.mxu1 %v11924_v1 }
  0xb4   : > { %7753 = vmatmul.mubr.msk.f32.gmra.mxu0 %vm306_vm0, %v1602_v33  ;;  %7789 = vmatpush3.msra.mxu1 %v6475_v34 }
  0xb5   : > { %7703 = vmatmul.mubr.msk.f32.gmra.mxu1 %vm306_vm0, %v1602_v33  ;;  %7755 = vmatprep.mubr.msk.f32.mxu0 %vm8875_vm1, %v11924_v1 }
  0xb6   : > { %7705 = vmatprep.mubr.msk.f32.mxu1 %vm8875_vm1, %v11924_v1  ;;  %7840 = vmatpush3.msra.mxu0 %v6496_v35  ;;  %v9692_v35 = vld [vmem:[%s11917_s2] ss:$0 sm:$0xff] }
  0xb7   : > { %7841 = vmatprep.subr.mxu0 %v11924_v1  ;;  %7882 = vmatprep.subr.mxu1 %v11924_v1 }
  0xb8   : > { %7756 = vmatmul.mubr.msk.f32.gmra.mxu0 %vm306_vm0, %v1603_v36 }
  0xb9   : > { %7706 = vmatmul.mubr.msk.f32.gmra.mxu1 %vm306_vm0, %v1603_v36  ;;  %7758 = vmatprep.mubr.msk.f32.mxu0 %vm8875_vm1, %v11924_v1 }
  0xba   : > { %7708 = vmatprep.mubr.msk.f32.mxu1 %vm8875_vm1, %v11924_v1  ;;  %7842 = vmatpush3.msra.mxu0 %v6495_v37  ;;  %v2011_v37 = vld [vmem:[#allocation2 + $0x5b] sm:$0xff] }
  0xbb   : > { %7935 = vmatprep.subr.mxu0 %v11924_v1 }
  0xbc   : > { %7759 = vmatmul.mubr.msk.f32.gmra.mxu0 %vm306_vm0, %v1604_v38 }
  0xbd   : > { %7709 = vmatmul.mubr.msk.f32.gmra.mxu1 %vm306_vm0, %v1604_v38  ;;  %7761 = vmatprep.mubr.msk.f32.mxu0 %vm8875_vm1, %v11924_v1 }
  0xbe   : > { %7711 = vmatprep.mubr.msk.f32.mxu1 %vm8875_vm1, %v11924_v1 }
  0xc0   : > { %7762 = vmatmul.mubr.msk.f32.gmra.mxu0 %vm306_vm0, %v1605_v39 }
  0xc1   : > { %7712 = vmatmul.mubr.msk.f32.gmra.mxu1 %vm306_vm0, %v1605_v39  ;;  %7764 = vmatprep.mubr.msk.f32.mxu0 %vm8875_vm1, %v11924_v1  ;;  %v1809_v39 = vld [vmem:[#allocation2 + $0x62] sm:$0xff] }
  0xc2   : > { %7714 = vmatprep.mubr.msk.f32.mxu1 %vm8875_vm1, %v11924_v1 }
  0xc4   : > { %7765 = vmatmul.mubr.msk.f32.gmra.mxu0 %vm306_vm0, %v1606_v40 }
  0xc5   : > { %7715 = vmatmul.mubr.msk.f32.gmra.mxu1 %vm306_vm0, %v1606_v40  ;;  %7767 = vmatprep.mubr.msk.f32.mxu0 %vm8875_vm1, %v11924_v1 }
  0xc6   : > { %7717 = vmatprep.mubr.msk.f32.mxu1 %vm8875_vm1, %v11924_v1 }
  0xc8   : > { %7768 = vmatmul.mubr.msk.f32.gmra.mxu0 %vm306_vm0, %v1607_v41 }
  0xc9   : > { %7718 = vmatmul.mubr.msk.f32.gmra.mxu1 %vm306_vm0, %v1607_v41  ;;  %7770 = vmatprep.mubr.msk.f32.mxu0 %vm8875_vm1, %v11924_v1  ;;  %v2271_v41 = vld [vmem:[%s11918_s3 + $0x28] sm:$0xff] }
  0xca   : > { %7720 = vmatprep.mubr.msk.f32.mxu1 %vm8875_vm1, %v11924_v1 }
  0xcc   : > { %7771 = vmatmul.mubr.msk.f32.gmra.mxu0 %vm306_vm0, %v1608_v42 }
  0xcd   : > { %7721 = vmatmul.mubr.msk.f32.gmra.mxu1 %vm306_vm0, %v1406_v43  ;;  %7773 = vmatprep.mubr.msk.f32.mxu0 %vm8875_vm1, %v11924_v1 }
  0xce   : > { %7790 = vmatprep.mubr.msk.f32.mxu1 %vm8875_vm1, %v11924_v1 }
  0xd0   : > { %7774 = vmatmul.mubr.msk.f32.gmra.mxu0 %vm306_vm0, %v1609_v44 }
  0xd1   : > { %7791 = vmatmul.mubr.msk.f32.vlgmr.msra.gmra.mxu1 %vm306_vm0, %v1800_v45  ;;  %7843 = vmatprep.mubr.msk.f32.mxu0 %vm8875_vm1, %v11924_v1  ;;  %v2012_v45 = vld [vmem:[#allocation2 + $0x63] sm:$0xff] }
  0xd2   : > { %7793 = vmatprep.mubr.msk.f32.mxu1 %vm8875_vm1, %v11924_v1  ;;  %7883 = vmatpush3.msra.mxu1 %v2272_v27 }
  0xd3   : > { %7884 = vmatprep.subr.mxu1 %v11924_v1 }
  0xd4   : > { %7844 = vmatmul.mubr.msk.f32.vlgmr.msra.gmra.mxu0 %vm306_vm0, %v2003_v47  ;;  %7885 = vmatpush3.msra.mxu1 %v2271_v41 }
  0xd5   : > { %7794 = vmatmul.mubr.msk.f32.gmra.mxu1 %vm306_vm0, %v1801_v48  ;;  %7846 = vmatprep.mubr.msk.f32.mxu0 %vm8875_vm1, %v11924_v1  ;;  %v1810_v48 = vld [vmem:[#allocation2 + $0x6a] sm:$0xff] }
  0xd6   : > { %7796 = vmatprep.mubr.msk.f32.mxu1 %vm8875_vm1, %v11924_v1  ;;  %7886 = vmatprep.subr.mxu1 %v11924_v1 }
  0xd8   : > { %7847 = vmatmul.mubr.msk.f32.gmra.mxu0 %vm306_vm0, %v2004_v49 }
  0xd9   : > { %7797 = vmatmul.mubr.msk.f32.gmra.mxu1 %vm306_vm0, %v1802_v50  ;;  %7849 = vmatprep.mubr.msk.f32.mxu0 %vm8875_vm1, %v11924_v1 }
  0xda   : > { %v9628_v52 = vpop.f32.mrf.mxu0  ;;  %7799 = vmatprep.mubr.msk.f32.mxu1 %vm8875_vm1, %v11924_v1 }
  0xdb   : > { %v569_v42 = vadd.f32 %v9692_v35, %v9628_v52 }
  0xdc   : > { %7850 = vmatmul.mubr.msk.f32.gmra.mxu0 %vm306_vm0, %v2005_v51  ;;  %v9633_v54 = vpop.f32.mrf.mxu1  ;;  %v7421_v55 = vpop.f32.mrf.mxu0 }
  0xdd   : > { %7800 = vmatmul.mubr.msk.f32.gmra.mxu1 %vm306_vm0, %v1803_v53  ;;  %7852 = vmatprep.mubr.msk.f32.mxu0 %vm8875_vm1, %v11924_v1  ;;  %v2013_v55 = vld [vmem:[#allocation2 + $0x6b] sm:$0xff] }
  0xde   : > { %v7442_v57 = vpop.f32.mrf.mxu1  ;;  %v9638_v58 = vpop.f32.mrf.mxu0  ;;  %7802 = vmatprep.mubr.msk.f32.mxu1 %vm8875_vm1, %v11924_v1 }
  0xdf   : > { %v570_v50 = vadd.f32 %v9692_v35, %v9638_v58  ;;  %v2270_v58 = vld [vmem:[%s11918_s3 + $0x20] sm:$0xff] }
  0xe0   : > { %7853 = vmatmul.mubr.msk.f32.gmra.mxu0 %vm306_vm0, %v2006_v56  ;;  %v9643_v60 = vpop.f32.mrf.mxu1  ;;  %v7424_v61 = vpop.f32.mrf.mxu0  ;;  %7887 = vmatpush3.msra.mxu1 %v2270_v58 }
  0xe1   : > { %7803 = vmatmul.mubr.msk.f32.gmra.mxu1 %vm306_vm0, %v1804_v59  ;;  %7855 = vmatprep.mubr.msk.f32.mxu0 %vm8875_vm1, %v11924_v1  ;;  %v1811_v59 = vld [vmem:[#allocation2 + $0x72] sm:$0xff] }
  0xe2   : > { %v7445_v63 = vpop.f32.mrf.mxu1  ;;  %v9648_v0 = vpop.f32.mrf.mxu0  ;;  %7805 = vmatprep.mubr.msk.f32.mxu1 %vm8875_vm1, %v11924_v1  ;;  %7888 = vmatprep.subr.mxu1 %v11924_v1 }
  0xe4   : > { %7856 = vmatmul.mubr.msk.f32.gmra.mxu0 %vm306_vm0, %v2007_v62  ;;  %v9653_v3 = vpop.f32.mrf.mxu1  ;;  %v7427_v4 = vpop.f32.mrf.mxu0  ;;  %v571_v62 = vadd.f32 %v9692_v35, %v9648_v0  ;;  %v1812_v0 = vld [vmem:[#allocation2 + $0x7a] sm:$0xf] }
  0xe5   : > { %7806 = vmatmul.mubr.msk.f32.gmra.mxu1 %vm306_vm0, %v1805_v2  ;;  %7858 = vmatprep.mubr.msk.f32.mxu0 %vm8875_vm1, %v11924_v1 }
  0xe6   : > { %v7448_v6 = vpop.f32.mrf.mxu1  ;;  %7808 = vmatprep.mubr.msk.f32.mxu1 %vm8875_vm1, %v11924_v1 }
  0xe7   : > { %v9660_v19 = vpop.f32.mrf.mxu0 }
  0xe8   : > { %7859 = vmatmul.mubr.msk.f32.gmra.mxu0 %vm306_vm0, %v2008_v5  ;;  %v9663_v21 = vpop.f32.mrf.mxu1  ;;  %v2014_v5 = vld [vmem:[#allocation2 + $0x73] sm:$0xff] }
  0xe9   : > { %7809 = vmatmul.mubr.msk.f32.gmra.mxu1 %vm306_vm0, %v1806_v9  ;;  %v7430_v22 = vpop.f32.mrf.mxu0  ;;  %7861 = vmatprep.mubr.msk.f32.mxu0 %vm8875_vm1, %v11924_v1 }
  0xea   : > { %v7451_v24 = vpop.f32.mrf.mxu1  ;;  %7811 = vmatprep.mubr.msk.f32.mxu1 %vm8875_vm1, %v11924_v1 }
  0xeb   : > { %v9670_v26 = vpop.f32.mrf.mxu0 }
  0xec   : > { %7862 = vmatmul.mubr.msk.f32.gmra.mxu0 %vm306_vm0, %v2009_v23  ;;  %v9676_v28 = vpop.f32.mrf.mxu1  ;;  %v572_v23 = vadd.f32 %v9692_v35, %v9660_v19 }
  0xed   : > { %7812 = vmatmul.mubr.msk.f32.gmra.mxu1 %vm306_vm0, %v1807_v25  ;;  %v7433_v29 = vpop.f32.mrf.mxu0  ;;  %7864 = vmatprep.mubr.msk.f32.mxu0 %vm8875_vm1, %v11924_v1 }
  0xee   : > { %v7454_v31 = vpop.f32.mrf.mxu1  ;;  %7814 = vmatprep.mubr.msk.f32.mxu1 %vm8875_vm1, %v11924_v1  ;;  %v2015_v29 = vld [vmem:[#allocation2 + $0x7b] sm:$0xf] }
  0xef   : > { %v9684_v33 = vpop.f32.mrf.mxu0 }
  0xf0   : > { %7865 = vmatmul.mubr.msk.f32.gmra.mxu0 %vm306_vm0, %v2010_v30  ;;  %v9687_v34 = vpop.f32.mrf.mxu1 }
  0xf1   : > { %7815 = vmatmul.mubr.msk.f32.gmra.mxu1 %vm306_vm0, %v1808_v32  ;;  %v7436_v36 = vpop.f32.mrf.mxu0  ;;  %7867 = vmatprep.mubr.msk.f32.mxu0 %vm8875_vm1, %v11924_v1  ;;  %v2269_v32 = vld [vmem:[%s11918_s3 + $0x18] sm:$0xff] }
  0xf2   : > { %v7457_v38 = vpop.f32.mrf.mxu1  ;;  %7817 = vmatprep.mubr.msk.f32.mxu1 %vm8875_vm1, %v11924_v1  ;;  %7889 = vmatpush3.msra.mxu1 %v2269_v32  ;;  %v573_v36 = vadd.f32 %v9692_v35, %v9670_v26 }
  0xf3   : > { %v9699_v40 = vpop.f32.mrf.mxu0  ;;  %7890 = vmatprep.subr.mxu1 %v11924_v1 }
  0xf4   : > { %7868 = vmatmul.mubr.msk.f32.gmra.mxu0 %vm306_vm0, %v2011_v37 }
  0xf5   : > { %v708_v43 = vpop.f32.mrf.mxu1  ;;  %7818 = vmatmul.mubr.msk.f32.gmra.mxu1 %vm306_vm0, %v1809_v39  ;;  %v7439_v44 = vpop.f32.mrf.mxu0  ;;  %7870 = vmatprep.mubr.msk.f32.mxu0 %vm8875_vm1, %v11924_v1 }
  0xf6   : > { %v772_v47 = vadd.f32 %v708_v43, %v569_v42  ;;  %7820 = vmatprep.mubr.msk.f32.mxu1 %vm8875_vm1, %v11924_v1  ;;  %v574_v44 = vadd.f32 %v9692_v35, %v9684_v33 }
  0xf7   : > { %v7474_v49 = vpop.f32.mrf.mxu1 }
  0xf8   : > { %v911_v51 = vpop.f32.mrf.mxu0  ;;  %7871 = vmatmul.mubr.msk.f32.gmra.mxu0 %vm306_vm0, %v2012_v45 }
  0xf9   : > { %v9716_v52 = vadd.f32 %v911_v51, %v772_v47  ;;  %v713_v53 = vpop.f32.mrf.mxu1  ;;  %7821 = vmatmul.mubr.msk.f32.gmra.mxu1 %vm306_vm0, %v1810_v48  ;;  %7873 = vmatprep.mubr.msk.f32.mxu0 %vm8875_vm1, %v11924_v1 }
  0xfa   : > { %v773_v56 = vadd.f32 %v713_v53, %v570_v50  ;;  %v7527_v57 = vpop.f32.mrf.mxu0  ;;  %7823 = vmatprep.mubr.msk.f32.mxu1 %vm8875_vm1, %v11924_v1  ;;  %v2268_v50 = vld [vmem:[%s11918_s3 + $0x10] sm:$0xff]  ;;  %v575_v53 = vadd.f32 %v9692_v35, %v9699_v40 }
  0xfb   : > { %v7477_v61 = vpop.f32.mrf.mxu1  ;;  %7891 = vmatpush3.msra.mxu1 %v2268_v50  ;;  %v6529_v50 = vld [vmem:[%s11918_s3 + $0x38] sm:$0xff] }
  0xfc   : > { %v916_v63 = vpop.f32.mrf.mxu0  ;;  %7874 = vmatmul.mubr.msk.f32.gmra.mxu0 %vm306_vm0, %v2013_v55  ;;  %7892 = vmatprep.subr.mxu1 %v11924_v1  ;;  %v576_v61 = vadd.f32 %v9692_v35, %v9633_v54  ;;  %v6534_v54 = vld [vmem:[%s11918_s3 + $0x60] sm:$0xff] }
  0xfd   : > { %v9730_v2 = vadd.f32 %v916_v63, %v773_v56  ;;  %v718_v4 = vpop.f32.mrf.mxu1  ;;  %7824 = vmatmul.mubr.msk.f32.gmra.mxu1 %vm306_vm0, %v1811_v59  ;;  %7876 = vmatprep.mubr.msk.f32.mxu0 %vm8875_vm1, %v11924_v1  ;;  %v6535_v63 = vld [vmem:[%s11918_s3 + $0x68] sm:$0xff] }
  0xfe   : > { %v774_v6 = vadd.f32 %v718_v4, %v571_v62  ;;  %v7530_v9 = vpop.f32.mrf.mxu0  ;;  %7826 = vmatprep.mubr.msk.f32.mxu1 %vm8875_vm1, %v11924_v1  ;;  %7936 = vmatpush3.msra.mxu0 %v6535_v63 }
  0xff   : > { %v7480_v22 = vpop.f32.mrf.mxu1  ;;  %v2267_v9 = vld [vmem:[%s11918_s3 + $0x8] sm:$0xff]  ;;  %7937 = vmatprep.subr.mxu0 %v11924_v1 }
 0x100   : > { %v921_v24 = vpop.f32.mrf.mxu0  ;;  %7877 = vmatmul.mubr.msk.f32.gmra.mxu0 %vm306_vm0, %v2014_v5  ;;  %7893 = vmatpush3.msra.mxu1 %v2267_v9  ;;  %v577_v22 = vadd.f32 %v9692_v35, %v9643_v60  ;;  %v6532_v60 = vld [vmem:[%s11918_s3 + $0x50] sm:$0xff]  ;;  %v581_v9 = vadd.f32 %v9692_v35, %v9687_v34  ;;  %v6554_v34 = vld [vmem:[%s11918_s3 + $0x98] sm:$0xff] }
 0x101   : > { %v9740_v25 = vadd.f32 %v921_v24, %v774_v6  ;;  %v723_v27 = vpop.f32.mrf.mxu1  ;;  %7827 = vmatmul.mubr.msk.f32.gmra.mxu1 %vm306_vm0, %v1812_v0  ;;  %7879 = vmatprep.mubr.msk.f32.mxu0 %vm8875_vm1, %v11924_v1  ;;  %v6533_v24 = vld [vmem:[%s11918_s3 + $0x58] sm:$0xff] }
 0x102   : > { %v775_v30 = vadd.f32 %v723_v27, %v572_v23  ;;  %v7533_v31 = vpop.f32.mrf.mxu0  ;;  %7896 = vmatprep.mubr.msk.f32.mxu1 %vm8875_vm1, %v11924_v1  ;;  %7938 = vmatpush3.msra.mxu0 %v6534_v54 }
 0x103   : > { %v7483_v19 = vpop.f32.mrf.mxu1  ;;  %7939 = vmatprep.subr.mxu0 %v11924_v1  ;;  %7894 = vmatprep.subr.mxu1 %v11924_v1 }
 0x104   : > { %v926_v37 = vpop.f32.mrf.mxu0  ;;  %7880 = vmatmul.mubr.msk.f32.gmra.mxu0 %vm306_vm0, %v2015_v29  ;;  %v578_v19 = vadd.f32 %v9692_v35, %v9653_v3  ;;  %v6530_v3 = vld [vmem:[%s11918_s3 + $0x40] sm:$0xff] }
 0x105   : > { %v9754_v38 = vadd.f32 %v926_v37, %v775_v30  ;;  %v728_v39 = vpop.f32.mrf.mxu1  ;;  %7949 = vmatprep.mubr.msk.f32.mxu0 %vm8875_vm1, %v11924_v1  ;;  %7940 = vmatpush3.msra.mxu0 %v6533_v24  ;;  %v6531_v37 = vld [vmem:[%s11918_s3 + $0x48] sm:$0xff] }
 0x106   : > { %v776_v41 = vadd.f32 %v728_v39, %v573_v36  ;;  %v7536_v42 = vpop.f32.mrf.mxu0  ;;  %7941 = vmatprep.subr.mxu0 %v11924_v1 }
 0x107   : > { %v7486_v43 = vpop.f32.mrf.mxu1  ;;  %7942 = vmatpush3.msra.mxu0 %v6532_v60 }
 0x108   : > { %v931_v45 = vpop.f32.mrf.mxu0  ;;  %7943 = vmatprep.subr.mxu0 %v11924_v1 }
 0x109   : > { %v9760_v47 = vadd.f32 %v931_v45, %v776_v41  ;;  %v733_v26 = vpop.f32.mrf.mxu1  ;;  %7944 = vmatpush3.msra.mxu0 %v6531_v37 }
 0x10a   : > { %v777_v48 = vadd.f32 %v733_v26, %v574_v44  ;;  %v7539_v49 = vpop.f32.mrf.mxu0  ;;  %v2266_v44 = vld [vmem:[%s11918_s3] sm:$0xff]  ;;  %7945 = vmatprep.subr.mxu0 %v11924_v1  ;;  %v2253_v26 = vld [vmem:[#allocation3 + $0x5] sm:$0xff] }
 0x10b   : > { %v7489_v51 = vpop.f32.mrf.mxu1  ;;  %7895 = vmatpush3.msra.mxu1 %v2266_v44  ;;  %7946 = vmatpush3.msra.mxu0 %v6530_v3 }
 0x10c   : > { %v936_v55 = vpop.f32.mrf.mxu0  ;;  %7947 = vmatprep.subr.mxu0 %v11924_v1  ;;  %7897 = vmatmul.mubr.msk.f32.vlgmr.msra.gmra.mxu1 %vm306_vm0, %v2253_v26 }
 0x10d   : > { %v9768_v56 = vadd.f32 %v936_v55, %v777_v48  ;;  %v738_v33 = vpop.f32.mrf.mxu1  ;;  %v579_v48 = vadd.f32 %v9692_v35, %v9663_v21  ;;  %7948 = vmatpush3.msra.mxu0 %v6529_v50  ;;  %v2455_v55 = vld [vmem:[#allocation3 + $0x6] sm:$0xff]  ;;  %7988 = vmatprep.subr.mxu1 %v11924_v1 }
 0x10e   : > { %v778_v57 = vadd.f32 %v738_v33, %v575_v53  ;;  %v7542_v59 = vpop.f32.mrf.mxu0  ;;  %7950 = vmatmul.mubr.msk.f32.vlgmr.msra.gmra.mxu0 %vm306_vm0, %v2455_v55  ;;  %7899 = vmatprep.mubr.msk.f32.mxu1 %vm8875_vm1, %v11924_v1 }
 0x10f   : > { %v7492_v58 = vpop.f32.mrf.mxu1  ;;  %7952 = vmatprep.mubr.msk.f32.mxu0 %vm8875_vm1, %v11924_v1  ;;  %8041 = vmatprep.subr.mxu0 %v11924_v1  ;;  %v580_v59 = vadd.f32 %v9692_v35, %v9676_v28 }
 0x110   : > { %v941_v62 = vpop.f32.mrf.mxu0 }
 0x111   : > { %v9775_v4 = vadd.f32 %v941_v62, %v778_v57  ;;  %v743_v40 = vpop.f32.mrf.mxu1 }
 0x112   : > { %v779_v5 = vadd.f32 %v743_v40, %v576_v61  ;;  %v7545_v6 = vpop.f32.mrf.mxu0 }
 0x113   : > { %v7495_v0 = vpop.f32.mrf.mxu1 }
 0x114   : > { %v946_v23 = vpop.f32.mrf.mxu0 }
 0x115   : > { %v9791_v27 = vadd.f32 %v946_v23, %v779_v5  ;;  %v748_v29 = vpop.f32.mrf.mxu1  ;;  %v6555_v5 = vld [vmem:[%s11918_s3 + $0xa0] sm:$0xff] }
 0x116   : > { %v780_v30 = vadd.f32 %v748_v29, %v577_v22  ;;  %v7548_v31 = vpop.f32.mrf.mxu0  ;;  %7989 = vmatpush3.msra.mxu1 %v6555_v5 }
 0x117   : > { %v7498_v32 = vpop.f32.mrf.mxu1  ;;  %7990 = vmatprep.subr.mxu1 %v11924_v1 }
 0x118   : > { %v951_v36 = vpop.f32.mrf.mxu0  ;;  %7991 = vmatpush3.msra.mxu1 %v6554_v34 }
 0x119   : > { %v9803_v39 = vadd.f32 %v951_v36, %v780_v30  ;;  %v753_v41 = vpop.f32.mrf.mxu1  ;;  %7992 = vmatprep.subr.mxu1 %v11924_v1 }
 0x11a   : > { %v781_v42 = vadd.f32 %v753_v41, %v578_v19  ;;  %v7551_v43 = vpop.f32.mrf.mxu0 }
 0x11b   : > { %v7501_v45 = vpop.f32.mrf.mxu1 }
 0x11c   : > { %v956_v49 = vpop.f32.mrf.mxu0 }
 0x11d   : > { %v9819_v51 = vadd.f32 %v956_v49, %v781_v42  ;;  %v758_v53 = vpop.f32.mrf.mxu1 }
 0x11e   : > { %v782_v33 = vadd.f32 %v758_v53, %v579_v48  ;;  %v7554_v57 = vpop.f32.mrf.mxu0  ;;  %v6553_v48 = vld [vmem:[%s11918_s3 + $0x90] sm:$0xff] }
 0x11f   : > { %v7504_v21 = vpop.f32.mrf.mxu1  ;;  %7993 = vmatpush3.msra.mxu1 %v6553_v48  ;;  %v6572_v48 = vld [vmem:[%s11918_s3 + $0xc0] sm:$0xff] }
 0x120   : > { %v961_v58 = vpop.f32.mrf.mxu0  ;;  %7994 = vmatprep.subr.mxu1 %v11924_v1 }
 0x121   : > { %v9830_v61 = vadd.f32 %v961_v58, %v782_v33  ;;  %v763_v62 = vpop.f32.mrf.mxu1 }
 0x122   : > { %v783_v63 = vadd.f32 %v763_v62, %v580_v59  ;;  %v7557_v40 = vpop.f32.mrf.mxu0 }
 0x123   : > { %v7507_v6 = vpop.f32.mrf.mxu1 }
 0x124   : > { %v966_v54 = vpop.f32.mrf.mxu0 }
 0x125   : > { %v9838_v0 = vadd.f32 %v966_v54, %v783_v63  ;;  %v768_v28 = vpop.f32.mrf.mxu1  ;;  %v6552_v63 = vld [vmem:[%s11918_s3 + $0x88] sm:$0xff] }
 0x126   : > { %v784_v22 = vadd.f32 %v768_v28, %v581_v9  ;;  %v7560_v23 = vpop.f32.mrf.mxu0  ;;  %7995 = vmatpush3.msra.mxu1 %v6552_v63 }
 0x127   : > { %v7510_v24 = vpop.f32.mrf.mxu1  ;;  %7996 = vmatprep.subr.mxu1 %v11924_v1 }
 0x128   : > { %v971_v29 = vpop.f32.mrf.mxu0 }
 0x129   : > { %v9840_v30 = vadd.f32 %v971_v29, %v784_v22  ;;  %v1114_v31 = vpop.f32.mrf.mxu1 }
 0x12a   : > { %v1178_v60 = vadd.f32 %v1114_v31, %v9716_v52  ;;  %v7563_v32 = vpop.f32.mrf.mxu0  ;;  %v6551_v31 = vld [vmem:[%s11918_s3 + $0x80] sm:$0xff] }
 0x12b   : > { %v7580_v35 = vpop.f32.mrf.mxu1  ;;  %7997 = vmatpush3.msra.mxu1 %v6551_v31 }
 0x12c   : > { %v1317_v19 = vpop.f32.mrf.mxu0  ;;  %7998 = vmatprep.subr.mxu1 %v11924_v1 }
 0x12d   : > { %v9847_v36 = vadd.f32 %v1317_v19, %v1178_v60  ;;  %v1119_v37 = vpop.f32.mrf.mxu1 }
 0x12e   : > { %v1179_v41 = vadd.f32 %v1119_v37, %v9730_v2  ;;  %v7633_v42 = vpop.f32.mrf.mxu0  ;;  %v6574_v37 = vld [vmem:[%s11918_s3 + $0xd0] sm:$0xff] }
 0x12f   : > { %v7583_v43 = vpop.f32.mrf.mxu1 }
 0x130   : > { %v1322_v44 = vpop.f32.mrf.mxu0  ;;  %v6573_v43 = vld [vmem:[%s11918_s3 + $0xc8] sm:$0xff] }
 0x131   : > { %v9850_v3 = vadd.f32 %v1322_v44, %v1179_v41  ;;  %v1124_v52 = vpop.f32.mrf.mxu1 }
 0x132   : > { %v1180_v45 = vadd.f32 %v1124_v52, %v9740_v25  ;;  %v7636_v26 = vpop.f32.mrf.mxu0 }
 0x133   : > { %v7586_v49 = vpop.f32.mrf.mxu1  ;;  %v6550_v26 = vld [vmem:[%s11918_s3 + $0x78] sm:$0xff] }
 0x134   : > { %v1327_v50 = vpop.f32.mrf.mxu0  ;;  %v6549_v49 = vld [vmem:[%s11918_s3 + $0x70] sm:$0xff]  ;;  %7999 = vmatpush3.msra.mxu1 %v6550_v26 }
 0x135   : > { %v9857_v53 = vadd.f32 %v1327_v50, %v1180_v45  ;;  %v1129_v2 = vpop.f32.mrf.mxu1  ;;  %8000 = vmatprep.subr.mxu1 %v11924_v1 }
 0x136   : > { %v1181_v55 = vadd.f32 %v1129_v2, %v9754_v38  ;;  %v7639_v33 = vpop.f32.mrf.mxu0  ;;  %8001 = vmatpush3.msra.mxu1 %v6549_v49 }
 0x137   : > { %v7589_v57 = vpop.f32.mrf.mxu1  ;;  %8094 = vmatprep.subr.mxu1 %v11924_v1 }
 0x138   : > { %v1332_v21 = vpop.f32.mrf.mxu0 }
 0x139   : > { %v9860_v59 = vadd.f32 %v1332_v21, %v1181_v55  ;;  %v1134_v25 = vpop.f32.mrf.mxu1 }
 0x13a   : > { %v1182_v58 = vadd.f32 %v1134_v25, %v9760_v47  ;;  %v7642_v62 = vpop.f32.mrf.mxu0  ;;  %v6570_v25 = vld [vmem:[%s11918_s3 + $0xb0] sm:$0xff] }
 0x13b   : > { %v7592_v40 = vpop.f32.mrf.mxu1  ;;  %v6569_v62 = vld [vmem:[%s11918_s3 + $0xa8] sm:$0xff] }
 0x13c   : > { %v1337_v5 = vpop.f32.mrf.mxu0 }
 0x13d   : > { %v9867_v6 = vadd.f32 %v1337_v5, %v1182_v58  ;;  %v1139_v38 = vpop.f32.mrf.mxu1 }
 0x13e   : > { %v1183_v9 = vadd.f32 %v1139_v38, %v9768_v56  ;;  %v7645_v54 = vpop.f32.mrf.mxu0  ;;  %v6575_v56 = vld [vmem:[%s11918_s3 + $0xd8] sm:$0xff] }
 0x13f   : > { %v7595_v28 = vpop.f32.mrf.mxu1  ;;  %8042 = vmatpush3.msra.mxu0 %v6575_v56 }
 0x140   : > { %v1342_v22 = vpop.f32.mrf.mxu0  ;;  %8043 = vmatprep.subr.mxu0 %v11924_v1 }
 0x141   : > { %v9870_v23 = vadd.f32 %v1342_v22, %v1183_v9  ;;  %v1144_v47 = vpop.f32.mrf.mxu1  ;;  %8044 = vmatpush3.msra.mxu0 %v6574_v37 }
 0x142   : > { %v1184_v24 = vadd.f32 %v1144_v47, %v9775_v4  ;;  %v7648_v29 = vpop.f32.mrf.mxu0  ;;  %8045 = vmatprep.subr.mxu0 %v11924_v1 }
 0x143   : > { %v7598_v60 = vpop.f32.mrf.mxu1  ;;  %8046 = vmatpush3.msra.mxu0 %v6573_v43 }
 0x144   : > { %v1347_v32 = vpop.f32.mrf.mxu0  ;;  %8047 = vmatprep.subr.mxu0 %v11924_v1 }
 0x145   : > { %v9880_v34 = vadd.f32 %v1347_v32, %v1184_v24  ;;  %v1149_v35 = vpop.f32.mrf.mxu1  ;;  %8048 = vmatpush3.msra.mxu0 %v6572_v48 }
 0x146   : > { %v1185_v4 = vadd.f32 %v1149_v35, %v9791_v27  ;;  %v7651_v19 = vpop.f32.mrf.mxu0  ;;  %8049 = vmatprep.subr.mxu0 %v11924_v1 }
 0x147   : > { %v7601_v41 = vpop.f32.mrf.mxu1 }
 0x148   : > { %v1352_v42 = vpop.f32.mrf.mxu0 }
 0x149   : > { %v9891_v44 = vadd.f32 %v1352_v42, %v1185_v4  ;;  %v1154_v52 = vpop.f32.mrf.mxu1 }
 0x14a   : > { %v1186_v27 = vadd.f32 %v1154_v52, %v9803_v39  ;;  %v7654_v45 = vpop.f32.mrf.mxu0  ;;  %v6571_v39 = vld [vmem:[%s11918_s3 + $0xb8] sm:$0xff] }
 0x14b   : > { %v7604_v50 = vpop.f32.mrf.mxu1  ;;  %8050 = vmatpush3.msra.mxu0 %v6571_v39 }
 0x14c   : > { %v1357_v2 = vpop.f32.mrf.mxu0  ;;  %8051 = vmatprep.subr.mxu0 %v11924_v1 }
 0x14d   : > { %v9909_v55 = vadd.f32 %v1357_v2, %v1186_v27  ;;  %v1159_v33 = vpop.f32.mrf.mxu1  ;;  %8052 = vmatpush3.msra.mxu0 %v6570_v25 }
 0x14e   : > { %v1187_v57 = vadd.f32 %v1159_v33, %v9819_v51  ;;  %v7657_v21 = vpop.f32.mrf.mxu0  ;;  %8053 = vmatprep.subr.mxu0 %v11924_v1 }
 0x14f   : > { %v7607_v58 = vpop.f32.mrf.mxu1  ;;  %8054 = vmatpush3.msra.mxu0 %v6569_v62 }
 0x150   : > { %v1362_v63 = vpop.f32.mrf.mxu0  ;;  %8147 = vmatprep.subr.mxu0 %v11924_v1 }
 0x151   : > { %v9921_v40 = vadd.f32 %v1362_v63, %v1187_v57  ;;  %v1164_v51 = vpop.f32.mrf.mxu1 }
 0x152   : > { %v1188_v5 = vadd.f32 %v1164_v51, %v9830_v61  ;;  %v7660_v38 = vpop.f32.mrf.mxu0 }
 0x153   : > { %v7610_v9 = vpop.f32.mrf.mxu1 }
 0x154   : > { %v1367_v54 = vpop.f32.mrf.mxu0 }
 0x155   : > { %v9925_v28 = vadd.f32 %v1367_v54, %v1188_v5  ;;  %v1169_v22 = vpop.f32.mrf.mxu1 }
 0x156   : > { %v1189_v47 = vadd.f32 %v1169_v22, %v9838_v0  ;;  %v7663_v24 = vpop.f32.mrf.mxu0 }
 0x157   : > { %v7613_v29 = vpop.f32.mrf.mxu1 }
 0x158   : > { %v1372_v31 = vpop.f32.mrf.mxu0 }
 0x159   : > { %v9928_v60 = vadd.f32 %v1372_v31, %v1189_v47  ;;  %v1174_v32 = vpop.f32.mrf.mxu1 }
 0x15a   : > { %v1190_v56 = vadd.f32 %v1174_v32, %v9840_v30  ;;  %v7666_v35 = vpop.f32.mrf.mxu0 }
 0x15b   : > { %v7616_v61 = vpop.f32.mrf.mxu1 }
 0x15c   : > { %v1377_v4 = vpop.f32.mrf.mxu0 }
 0x15d   : > { %v9931_v19 = vadd.f32 %v1377_v4, %v1190_v56  ;;  %v1520_v37 = vpop.f32.mrf.mxu1 }
 0x15e   : > { %v7669_v41 = vpop.f32.mrf.mxu0 }
 0x15f   : > { %v7686_v42 = vpop.f32.mrf.mxu1 }
 0x160   : > { %v1723_v43 = vpop.f32.mrf.mxu0 }
 0x161   : > { %v1525_v52 = vpop.f32.mrf.mxu1 }
 0x162   : > { %v7739_v27 = vpop.f32.mrf.mxu0 }
 0x163   : > { %v7689_v0 = vpop.f32.mrf.mxu1 }
 0x164   : > { %v1728_v45 = vpop.f32.mrf.mxu0 }
 0x165   : > { %v1530_v26 = vpop.f32.mrf.mxu1 }
 0x166   : > { %v7742_v48 = vpop.f32.mrf.mxu0 }
 0x167   : > { %v7692_v49 = vpop.f32.mrf.mxu1 }
 0x168   : > { %v1733_v50 = vpop.f32.mrf.mxu0 }
 0x169   : > { %v1535_v39 = vpop.f32.mrf.mxu1 }
 0x16a   : > { %v7745_v2 = vpop.f32.mrf.mxu0 }
 0x16b   : > { %v7695_v30 = vpop.f32.mrf.mxu1 }
 0x16c   : > { %v9933_v33 = vpop.f32.mrf.mxu0 }
 0x16d   : > { %v9935_v57 = vpop.f32.mrf.mxu1 }
 0x16e   : > { %v7748_v21 = vpop.f32.mrf.mxu0 }
 0x16f   : > { %v7698_v25 = vpop.f32.mrf.mxu1 }
 0x170   : > { %v9937_v58 = vpop.f32.mrf.mxu0 }
 0x171   : > { %v9939_v62 = vpop.f32.mrf.mxu1 }
 0x172   : > { %v7751_v63 = vpop.f32.mrf.mxu0 }
 0x173   : > { %v7701_v51 = vpop.f32.mrf.mxu1  ;;  %v1584_v63 = vadd.f32 %v1520_v37, %v9847_v36  ;;  %v1586_v37 = vadd.f32 %v1530_v26, %v9857_v53 }
 0x174   : > { %v9941_v5 = vpop.f32.mrf.mxu0 }
 0x175   : > { %v9943_v38 = vpop.f32.mrf.mxu1 }
 0x176   : > { %v7754_v9 = vpop.f32.mrf.mxu0 }
 0x177   : > { %v7704_v54 = vpop.f32.mrf.mxu1 }
 0x178   : > { %v9945_v22 = vpop.f32.mrf.mxu0 }
 0x179   : > { %v9947_v47 = vpop.f32.mrf.mxu1 }
 0x17a   : > { %v7757_v24 = vpop.f32.mrf.mxu0 }
 0x17b   : > { %v7707_v29 = vpop.f32.mrf.mxu1 }
 0x17c   : > { %v9949_v31 = vpop.f32.mrf.mxu0  ;;  %v1787_v29 = vadd.f32 %v1723_v43, %v1584_v63 }
 0x17d   : > { %v9951_v32 = vpop.f32.mrf.mxu1 }
 0x17e   : > { %v7760_v56 = vpop.f32.mrf.mxu0 }
 0x17f   : > { %v7710_v35 = vpop.f32.mrf.mxu1  ;;  %v1585_v56 = vadd.f32 %v1525_v52, %v9850_v3 }
 0x180   : > { %v9953_v61 = vpop.f32.mrf.mxu0 }
 0x181   : > { %v9955_v4 = vpop.f32.mrf.mxu1  ;;  %v1788_v36 = vadd.f32 %v1728_v45, %v1585_v56 }
 0x182   : > { %v7763_v41 = vpop.f32.mrf.mxu0 }
 0x183   : > { %v7713_v42 = vpop.f32.mrf.mxu1 }
 0x184   : > { %v9957_v27 = vpop.f32.mrf.mxu0 }
 0x185   : > { %v9959_v0 = vpop.f32.mrf.mxu1 }
 0x186   : > { %v7766_v48 = vpop.f32.mrf.mxu0 }
 0x187   : > { %v7716_v49 = vpop.f32.mrf.mxu1 }
 0x188   : > { %v9961_v2 = vpop.f32.mrf.mxu0 }
 0x189   : > { %v9963_v30 = vpop.f32.mrf.mxu1 }
 0x18a   : > { %v7769_v21 = vpop.f32.mrf.mxu0 }
 0x18b   : > { %v7719_v25 = vpop.f32.mrf.mxu1  ;;  %v9976_v21 = vld [vmem:[%s11922_s7] sm:$0xff] }
 0x18c   : > { %v9966_v51 = vpop.f32.mrf.mxu0  ;;  %vm345_vm3 = vcmp.gt.f32.partialorder %v9976_v21, 0.5 }
 0x18d   : > { %v9968_v9 = vpop.f32.mrf.mxu1 }
 0x18e   : > { %v7772_v54 = vpop.f32.mrf.mxu0 }
 0x18f   : > { %v7722_v24 = vpop.f32.mrf.mxu1 }
 0x190   : > { %v9971_v35 = vpop.f32.mrf.mxu0 }
 0x191   : > { %v1926_v41 = vpop.f32.mrf.mxu1 }
 0x192   : > { %v1990_v42 = vadd.f32 %v1926_v41, %v1787_v29  ;;  %v7775_v48 = vpop.f32.mrf.mxu0  ;;  %v9983_v29 = vld [vmem:[%s11922_s7 + $0x8] sm:$0xff]  ;;  %v1789_v41 = vadd.f32 %v1733_v50, %v1586_v37  ;;  %v9993_v50 = vld [vmem:[%s11922_s7 + $0x10] sm:$0xff] }
 0x193   : > { %v7792_v49 = vpop.f32.mrf.mxu1  ;;  %v1587_v48 = vadd.f32 %v1535_v39, %v9860_v59  ;;  %vm346_vm4 = vcmp.gt.f32.partialorder %v9983_v29, 0.5  ;;  %v1588_v39 = vadd.f32 %v9935_v57, %v9867_v6  ;;  %vm347_vm5 = vcmp.gt.f32.partialorder %v9993_v50, 0.5 }
 0x194   : > { %v2129_v25 = vpop.f32.mrf.mxu0  ;;  %v1589_v57 = vadd.f32 %v9939_v62, %v9870_v23  ;;  %v10019_v62 = vld [vmem:[%s11922_s7 + $0x20] sm:$0xff] }
 0x195   : > { %v2193_v54 = vadd.f32 %v2129_v25, %v1990_v42  ;;  %v1931_v24 = vpop.f32.mrf.mxu1  ;;  %v1790_v59 = vadd.f32 %v9933_v33, %v1587_v48  ;;  %v10005_v33 = vld [vmem:[%s11922_s7 + $0x18] sm:$0xff]  ;;  %v1791_v6 = vadd.f32 %v9937_v58, %v1588_v39  ;;  %vm349_vm7 = vcmp.gt.f32.partialorder %v10019_v62, 0.5 }
 0x196   : > { %v1991_v3 = vadd.f32 %v1931_v24, %v1788_v36  ;;  %v7845_v43 = vpop.f32.mrf.mxu0  ;;  %vm348_vm6 = vcmp.gt.f32.partialorder %v10005_v33, 0.5 }
 0x197   : > { %v2206_v52 = vmax.f32 %v2193_v54, 0.0  ;;  %v7795_v63 = vpop.f32.mrf.mxu1 }
 0x198   : > { %v2134_v45 = vpop.f32.mrf.mxu0 }
 0x199   : > { %v2219_v53 = vsel %vm345_vm3, %v2206_v52, 0.0  ;;  %v2194_v26 = vadd.f32 %v2134_v45, %v1991_v3  ;;  %v1936_v56 = vpop.f32.mrf.mxu1 }
 0x19a   : > { %2232 = vst.msk [vmem:[#allocation3 + $0x10] sm:$0xff] %vm306_vm0, %v2219_v53  ;;  %v1992_v42 = vadd.f32 %v1936_v56, %v1789_v41  ;;  %v7848_v49 = vpop.f32.mrf.mxu0 }
 0x19b   : > { %v2207_v36 = vmax.f32 %v2194_v26, 0.0  ;;  %v7798_v25 = vpop.f32.mrf.mxu1 }
 0x19c   : > { %v2139_v37 = vpop.f32.mrf.mxu0  ;;  %v1792_v25 = vadd.f32 %v9941_v5, %v1589_v57 }
 0x19d   : > { %v2220_v54 = vsel %vm346_vm4, %v2207_v36, 0.0  ;;  %v2195_v24 = vadd.f32 %v2139_v37, %v1992_v42  ;;  %v1941_v3 = vpop.f32.mrf.mxu1 }
 0x19e   : > { %2233 = vst.msk [vmem:[#allocation3 + $0x18] sm:$0xff] %vm306_vm0, %v2220_v54  ;;  %v1993_v43 = vadd.f32 %v1941_v3, %v1790_v59  ;;  %v7851_v52 = vpop.f32.mrf.mxu0  ;;  %v1590_v59 = vadd.f32 %v9943_v38, %v9880_v34  ;;  %v10037_v38 = vld [vmem:[%s11922_s7 + $0x28] sm:$0xff] }
 0x19f   : > { %v2208_v63 = vmax.f32 %v2195_v24, 0.0  ;;  %v7801_v41 = vpop.f32.mrf.mxu1  ;;  %vm350_vm8 = vcmp.gt.f32.partialorder %v10037_v38, 0.5 }
 0x1a0   : > { %v2144_v48 = vpop.f32.mrf.mxu0  ;;  %v1793_v41 = vadd.f32 %v9945_v22, %v1590_v59 }
 0x1a1   : > { %v2221_v45 = vsel %vm347_vm5, %v2208_v63, 0.0  ;;  %v2196_v53 = vadd.f32 %v2144_v48, %v1993_v43  ;;  %v1946_v26 = vpop.f32.mrf.mxu1  ;;  %v2254_v56 = vld [vmem:[#allocation3 + $0xd] sm:$0xff] }
 0x1a2   : > { %v2456_v42 = vld [vmem:[#allocation3 + $0xe] sm:$0xff]  ;;  %2234 = vst.msk [vmem:[#allocation3 + $0x20] sm:$0xff] %vm306_vm0, %v2221_v45  ;;  %v1994_v49 = vadd.f32 %v1946_v26, %v1791_v6  ;;  %v7854_v36 = vpop.f32.mrf.mxu0  ;;  %7900 = vmatmul.mubr.msk.f32.gmra.mxu1 %vm306_vm0, %v2254_v56  ;;  %v1591_v6 = vadd.f32 %v9947_v47, %v9891_v44 }
 0x1a3   : > { %7953 = vmatmul.mubr.msk.f32.gmra.mxu0 %vm306_vm0, %v2456_v42  ;;  %v2209_v58 = vmax.f32 %v2196_v53, 0.0  ;;  %v7804_v23 = vpop.f32.mrf.mxu1  ;;  %7902 = vmatprep.mubr.msk.f32.mxu1 %vm8875_vm1, %v11924_v1  ;;  %v10055_v47 = vld [vmem:[%s11922_s7 + $0x30] sm:$0xff] }
 0x1a4   : > { %7955 = vmatprep.mubr.msk.f32.mxu0 %vm8875_vm1, %v11924_v1  ;;  %v2149_v39 = vpop.f32.mrf.mxu0  ;;  %v1794_v36 = vadd.f32 %v9949_v31, %v1591_v6  ;;  %vm351_vm9 = vcmp.gt.f32.partialorder %v10055_v47, 0.5 }
 0x1a5   : > { %v2222_v37 = vsel %vm348_vm6, %v2209_v58, 0.0  ;;  %v2197_v54 = vadd.f32 %v2149_v39, %v1994_v49  ;;  %v1951_v24 = vpop.f32.mrf.mxu1  ;;  %v2255_v3 = vld [vmem:[#allocation3 + $0x15] sm:$0xff]  ;;  %v1592_v58 = vadd.f32 %v9951_v32, %v9909_v55 }
 0x1a6   : > { %v2457_v43 = vld [vmem:[#allocation3 + $0x16] sm:$0xff]  ;;  %2235 = vst.msk [vmem:[#allocation3 + $0x28] sm:$0xff] %vm306_vm0, %v2222_v37  ;;  %v1995_v52 = vadd.f32 %v1951_v24, %v1792_v25  ;;  %v7857_v63 = vpop.f32.mrf.mxu0  ;;  %7903 = vmatmul.mubr.msk.f32.gmra.mxu1 %vm306_vm0, %v2255_v3 }
 0x1a7   : > { %7956 = vmatmul.mubr.msk.f32.gmra.mxu0 %vm306_vm0, %v2457_v43  ;;  %v2210_v5 = vmax.f32 %v2197_v54, 0.0  ;;  %v7807_v34 = vpop.f32.mrf.mxu1  ;;  %7905 = vmatprep.mubr.msk.f32.mxu1 %vm8875_vm1, %v11924_v1  ;;  %v10073_v32 = vld [vmem:[%s11922_s7 + $0x38] sm:$0xff]  ;;  %v1795_v43 = vadd.f32 %v9953_v61, %v1592_v58 }
 0x1a8   : > { %7958 = vmatprep.mubr.msk.f32.mxu0 %vm8875_vm1, %v11924_v1  ;;  %v2154_v57 = vpop.f32.mrf.mxu0  ;;  %vm352_vm10 = vcmp.gt.f32.partialorder %v10073_v32, 0.5 }
 0x1a9   : > { %v2223_v48 = vsel %vm349_vm7, %v2210_v5, 0.0  ;;  %v2198_v45 = vadd.f32 %v2154_v57, %v1995_v52  ;;  %v1956_v53 = vpop.f32.mrf.mxu1  ;;  %v2256_v26 = vld [vmem:[#allocation3 + $0x1d] sm:$0xff]  ;;  %v1593_v52 = vadd.f32 %v9955_v4, %v9921_v40 }
 0x1aa   : > { %v2458_v56 = vld [vmem:[#allocation3 + $0x1e] sm:$0xff]  ;;  %2236 = vst.msk [vmem:[#allocation3 + $0x30] sm:$0xff] %vm306_vm0, %v2223_v48  ;;  %v1996_v42 = vadd.f32 %v1956_v53, %v1793_v41  ;;  %v7860_v49 = vpop.f32.mrf.mxu0  ;;  %7906 = vmatmul.mubr.msk.f32.gmra.mxu1 %vm306_vm0, %v2256_v26  ;;  %v1594_v26 = vadd.f32 %v9959_v0, %v9925_v28 }
 0x1ab   : > { %7959 = vmatmul.mubr.msk.f32.gmra.mxu0 %vm306_vm0, %v2458_v56  ;;  %v2211_v22 = vmax.f32 %v2198_v45, 0.0  ;;  %v7810_v44 = vpop.f32.mrf.mxu1  ;;  %7908 = vmatprep.mubr.msk.f32.mxu1 %vm8875_vm1, %v11924_v1  ;;  %v10091_v4 = vld [vmem:[%s11922_s7 + $0x40] sm:$0xff]  ;;  %v1796_v53 = vadd.f32 %v9957_v27, %v1593_v52  ;;  %v10109_v0 = vld [vmem:[%s11922_s7 + $0x48] sm:$0xff] }
 0x1ac   : > { %7961 = vmatprep.mubr.msk.f32.mxu0 %vm8875_vm1, %v11924_v1  ;;  %v2159_v23 = vpop.f32.mrf.mxu0  ;;  %11939 = vst [vmem:[#allocation9_spill] sm:$0xff] %v10091_v4  ;;  %vm353_vm11 = vcmp.gt.f32.partialorder %v10091_v4, 0.5  ;;  %11940 = vst [vmem:[#allocation10_spill] sm:$0xff] %v10109_v0  ;;  %vm354_vm12 = vcmp.gt.f32.partialorder %v10109_v0, 0.5 }
 0x1ad   : > { %v2224_v25 = vsel %vm350_vm8, %v2211_v22, 0.0  ;;  %v2199_v59 = vadd.f32 %v2159_v23, %v1996_v42  ;;  %v1961_v39 = vpop.f32.mrf.mxu1  ;;  %v2257_v37 = vld [vmem:[#allocation3 + $0x25] sm:$0xff] }
 0x1ae   : > { %v2459_v54 = vld [vmem:[#allocation3 + $0x26] sm:$0xff]  ;;  %2237 = vst.msk [vmem:[#allocation3 + $0x38] sm:$0xff] %vm306_vm0, %v2224_v25  ;;  %v1997_v24 = vadd.f32 %v1961_v39, %v1794_v36  ;;  %v7863_v3 = vpop.f32.mrf.mxu0  ;;  %7909 = vmatmul.mubr.msk.f32.gmra.mxu1 %vm306_vm0, %v2257_v37  ;;  %v1797_v25 = vadd.f32 %v9961_v2, %v1594_v26 }
 0x1af   : > { %7962 = vmatmul.mubr.msk.f32.gmra.mxu0 %vm306_vm0, %v2459_v54  ;;  %v2212_v31 = vmax.f32 %v2199_v59, 0.0  ;;  %v7813_v55 = vpop.f32.mrf.mxu1  ;;  %7911 = vmatprep.mubr.msk.f32.mxu1 %vm8875_vm1, %v11924_v1  ;;  %v1595_v59 = vadd.f32 %v9963_v30, %v9928_v60  ;;  %v10127_v30 = vld [vmem:[%s11922_s7 + $0x50] sm:$0xff] }
 0x1b0   : > { %7964 = vmatprep.mubr.msk.f32.mxu0 %vm8875_vm1, %v11924_v1  ;;  %v2164_v63 = vpop.f32.mrf.mxu0  ;;  %11941 = vst [vmem:[#allocation11_spill] sm:$0xff] %v10127_v30  ;;  %vm355_vm13 = vcmp.gt.f32.partialorder %v10127_v30, 0.5 }
 0x1b1   : > { %v2225_v5 = vsel %vm351_vm9, %v2212_v31, 0.0  ;;  %v2200_v34 = vadd.f32 %v2164_v63, %v1997_v24  ;;  %v1966_v41 = vpop.f32.mrf.mxu1  ;;  %v2258_v6 = vld [vmem:[#allocation3 + $0x2d] sm:$0xff]  ;;  %v1798_v52 = vadd.f32 %v9966_v51, %v1595_v59  ;;  %v1596_v63 = vadd.f32 %v9968_v9, %v9931_v19 }
 0x1b2   : > { %v2460_v57 = vld [vmem:[#allocation3 + $0x2e] sm:$0xff]  ;;  %2238 = vst.msk [vmem:[#allocation3 + $0x40] sm:$0xff] %vm306_vm0, %v2225_v5  ;;  %v1998_v48 = vadd.f32 %v1966_v41, %v1795_v43  ;;  %v7866_v45 = vpop.f32.mrf.mxu0  ;;  %7912 = vmatmul.mubr.msk.f32.gmra.mxu1 %vm306_vm0, %v2258_v6 }
 0x1b3   : > { %7965 = vmatmul.mubr.msk.f32.gmra.mxu0 %vm306_vm0, %v2460_v57  ;;  %v2213_v61 = vmax.f32 %v2200_v34, 0.0  ;;  %v7816_v40 = vpop.f32.mrf.mxu1  ;;  %7914 = vmatprep.mubr.msk.f32.mxu1 %vm8875_vm1, %v11924_v1  ;;  %v10145_v9 = vld [vmem:[%s11922_s7 + $0x58] sm:$0xff] }
 0x1b4   : > { %7967 = vmatprep.mubr.msk.f32.mxu0 %vm8875_vm1, %v11924_v1  ;;  %v2169_v56 = vpop.f32.mrf.mxu0  ;;  %11942 = vst [vmem:[#allocation12_spill] sm:$0xff] %v10145_v9  ;;  %v1799_v40 = vadd.f32 %v9971_v35, %v1596_v63  ;;  %vm356_vm14 = vcmp.gt.f32.partialorder %v10145_v9, 0.5  ;;  %v10161_v35 = vld [vmem:[%s11922_s7 + $0x60] sm:$0xf]  ;;  %v6594_v63 = vld [vmem:[%s11918_s3 + $0x108] sm:$0xff] }
 0x1b5   : > { %v2226_v42 = vsel %vm352_vm10, %v2213_v61, 0.0  ;;  %v2201_v49 = vadd.f32 %v2169_v56, %v1998_v48  ;;  %v1971_v22 = vpop.f32.mrf.mxu1  ;;  %v2259_v44 = vld [vmem:[#allocation3 + $0x35] sm:$0xff]  ;;  %11943 = vst [vmem:[#allocation13_spill] sm:$0xff] %v10161_v35  ;;  %vm357_vm15 = vcmp.gt.f32.partialorder %v10161_v35, 0.5 }
 0x1b6   : > { %v2461_v36 = vld [vmem:[#allocation3 + $0x36] sm:$0xff]  ;;  %2239 = vst.msk [vmem:[#allocation3 + $0x48] sm:$0xff] %vm306_vm0, %v2226_v42  ;;  %v1999_v58 = vadd.f32 %v1971_v22, %v1796_v53  ;;  %v7869_v23 = vpop.f32.mrf.mxu0  ;;  %7915 = vmatmul.mubr.msk.f32.gmra.mxu1 %vm306_vm0, %v2259_v44 }
 0x1b7   : > { %7968 = vmatmul.mubr.msk.f32.gmra.mxu0 %vm306_vm0, %v2461_v36  ;;  %v2214_v27 = vmax.f32 %v2201_v49, 0.0  ;;  %v7819_v28 = vpop.f32.mrf.mxu1  ;;  %7917 = vmatprep.mubr.msk.f32.mxu1 %vm8875_vm1, %v11924_v1 }
 0x1b8   : > { %7970 = vmatprep.mubr.msk.f32.mxu0 %vm8875_vm1, %v11924_v1  ;;  %v2174_v39 = vpop.f32.mrf.mxu0 }
 0x1b9   : > { %v2227_v37 = vsel %vm353_vm11, %v2214_v27, 0.0  ;;  %v2202_v54 = vadd.f32 %v2174_v39, %v1999_v58  ;;  %v1976_v24 = vpop.f32.mrf.mxu1  ;;  %v2260_v3 = vld [vmem:[#allocation3 + $0x3d] sm:$0xff] }
 0x1ba   : > { %v2462_v31 = vld [vmem:[#allocation3 + $0x3e] sm:$0xff]  ;;  %2240 = vst.msk [vmem:[#allocation3 + $0x50] sm:$0xff] %vm306_vm0, %v2227_v37  ;;  %v2000_v55 = vadd.f32 %v1976_v24, %v1797_v25  ;;  %v7872_v43 = vpop.f32.mrf.mxu0  ;;  %7918 = vmatmul.mubr.msk.f32.gmra.mxu1 %vm306_vm0, %v2260_v3 }
 0x1bb   : > { %7971 = vmatmul.mubr.msk.f32.gmra.mxu0 %vm306_vm0, %v2462_v31  ;;  %v2215_v2 = vmax.f32 %v2202_v54, 0.0  ;;  %v7822_v60 = vpop.f32.mrf.mxu1  ;;  %7920 = vmatprep.mubr.msk.f32.mxu1 %vm8875_vm1, %v11924_v1 }
 0x1bc   : > { %7973 = vmatprep.mubr.msk.f32.mxu0 %vm8875_vm1, %v11924_v1  ;;  %v2179_v5 = vpop.f32.mrf.mxu0  ;;  %v6595_v60 = vld [vmem:[%s11918_s3 + $0x110] sm:$0xff] }
 0x1bd   : > { %v2228_v34 = vsel %vm354_vm12, %v2215_v2, 0.0  ;;  %v2203_v41 = vadd.f32 %v2179_v5, %v2000_v55  ;;  %v1981_v6 = vpop.f32.mrf.mxu1  ;;  %v2261_v57 = vld [vmem:[#allocation3 + $0x45] sm:$0xff] }
 0x1be   : > { %v2463_v48 = vld [vmem:[#allocation3 + $0x46] sm:$0xff]  ;;  %2241 = vst.msk [vmem:[#allocation3 + $0x58] sm:$0xff] %vm306_vm0, %v2228_v34  ;;  %v2001_v45 = vadd.f32 %v1981_v6, %v1798_v52  ;;  %v7875_v61 = vpop.f32.mrf.mxu0  ;;  %7921 = vmatmul.mubr.msk.f32.gmra.mxu1 %vm306_vm0, %v2261_v57  ;;  %v2861_v52 = vld [vmem:[#allocation3 + $0xf] sm:$0xff]  ;;  %v2862_v34 = vld [vmem:[#allocation3 + $0x17] sm:$0xff] }
 0x1bf   : > { %7974 = vmatmul.mubr.msk.f32.gmra.mxu0 %vm306_vm0, %v2463_v48  ;;  %v2216_v51 = vmax.f32 %v2203_v41, 0.0  ;;  %v7825_v19 = vpop.f32.mrf.mxu1  ;;  %7923 = vmatprep.mubr.msk.f32.mxu1 %vm8875_vm1, %v11924_v1  ;;  %v2658_v2 = vld [vmem:[#allocation3 + $0x7] sm:$0xff]  ;;  %v6593_v41 = vld [vmem:[%s11918_s3 + $0x100] sm:$0xff]  ;;  %v6592_v48 = vld [vmem:[%s11918_s3 + $0xf8] sm:$0xff] }
 0x1c0   : > { %7976 = vmatprep.mubr.msk.f32.mxu0 %vm8875_vm1, %v11924_v1  ;;  %v2184_v53 = vpop.f32.mrf.mxu0  ;;  %v6615_v5 = vld [vmem:[%s11918_s3 + $0x148] sm:$0xff]  ;;  %v6614_v6 = vld [vmem:[%s11918_s3 + $0x140] sm:$0xff] }
 0x1c1   : > { %v2229_v26 = vsel %vm355_vm13, %v2216_v51, 0.0  ;;  %v2204_v56 = vadd.f32 %v2184_v53, %v2001_v45  ;;  %v1986_v42 = vpop.f32.mrf.mxu1  ;;  %v2262_v49 = vld [vmem:[#allocation3 + $0x4d] sm:$0xff]  ;;  %v2863_v57 = vld [vmem:[#allocation3 + $0x1f] sm:$0xff]  ;;  %v10233_v61 = vld [vmem:[%s11919_s4] ss:$0 sm:$0xff] }
 0x1c2   : > { %v2464_v22 = vld [vmem:[#allocation3 + $0x4e] sm:$0xff]  ;;  %2242 = vst.msk [vmem:[#allocation3 + $0x60] sm:$0xff] %vm306_vm0, %v2229_v26  ;;  %v2002_v44 = vadd.f32 %v1986_v42, %v1799_v40  ;;  %v7878_v36 = vpop.f32.mrf.mxu0  ;;  %7924 = vmatmul.mubr.msk.f32.gmra.mxu1 %vm306_vm0, %v2262_v49 }
 0x1c3   : > { %7977 = vmatmul.mubr.msk.f32.gmra.mxu0 %vm306_vm0, %v2464_v22  ;;  %v2217_v58 = vmax.f32 %v2204_v56, 0.0  ;;  %7926 = vmatprep.mubr.msk.f32.mxu1 %vm8875_vm1, %v11924_v1  ;;  %v7828_v23 = vpop.f32.mrf.mxu1  ;;  %v6613_v45 = vld [vmem:[%s11918_s3 + $0x138] sm:$0xff]  ;;  %v2864_v19 = vld [vmem:[#allocation3 + $0x27] sm:$0xff] }
 0x1c4   : > { %7979 = vmatprep.mubr.msk.f32.mxu0 %vm8875_vm1, %v11924_v1  ;;  %v2189_v27 = vpop.f32.mrf.mxu0  ;;  %v6591_v53 = vld [vmem:[%s11918_s3 + $0xf0] sm:$0xff]  ;;  %v6590_v36 = vld [vmem:[%s11918_s3 + $0xe8] sm:$0xff]  ;;  %v2866_v23 = vld [vmem:[#allocation3 + $0x37] sm:$0xff] }
 0x1c5   : > { %v2230_v28 = vsel %vm356_vm14, %v2217_v58, 0.0  ;;  %v2205_v25 = vadd.f32 %v2189_v27, %v2002_v44  ;;  %v2263_v59 = vld [vmem:[#allocation3 + $0x55] sm:$0xff]  ;;  %v6612_v26 = vld [vmem:[%s11918_s3 + $0x130] sm:$0xff]  ;;  %v6611_v58 = vld [vmem:[%s11918_s3 + $0x128] sm:$0xff] }
 0x1c6   : > { %v2465_v39 = vld [vmem:[#allocation3 + $0x56] sm:$0xff]  ;;  %2243 = vst.msk [vmem:[#allocation3 + $0x68] sm:$0xff] %vm306_vm0, %v2230_v28  ;;  %7927 = vmatmul.mubr.msk.f32.gmra.mxu1 %vm306_vm0, %v2263_v59  ;;  %v7881_v37 = vpop.f32.mrf.mxu0 }
 0x1c7   : > { %7980 = vmatmul.mubr.msk.f32.gmra.mxu0 %vm306_vm0, %v2465_v39  ;;  %v2218_v54 = vmax.f32 %v2205_v25, 0.0  ;;  %7929 = vmatprep.mubr.msk.f32.mxu1 %vm8875_vm1, %v11924_v1  ;;  %v2865_v44 = vld [vmem:[#allocation3 + $0x2f] sm:$0xff]  ;;  %v6589_v27 = vld [vmem:[%s11918_s3 + $0xe0] sm:$0xff]  ;;  %v2868_v39 = vld [vmem:[#allocation3 + $0x47] sm:$0xff] }
 0x1c8   : > { %7982 = vmatprep.mubr.msk.f32.mxu0 %vm8875_vm1, %v11924_v1  ;;  %v6610_v28 = vld [vmem:[%s11918_s3 + $0x120] sm:$0xff]  ;;  %v6609_v59 = vld [vmem:[%s11918_s3 + $0x118] sm:$0xff] }
 0x1c9   : > { %v2231_v24 = vsel %vm357_vm15, %v2218_v54, 0.0  ;;  %v2264_v3 = vld [vmem:[#allocation3 + $0x5d] sm:$0xff]  ;;  %v2869_v37 = vld [vmem:[#allocation3 + $0x4f] sm:$0xff] }
 0x1ca   : > { %v2466_v31 = vld [vmem:[#allocation3 + $0x5e] sm:$0xff]  ;;  %2244 = vst.msk [vmem:[#allocation3 + $0x70] sm:$0xf] %vm370_vm2, %v2231_v24  ;;  %7930 = vmatmul.mubr.msk.f32.gmra.mxu1 %vm306_vm0, %v2264_v3 }
 0x1cb   : > { %7983 = vmatmul.mubr.msk.f32.gmra.mxu0 %vm306_vm0, %v2466_v31  ;;  %7932 = vmatprep.mubr.msk.f32.mxu1 %vm8875_vm1, %v11924_v1  ;;  %v2867_v25 = vld [vmem:[#allocation3 + $0x3f] sm:$0xff]  ;;  %v2870_v54 = vld [vmem:[#allocation3 + $0x57] sm:$0xff] }
 0x1cc   : > { %7985 = vmatprep.mubr.msk.f32.mxu0 %vm8875_vm1, %v11924_v1  ;;  %v2378_v51 = vpop.f32.mrf.mxu1  ;;  %v2871_v24 = vld [vmem:[#allocation3 + $0x5f] sm:$0xff] }
 0x1cd   : > { %v2265_v55 = vld [vmem:[#allocation3 + $0x65] sm:$0xf]  ;;  %v2442_v40 = vadd.f32 %v10233_v61, %v2378_v51 }
 0x1ce   : > { %v2467_v43 = vld [vmem:[#allocation3 + $0x66] sm:$0xf]  ;;  %7933 = vmatmul.mubr.msk.f32.gmra.mxu1 %vm306_vm0, %v2265_v55  ;;  %v2581_v56 = vpop.f32.mrf.mxu0  ;;  %v7898_v42 = vpop.f32.mrf.mxu1 }
 0x1cf   : > { %7986 = vmatmul.mubr.msk.f32.gmra.mxu0 %vm306_vm0, %v2467_v43  ;;  %8002 = vmatprep.mubr.msk.f32.mxu1 %vm8875_vm1, %v11924_v1  ;;  %v10254_v49 = vadd.f32 %v2581_v56, %v2442_v40  ;;  %v2872_v3 = vld [vmem:[#allocation3 + $0x67] sm:$0xff]  ;;  %v6635_v43 = vld [vmem:[%s11918_s3 + $0x180] sm:$0xff]  ;;  %v3068_v56 = vld [vmem:[#allocation3 + $0x30] sm:$0xff] }
 0x1d0   : > { %8055 = vmatprep.mubr.msk.f32.mxu0 %vm8875_vm1, %v11924_v1  ;;  %v7951_v22 = vpop.f32.mrf.mxu0  ;;  %v2670_v31 = vld [vmem:[#allocation3 + $0x67] sm:$0xf]  ;;  %v10401_v42 = vld [vmem:[#allocation3 + $0x31] sm:$0xff] }
 0x1d1   : > { %v2873_v55 = vld [vmem:[#allocation3 + $0x6f] sm:$0xf]  ;;  %v6653_v51 = vld [vmem:[%s11918_s3 + $0x1a8] sm:$0xff] }
 0x1d2   : > { %8003 = vmatmul.mubr.msk.f32.vlgmr.msra.gmra.mxu1 %vm306_vm0, %v2658_v2  ;;  %v3064_v2 = vld [vmem:[#allocation3 + $0x10] sm:$0xff] }
 0x1d3   : > { %8056 = vmatmul.mubr.msk.f32.vlgmr.msra.gmra.mxu0 %vm306_vm0, %v2861_v52  ;;  %8095 = vmatpush3.msra.mxu1 %v6595_v60  ;;  %v3267_v60 = vld [vmem:[#allocation3 + $0x11] sm:$0xff]  ;;  %v10384_v40 = vld [vmem:[#allocation3 + $0x29] sm:$0xff] }
 0x1d4   : > { %8005 = vmatprep.mubr.msk.f32.mxu1 %vm8875_vm1, %v11924_v1  ;;  %8058 = vmatprep.mubr.msk.f32.mxu0 %vm8875_vm1, %v11924_v1  ;;  %v6630_v22 = vld [vmem:[%s11918_s3 + $0x158] sm:$0xff] }
 0x1d5   : > { %8096 = vmatprep.subr.mxu1 %v11924_v1  ;;  %8148 = vmatpush3.msra.mxu0 %v6615_v5  ;;  %v3065_v5 = vld [vmem:[#allocation3 + $0x18] sm:$0xff] }
 0x1d6   : > { %8097 = vmatpush3.msra.mxu1 %v6594_v63  ;;  %8149 = vmatprep.subr.mxu0 %v11924_v1  ;;  %v6655_v63 = vld [vmem:[%s11918_s3 + $0x1b8] sm:$0xff] }
 0x1d7   : > { %8006 = vmatmul.mubr.msk.f32.gmra.mxu1 %vm306_vm0, %v2861_v52  ;;  %8059 = vmatmul.mubr.msk.f32.gmra.mxu0 %vm306_vm0, %v2862_v34  ;;  %v6634_v52 = vld [vmem:[%s11918_s3 + $0x178] sm:$0xff] }
 0x1d8   : > { %8008 = vmatprep.mubr.msk.f32.mxu1 %vm8875_vm1, %v11924_v1  ;;  %8061 = vmatprep.mubr.msk.f32.mxu0 %vm8875_vm1, %v11924_v1 }
 0x1d9   : > { %8098 = vmatprep.subr.mxu1 %v11924_v1  ;;  %8150 = vmatpush3.msra.mxu0 %v6614_v6  ;;  %v6654_v6 = vld [vmem:[%s11918_s3 + $0x1b0] sm:$0xff] }
 0x1da   : > { %8099 = vmatpush3.msra.mxu1 %v6593_v41  ;;  %8151 = vmatprep.subr.mxu0 %v11924_v1  ;;  %v6633_v41 = vld [vmem:[%s11918_s3 + $0x170] sm:$0xff] }
 0x1db   : > { %8009 = vmatmul.mubr.msk.f32.gmra.mxu1 %vm306_vm0, %v2862_v34  ;;  %8062 = vmatmul.mubr.msk.f32.gmra.mxu0 %vm306_vm0, %v2863_v57  ;;  %v10350_v34 = vld [vmem:[#allocation3 + $0x19] sm:$0xff] }
 0x1dc   : > { %8011 = vmatprep.mubr.msk.f32.mxu1 %vm8875_vm1, %v11924_v1  ;;  %8064 = vmatprep.mubr.msk.f32.mxu0 %vm8875_vm1, %v11924_v1 }
 0x1dd   : > { %8100 = vmatprep.subr.mxu1 %v11924_v1  ;;  %8152 = vmatpush3.msra.mxu0 %v6613_v45  ;;  %v6632_v45 = vld [vmem:[%s11918_s3 + $0x168] sm:$0xff] }
 0x1de   : > { %8101 = vmatpush3.msra.mxu1 %v6592_v48  ;;  %8153 = vmatprep.subr.mxu0 %v11924_v1  ;;  %v10367_v48 = vld [vmem:[#allocation3 + $0x21] sm:$0xff] }
 0x1df   : > { %8012 = vmatmul.mubr.msk.f32.gmra.mxu1 %vm306_vm0, %v2863_v57  ;;  %8065 = vmatmul.mubr.msk.f32.gmra.mxu0 %vm306_vm0, %v2864_v19  ;;  %v3066_v57 = vld [vmem:[#allocation3 + $0x20] sm:$0xff] }
 0x1e0   : > { %8014 = vmatprep.mubr.msk.f32.mxu1 %vm8875_vm1, %v11924_v1  ;;  %8067 = vmatprep.mubr.msk.f32.mxu0 %vm8875_vm1, %v11924_v1 }
 0x1e1   : > { %8102 = vmatprep.subr.mxu1 %v11924_v1  ;;  %8154 = vmatpush3.msra.mxu0 %v6612_v26  ;;  %v6652_v26 = vld [vmem:[%s11918_s3 + $0x1a0] sm:$0xff] }
 0x1e2   : > { %8103 = vmatpush3.msra.mxu1 %v6591_v53  ;;  %8155 = vmatprep.subr.mxu0 %v11924_v1  ;;  %v6631_v53 = vld [vmem:[%s11918_s3 + $0x160] sm:$0xff] }
 0x1e3   : > { %8015 = vmatmul.mubr.msk.f32.gmra.mxu1 %vm306_vm0, %v2864_v19  ;;  %8068 = vmatmul.mubr.msk.f32.gmra.mxu0 %vm306_vm0, %v2865_v44  ;;  %v3067_v19 = vld [vmem:[#allocation3 + $0x28] sm:$0xff] }
 0x1e4   : > { %8017 = vmatprep.mubr.msk.f32.mxu1 %vm8875_vm1, %v11924_v1  ;;  %8070 = vmatprep.mubr.msk.f32.mxu0 %vm8875_vm1, %v11924_v1 }
 0x1e5   : > { %8104 = vmatprep.subr.mxu1 %v11924_v1  ;;  %8156 = vmatpush3.msra.mxu0 %v6611_v58  ;;  %v10418_v58 = vld [vmem:[#allocation3 + $0x39] sm:$0xff] }
 0x1e6   : > { %8105 = vmatpush3.msra.mxu1 %v6590_v36  ;;  %8157 = vmatprep.subr.mxu0 %v11924_v1  ;;  %v3069_v36 = vld [vmem:[#allocation3 + $0x38] sm:$0xff] }
 0x1e7   : > { %8018 = vmatmul.mubr.msk.f32.gmra.mxu1 %vm306_vm0, %v2865_v44  ;;  %8071 = vmatmul.mubr.msk.f32.gmra.mxu0 %vm306_vm0, %v2866_v23  ;;  %v6651_v44 = vld [vmem:[%s11918_s3 + $0x198] sm:$0xff] }
 0x1e8   : > { %8020 = vmatprep.mubr.msk.f32.mxu1 %vm8875_vm1, %v11924_v1  ;;  %8073 = vmatprep.mubr.msk.f32.mxu0 %vm8875_vm1, %v11924_v1 }
 0x1e9   : > { %8106 = vmatprep.subr.mxu1 %v11924_v1  ;;  %8158 = vmatpush3.msra.mxu0 %v6610_v28  ;;  %v3070_v28 = vld [vmem:[#allocation3 + $0x40] sm:$0xff] }
 0x1ea   : > { %8107 = vmatpush3.msra.mxu1 %v6589_v27  ;;  %8159 = vmatprep.subr.mxu0 %v11924_v1  ;;  %v6650_v27 = vld [vmem:[%s11918_s3 + $0x190] sm:$0xff] }
 0x1eb   : > { %8021 = vmatmul.mubr.msk.f32.gmra.mxu1 %vm306_vm0, %v2866_v23  ;;  %8074 = vmatmul.mubr.msk.f32.gmra.mxu0 %vm306_vm0, %v2867_v25  ;;  %v6629_v23 = vld [vmem:[%s11918_s3 + $0x150] sm:$0xff] }
 0x1ec   : > { %8023 = vmatprep.mubr.msk.f32.mxu1 %vm8875_vm1, %v11924_v1  ;;  %8076 = vmatprep.mubr.msk.f32.mxu0 %vm8875_vm1, %v11924_v1 }
 0x1ed   : > { %8200 = vmatprep.subr.mxu1 %v11924_v1  ;;  %8160 = vmatpush3.msra.mxu0 %v6609_v59  ;;  %v6649_v59 = vld [vmem:[%s11918_s3 + $0x188] sm:$0xff] }
 0x1ee   : > { %8253 = vmatprep.subr.mxu0 %v11924_v1 }
 0x1ef   : > { %8024 = vmatmul.mubr.msk.f32.gmra.mxu1 %vm306_vm0, %v2867_v25  ;;  %8077 = vmatmul.mubr.msk.f32.gmra.mxu0 %vm306_vm0, %v2868_v39  ;;  %v10435_v25 = vld [vmem:[#allocation3 + $0x41] sm:$0xff] }
 0x1f0   : > { %8026 = vmatprep.mubr.msk.f32.mxu1 %vm8875_vm1, %v11924_v1  ;;  %8079 = vmatprep.mubr.msk.f32.mxu0 %vm8875_vm1, %v11924_v1 }
 0x1f3   : > { %8027 = vmatmul.mubr.msk.f32.gmra.mxu1 %vm306_vm0, %v2868_v39  ;;  %8080 = vmatmul.mubr.msk.f32.gmra.mxu0 %vm306_vm0, %v2869_v37  ;;  %v3071_v39 = vld [vmem:[#allocation3 + $0x48] sm:$0xff] }
 0x1f4   : > { %8029 = vmatprep.mubr.msk.f32.mxu1 %vm8875_vm1, %v11924_v1  ;;  %8082 = vmatprep.mubr.msk.f32.mxu0 %vm8875_vm1, %v11924_v1 }
 0x1f7   : > { %8030 = vmatmul.mubr.msk.f32.gmra.mxu1 %vm306_vm0, %v2869_v37  ;;  %8083 = vmatmul.mubr.msk.f32.gmra.mxu0 %vm306_vm0, %v2870_v54  ;;  %v10449_v37 = vld [vmem:[#allocation3 + $0x49] sm:$0xff] }
 0x1f8   : > { %8032 = vmatprep.mubr.msk.f32.mxu1 %vm8875_vm1, %v11924_v1  ;;  %8085 = vmatprep.mubr.msk.f32.mxu0 %vm8875_vm1, %v11924_v1 }
 0x1fb   : > { %8033 = vmatmul.mubr.msk.f32.gmra.mxu1 %vm306_vm0, %v2870_v54  ;;  %8086 = vmatmul.mubr.msk.f32.gmra.mxu0 %vm306_vm0, %v2871_v24  ;;  %v3072_v54 = vld [vmem:[#allocation3 + $0x50] sm:$0xff] }
 0x1fc   : > { %8035 = vmatprep.mubr.msk.f32.mxu1 %vm8875_vm1, %v11924_v1  ;;  %8088 = vmatprep.mubr.msk.f32.mxu0 %vm8875_vm1, %v11924_v1 }
 0x1ff   : > { %8036 = vmatmul.mubr.msk.f32.gmra.mxu1 %vm306_vm0, %v2871_v24  ;;  %8089 = vmatmul.mubr.msk.f32.gmra.mxu0 %vm306_vm0, %v2872_v3  ;;  %v10459_v24 = vld [vmem:[#allocation3 + $0x51] sm:$0xff] }
 0x200   : > { %8038 = vmatprep.mubr.msk.f32.mxu1 %vm8875_vm1, %v11924_v1  ;;  %8091 = vmatprep.mubr.msk.f32.mxu0 %vm8875_vm1, %v11924_v1  ;;  %v3073_v3 = vld [vmem:[#allocation3 + $0x58] sm:$0xff] }
 0x203   : > { %8039 = vmatmul.mubr.msk.f32.gmra.mxu1 %vm306_vm0, %v2670_v31  ;;  %8092 = vmatmul.mubr.msk.f32.gmra.mxu0 %vm306_vm0, %v2873_v55  ;;  %v10468_v31 = vld [vmem:[#allocation3 + $0x59] sm:$0xff] }
 0x204   : > { %8108 = vmatprep.mubr.msk.f32.mxu1 %vm8875_vm1, %v11924_v1  ;;  %8161 = vmatprep.mubr.msk.f32.mxu0 %vm8875_vm1, %v11924_v1  ;;  %v3074_v55 = vld [vmem:[#allocation3 + $0x60] sm:$0xff] }
 0x207   : > { %8109 = vmatmul.mubr.msk.f32.vlgmr.msra.gmra.mxu1 %vm306_vm0, %v3064_v2  ;;  %8162 = vmatmul.mubr.msk.f32.vlgmr.msra.gmra.mxu0 %vm306_vm0, %v3267_v60  ;;  %v3075_v2 = vld [vmem:[#allocation3 + $0x68] sm:$0xff] }
 0x208   : > { %8201 = vmatpush3.msra.mxu1 %v6635_v43  ;;  %8111 = vmatprep.mubr.msk.f32.mxu1 %vm8875_vm1, %v11924_v1  ;;  %v10477_v43 = vld [vmem:[#allocation3 + $0x61] sm:$0xff]  ;;  %v10486_v60 = vld [vmem:[#allocation3 + $0x69] sm:$0xff] }
 0x209   : > { %8164 = vmatprep.mubr.msk.f32.mxu0 %vm8875_vm1, %v11924_v1  ;;  %8202 = vmatprep.subr.mxu1 %v11924_v1 }
 0x20a   : > { %8203 = vmatpush3.msra.mxu1 %v6634_v52  ;;  %8254 = vmatpush3.msra.mxu0 %v6655_v63  ;;  %v3076_v52 = vld [vmem:[#allocation3 + $0x70] sm:$0xf] }
 0x20b   : > { %8112 = vmatmul.mubr.msk.f32.gmra.mxu1 %vm306_vm0, %v3065_v5  ;;  %8165 = vmatmul.mubr.msk.f32.gmra.mxu0 %vm306_vm0, %v10350_v34  ;;  %v3279_v63 = vld [vmem:[#allocation3 + $0x71] sm:$0xf]  ;;  %v6675_v5 = vld [vmem:[%s11918_s3 + $0x1f0] sm:$0xff] }
 0x20c   : > { %8114 = vmatprep.mubr.msk.f32.mxu1 %vm8875_vm1, %v11924_v1  ;;  %8167 = vmatprep.mubr.msk.f32.mxu0 %vm8875_vm1, %v11924_v1 }
 0x20d   : > { %8204 = vmatprep.subr.mxu1 %v11924_v1  ;;  %8255 = vmatprep.subr.mxu0 %v11924_v1 }
 0x20e   : > { %8205 = vmatpush3.msra.mxu1 %v6633_v41  ;;  %8256 = vmatpush3.msra.mxu0 %v6654_v6  ;;  %v3673_v41 = vld [vmem:[#allocation3 + $0x1a] sm:$0xff] }
 0x20f   : > { %8115 = vmatmul.mubr.msk.f32.gmra.mxu1 %vm306_vm0, %v3066_v57  ;;  %8168 = vmatmul.mubr.msk.f32.gmra.mxu0 %vm306_vm0, %v10367_v48  ;;  %v6674_v6 = vld [vmem:[%s11918_s3 + $0x1e8] sm:$0xff] }
 0x210   : > { %8117 = vmatprep.mubr.msk.f32.mxu1 %vm8875_vm1, %v11924_v1  ;;  %8170 = vmatprep.mubr.msk.f32.mxu0 %vm8875_vm1, %v11924_v1  ;;  %v3674_v57 = vld [vmem:[#allocation3 + $0x22] sm:$0xff] }
 0x211   : > { %8206 = vmatprep.subr.mxu1 %v11924_v1  ;;  %8257 = vmatprep.subr.mxu0 %v11924_v1 }
 0x212   : > { %8207 = vmatpush3.msra.mxu1 %v6632_v45  ;;  %8258 = vmatpush3.msra.mxu0 %v6653_v51  ;;  %v3675_v45 = vld [vmem:[#allocation3 + $0x2a] sm:$0xff]  ;;  %v3676_v51 = vld [vmem:[#allocation3 + $0x32] sm:$0xff] }
 0x213   : > { %8118 = vmatmul.mubr.msk.f32.gmra.mxu1 %vm306_vm0, %v3067_v19  ;;  %8171 = vmatmul.mubr.msk.f32.gmra.mxu0 %vm306_vm0, %v10384_v40  ;;  %v6671_v19 = vld [vmem:[%s11918_s3 + $0x1d0] sm:$0xff] }
 0x214   : > { %8120 = vmatprep.mubr.msk.f32.mxu1 %vm8875_vm1, %v11924_v1  ;;  %8173 = vmatprep.mubr.msk.f32.mxu0 %vm8875_vm1, %v11924_v1 }
 0x215   : > { %8208 = vmatprep.subr.mxu1 %v11924_v1  ;;  %8259 = vmatprep.subr.mxu0 %v11924_v1 }
 0x216   : > { %8209 = vmatpush3.msra.mxu1 %v6631_v53  ;;  %8260 = vmatpush3.msra.mxu0 %v6652_v26  ;;  %v6670_v53 = vld [vmem:[%s11918_s3 + $0x1c8] sm:$0xff] }
 0x217   : > { %8121 = vmatmul.mubr.msk.f32.gmra.mxu1 %vm306_vm0, %v3068_v56  ;;  %8174 = vmatmul.mubr.msk.f32.gmra.mxu0 %vm306_vm0, %v10401_v42  ;;  %v3678_v26 = vld [vmem:[#allocation3 + $0x42] sm:$0xff]  ;;  %v6669_v56 = vld [vmem:[%s11918_s3 + $0x1c0] sm:$0xff] }
 0x218   : > { %8123 = vmatprep.mubr.msk.f32.mxu1 %vm8875_vm1, %v11924_v1  ;;  %8176 = vmatprep.mubr.msk.f32.mxu0 %vm8875_vm1, %v11924_v1 }
 0x219   : > { %8210 = vmatprep.subr.mxu1 %v11924_v1  ;;  %8261 = vmatprep.subr.mxu0 %v11924_v1 }
 0x21a   : > { %8211 = vmatpush3.msra.mxu1 %v6630_v22  ;;  %8262 = vmatpush3.msra.mxu0 %v6651_v44  ;;  %v3680_v22 = vld [vmem:[#allocation3 + $0x52] sm:$0xff]  ;;  %v3681_v44 = vld [vmem:[#allocation3 + $0x5a] sm:$0xff] }
 0x21b   : > { %8124 = vmatmul.mubr.msk.f32.gmra.mxu1 %vm306_vm0, %v3069_v36  ;;  %8177 = vmatmul.mubr.msk.f32.gmra.mxu0 %vm306_vm0, %v10418_v58  ;;  %v3682_v36 = vld [vmem:[#allocation3 + $0x62] sm:$0xff] }
 0x21c   : > { %8126 = vmatprep.mubr.msk.f32.mxu1 %vm8875_vm1, %v11924_v1  ;;  %8179 = vmatprep.mubr.msk.f32.mxu0 %vm8875_vm1, %v11924_v1 }
 0x21d   : > { %8212 = vmatprep.subr.mxu1 %v11924_v1  ;;  %8263 = vmatprep.subr.mxu0 %v11924_v1 }
 0x21e   : > { %8213 = vmatpush3.msra.mxu1 %v6629_v23  ;;  %8264 = vmatpush3.msra.mxu0 %v6650_v27 }
 0x21f   : > { %8127 = vmatmul.mubr.msk.f32.gmra.mxu1 %vm306_vm0, %v3070_v28  ;;  %8180 = vmatmul.mubr.msk.f32.gmra.mxu0 %vm306_vm0, %v10435_v25 }
 0x220   : > { %8129 = vmatprep.mubr.msk.f32.mxu1 %vm8875_vm1, %v11924_v1  ;;  %8182 = vmatprep.mubr.msk.f32.mxu0 %vm8875_vm1, %v11924_v1 }
 0x221   : > { %8265 = vmatprep.subr.mxu0 %v11924_v1  ;;  %8306 = vmatprep.subr.mxu1 %v11924_v1 }
 0x222   : > { %8266 = vmatpush3.msra.mxu0 %v6649_v59 }
 0x223   : > { %8130 = vmatmul.mubr.msk.f32.gmra.mxu1 %vm306_vm0, %v3071_v39  ;;  %8183 = vmatmul.mubr.msk.f32.gmra.mxu0 %vm306_vm0, %v10449_v37 }
 0x224   : > { %8132 = vmatprep.mubr.msk.f32.mxu1 %vm8875_vm1, %v11924_v1  ;;  %8185 = vmatprep.mubr.msk.f32.mxu0 %vm8875_vm1, %v11924_v1 }
 0x225   : > { %8359 = vmatprep.subr.mxu0 %v11924_v1 }
 0x227   : > { %8133 = vmatmul.mubr.msk.f32.gmra.mxu1 %vm306_vm0, %v3072_v54  ;;  %8186 = vmatmul.mubr.msk.f32.gmra.mxu0 %vm306_vm0, %v10459_v24  ;;  %v3684_v54 = vld [vmem:[#allocation3 + $0x72] sm:$0xff] }
 0x228   : > { %8135 = vmatprep.mubr.msk.f32.mxu1 %vm8875_vm1, %v11924_v1  ;;  %8188 = vmatprep.mubr.msk.f32.mxu0 %vm8875_vm1, %v11924_v1 }
 0x22b   : > { %8136 = vmatmul.mubr.msk.f32.gmra.mxu1 %vm306_vm0, %v3073_v3  ;;  %8189 = vmatmul.mubr.msk.f32.gmra.mxu0 %vm306_vm0, %v10468_v31 }
 0x22c   : > { %8138 = vmatprep.mubr.msk.f32.mxu1 %vm8875_vm1, %v11924_v1  ;;  %8191 = vmatprep.mubr.msk.f32.mxu0 %vm8875_vm1, %v11924_v1 }
 0x22f   : > { %8139 = vmatmul.mubr.msk.f32.gmra.mxu1 %vm306_vm0, %v3074_v55  ;;  %8192 = vmatmul.mubr.msk.f32.gmra.mxu0 %vm306_vm0, %v10477_v43  ;;  %v3482_v55 = vld [vmem:[#allocation3 + $0x79] sm:$0xf] }
 0x230   : > { %8141 = vmatprep.mubr.msk.f32.mxu1 %vm8875_vm1, %v11924_v1  ;;  %8194 = vmatprep.mubr.msk.f32.mxu0 %vm8875_vm1, %v11924_v1 }
 0x233   : > { %8142 = vmatmul.mubr.msk.f32.gmra.mxu1 %vm306_vm0, %v3075_v2  ;;  %8195 = vmatmul.mubr.msk.f32.gmra.mxu0 %vm306_vm0, %v10486_v60 }
 0x234   : > { %8144 = vmatprep.mubr.msk.f32.mxu1 %vm8875_vm1, %v11924_v1  ;;  %8197 = vmatprep.mubr.msk.f32.mxu0 %vm8875_vm1, %v11924_v1 }
 0x237   : > { %8145 = vmatmul.mubr.msk.f32.gmra.mxu1 %vm306_vm0, %v3076_v52  ;;  %8198 = vmatmul.mubr.msk.f32.gmra.mxu0 %vm306_vm0, %v3279_v63 }
 0x238   : > { %8214 = vmatprep.mubr.msk.f32.mxu1 %vm8875_vm1, %v11924_v1  ;;  %8267 = vmatprep.mubr.msk.f32.mxu0 %vm8875_vm1, %v11924_v1 }
 0x23b   : > { %8215 = vmatmul.mubr.msk.f32.vlgmr.msra.gmra.mxu1 %vm306_vm0, %v10350_v34  ;;  %8268 = vmatmul.mubr.msk.f32.vlgmr.msra.gmra.mxu0 %vm306_vm0, %v3673_v41  ;;  %v6673_v34 = vld [vmem:[%s11918_s3 + $0x1e0] sm:$0xff] }
 0x23c   : > { %8307 = vmatpush3.msra.mxu1 %v6675_v5  ;;  %8217 = vmatprep.mubr.msk.f32.mxu1 %vm8875_vm1, %v11924_v1 }
 0x23d   : > { %8270 = vmatprep.mubr.msk.f32.mxu0 %vm8875_vm1, %v11924_v1  ;;  %8308 = vmatprep.subr.mxu1 %v11924_v1 }
 0x23e   : > { %8309 = vmatpush3.msra.mxu1 %v6674_v6 }
 0x23f   : > { %8218 = vmatmul.mubr.msk.f32.gmra.mxu1 %vm306_vm0, %v10367_v48  ;;  %8271 = vmatmul.mubr.msk.f32.gmra.mxu0 %vm306_vm0, %v3674_v57  ;;  %v6672_v48 = vld [vmem:[%s11918_s3 + $0x1d8] sm:$0xff] }
 0x240   : > { %8220 = vmatprep.mubr.msk.f32.mxu1 %vm8875_vm1, %v11924_v1  ;;  %8273 = vmatprep.mubr.msk.f32.mxu0 %vm8875_vm1, %v11924_v1 }
 0x241   : > { %8310 = vmatprep.subr.mxu1 %v11924_v1 }
 0x242   : > { %8311 = vmatpush3.msra.mxu1 %v6673_v34 }
 0x243   : > { %8221 = vmatmul.mubr.msk.f32.gmra.mxu1 %vm306_vm0, %v10384_v40  ;;  %8274 = vmatmul.mubr.msk.f32.gmra.mxu0 %vm306_vm0, %v3675_v45  ;;  %v3677_v40 = vld [vmem:[#allocation3 + $0x3a] sm:$0xff] }
 0x244   : > { %8223 = vmatprep.mubr.msk.f32.mxu1 %vm8875_vm1, %v11924_v1  ;;  %8276 = vmatprep.mubr.msk.f32.mxu0 %vm8875_vm1, %v11924_v1  ;;  %v3876_v45 = vld [vmem:[#allocation3 + $0x1b] sm:$0xff] }
 0x245   : > { %8312 = vmatprep.subr.mxu1 %v11924_v1 }
 0x246   : > { %8313 = vmatpush3.msra.mxu1 %v6672_v48 }
 0x247   : > { %8224 = vmatmul.mubr.msk.f32.gmra.mxu1 %vm306_vm0, %v10401_v42  ;;  %8277 = vmatmul.mubr.msk.f32.gmra.mxu0 %vm306_vm0, %v3676_v51  ;;  %v3679_v42 = vld [vmem:[#allocation3 + $0x4a] sm:$0xff] }
 0x248   : > { %8226 = vmatprep.mubr.msk.f32.mxu1 %vm8875_vm1, %v11924_v1  ;;  %8279 = vmatprep.mubr.msk.f32.mxu0 %vm8875_vm1, %v11924_v1 }
 0x249   : > { %8314 = vmatprep.subr.mxu1 %v11924_v1 }
 0x24a   : > { %8315 = vmatpush3.msra.mxu1 %v6671_v19 }
 0x24b   : > { %8227 = vmatmul.mubr.msk.f32.gmra.mxu1 %vm306_vm0, %v10418_v58  ;;  %8280 = vmatmul.mubr.msk.f32.gmra.mxu0 %vm306_vm0, %v3677_v40  ;;  %v3683_v58 = vld [vmem:[#allocation3 + $0x6a] sm:$0xff] }
 0x24c   : > { %8229 = vmatprep.mubr.msk.f32.mxu1 %vm8875_vm1, %v11924_v1  ;;  %8282 = vmatprep.mubr.msk.f32.mxu0 %vm8875_vm1, %v11924_v1 }
 0x24d   : > { %8316 = vmatprep.subr.mxu1 %v11924_v1 }
 0x24e   : > { %8317 = vmatpush3.msra.mxu1 %v6670_v53 }
 0x24f   : > { %8230 = vmatmul.mubr.msk.f32.gmra.mxu1 %vm306_vm0, %v10435_v25  ;;  %8283 = vmatmul.mubr.msk.f32.gmra.mxu0 %vm306_vm0, %v3678_v26 }
 0x250   : > { %8232 = vmatprep.mubr.msk.f32.mxu1 %vm8875_vm1, %v11924_v1  ;;  %8285 = vmatprep.mubr.msk.f32.mxu0 %vm8875_vm1, %v11924_v1 }
 0x251   : > { %8318 = vmatprep.subr.mxu1 %v11924_v1 }
 0x252   : > { %8319 = vmatpush3.msra.mxu1 %v6669_v56  ;;  %v3877_v56 = vld [vmem:[#allocation3 + $0x23] sm:$0xff] }
 0x253   : > { %8233 = vmatmul.mubr.msk.f32.gmra.mxu1 %vm306_vm0, %v10449_v37  ;;  %8286 = vmatmul.mubr.msk.f32.gmra.mxu0 %vm306_vm0, %v3679_v42  ;;  %v3481_v37 = vld [vmem:[#allocation3 + $0x71] sm:$0xff] }
 0x254   : > { %8235 = vmatprep.mubr.msk.f32.mxu1 %vm8875_vm1, %v11924_v1  ;;  %8288 = vmatprep.mubr.msk.f32.mxu0 %vm8875_vm1, %v11924_v1 }
 0x255   : > { %8412 = vmatprep.subr.mxu1 %v11924_v1 }
 0x257   : > { %8236 = vmatmul.mubr.msk.f32.gmra.mxu1 %vm306_vm0, %v10459_v24  ;;  %8289 = vmatmul.mubr.msk.f32.gmra.mxu0 %vm306_vm0, %v3680_v22 }
 0x258   : > { %8238 = vmatprep.mubr.msk.f32.mxu1 %vm8875_vm1, %v11924_v1  ;;  %8291 = vmatprep.mubr.msk.f32.mxu0 %vm8875_vm1, %v11924_v1 }
 0x25b   : > { %8239 = vmatmul.mubr.msk.f32.gmra.mxu1 %vm306_vm0, %v10468_v31  ;;  %8292 = vmatmul.mubr.msk.f32.gmra.mxu0 %vm306_vm0, %v3681_v44 }
 0x25c   : > { %8241 = vmatprep.mubr.msk.f32.mxu1 %vm8875_vm1, %v11924_v1  ;;  %8294 = vmatprep.mubr.msk.f32.mxu0 %vm8875_vm1, %v11924_v1 }
 0x25f   : > { %8242 = vmatmul.mubr.msk.f32.gmra.mxu1 %vm306_vm0, %v10477_v43  ;;  %8295 = vmatmul.mubr.msk.f32.gmra.mxu0 %vm306_vm0, %v3682_v36  ;;  %v3685_v43 = vld [vmem:[#allocation3 + $0x7a] sm:$0xf] }
 0x260   : > { %8244 = vmatprep.mubr.msk.f32.mxu1 %vm8875_vm1, %v11924_v1  ;;  %8297 = vmatprep.mubr.msk.f32.mxu0 %vm8875_vm1, %v11924_v1 }
 0x262   : > { %v2383_v23 = vpop.f32.mrf.mxu1 }
 0x263   : > { %v2586_v27 = vpop.f32.mrf.mxu0  ;;  %8245 = vmatmul.mubr.msk.f32.gmra.mxu1 %vm306_vm0, %v10486_v60  ;;  %8298 = vmatmul.mubr.msk.f32.gmra.mxu0 %vm306_vm0, %v3683_v58  ;;  %v2443_v28 = vadd.f32 %v10233_v61, %v2383_v23 }
 0x264   : > { %8247 = vmatprep.mubr.msk.f32.mxu1 %vm8875_vm1, %v11924_v1  ;;  %8300 = vmatprep.mubr.msk.f32.mxu0 %vm8875_vm1, %v11924_v1  ;;  %v7901_v25 = vpop.f32.mrf.mxu1 }
 0x265   : > { %v7954_v59 = vpop.f32.mrf.mxu0  ;;  %v10607_v39 = vadd.f32 %v2586_v27, %v2443_v28  ;;  %v3878_v27 = vld [vmem:[#allocation3 + $0x2b] sm:$0xff] }
 0x266   : > { %v2388_v24 = vpop.f32.mrf.mxu1 }
 0x267   : > { %v2591_v3 = vpop.f32.mrf.mxu0  ;;  %8248 = vmatmul.mubr.msk.f32.gmra.mxu1 %vm306_vm0, %v3481_v37  ;;  %8301 = vmatmul.mubr.msk.f32.gmra.mxu0 %vm306_vm0, %v3684_v54  ;;  %v2444_v31 = vadd.f32 %v10233_v61, %v2388_v24 }
 0x268   : > { %8250 = vmatprep.mubr.msk.f32.mxu1 %vm8875_vm1, %v11924_v1  ;;  %8303 = vmatprep.mubr.msk.f32.mxu0 %vm8875_vm1, %v11924_v1  ;;  %v7904_v2 = vpop.f32.mrf.mxu1 }
 0x269   : > { %v7957_v60 = vpop.f32.mrf.mxu0  ;;  %v10616_v52 = vadd.f32 %v2591_v3, %v2444_v31  ;;  %v3879_v3 = vld [vmem:[#allocation3 + $0x33] sm:$0xff] }
 0x26a   : > { %v2393_v63 = vpop.f32.mrf.mxu1 }
 0x26b   : > { %v2596_v5 = vpop.f32.mrf.mxu0  ;;  %8251 = vmatmul.mubr.msk.f32.gmra.mxu1 %vm306_vm0, %v3482_v55  ;;  %8304 = vmatmul.mubr.msk.f32.gmra.mxu0 %vm306_vm0, %v3685_v43  ;;  %v2445_v41 = vadd.f32 %v10233_v61, %v2393_v63 }
 0x26c   : > { %8320 = vmatprep.mubr.msk.f32.mxu1 %vm8875_vm1, %v11924_v1  ;;  %8373 = vmatprep.mubr.msk.f32.mxu0 %vm8875_vm1, %v11924_v1  ;;  %v7907_v6 = vpop.f32.mrf.mxu1 }
 0x26d   : > { %v7960_v57 = vpop.f32.mrf.mxu0  ;;  %v10625_v34 = vadd.f32 %v2596_v5, %v2445_v41  ;;  %v3880_v5 = vld [vmem:[#allocation3 + $0x3b] sm:$0xff] }
 0x26e   : > { %v2398_v48 = vpop.f32.mrf.mxu1 }
 0x26f   : > { %v2601_v51 = vpop.f32.mrf.mxu0  ;;  %8321 = vmatmul.mubr.msk.f32.vlgmr.msra.gmra.mxu1 %vm306_vm0, %v3876_v45  ;;  %v2446_v19 = vadd.f32 %v10233_v61, %v2398_v48 }
 0x270   : > { %8323 = vmatprep.mubr.msk.f32.mxu1 %vm8875_vm1, %v11924_v1  ;;  %v7910_v40 = vpop.f32.mrf.mxu1 }
 0x271   : > { %v7963_v53 = vpop.f32.mrf.mxu0  ;;  %v10631_v26 = vadd.f32 %v2601_v51, %v2446_v19  ;;  %v3881_v19 = vld [vmem:[#allocation3 + $0x43] sm:$0xff] }
 0x272   : > { %v2403_v42 = vpop.f32.mrf.mxu1 }
 0x273   : > { %v2606_v22 = vpop.f32.mrf.mxu0  ;;  %8324 = vmatmul.mubr.msk.f32.gmra.mxu1 %vm306_vm0, %v3877_v56  ;;  %v2447_v44 = vadd.f32 %v10233_v61, %v2403_v42 }
 0x274   : > { %8326 = vmatprep.mubr.msk.f32.mxu1 %vm8875_vm1, %v11924_v1  ;;  %v7913_v36 = vpop.f32.mrf.mxu1 }
 0x275   : > { %v7966_v58 = vpop.f32.mrf.mxu0  ;;  %v10637_v23 = vadd.f32 %v2606_v22, %v2447_v44  ;;  %v3882_v36 = vld [vmem:[#allocation3 + $0x4b] sm:$0xff] }
 0x276   : > { %v2408_v28 = vpop.f32.mrf.mxu1 }
 0x277   : > { %v2611_v25 = vpop.f32.mrf.mxu0  ;;  %8327 = vmatmul.mubr.msk.f32.gmra.mxu1 %vm306_vm0, %v3878_v27  ;;  %v2448_v59 = vadd.f32 %v10233_v61, %v2408_v28 }
 0x278   : > { %8329 = vmatprep.mubr.msk.f32.mxu1 %vm8875_vm1, %v11924_v1  ;;  %v7916_v37 = vpop.f32.mrf.mxu1 }
 0x279   : > { %v7969_v54 = vpop.f32.mrf.mxu0  ;;  %v10643_v24 = vadd.f32 %v2611_v25, %v2448_v59 }
 0x27a   : > { %v2413_v31 = vpop.f32.mrf.mxu1  ;;  %v3883_v54 = vld [vmem:[#allocation3 + $0x53] sm:$0xff] }
 0x27b   : > { %v2616_v55 = vpop.f32.mrf.mxu0  ;;  %8330 = vmatmul.mubr.msk.f32.gmra.mxu1 %vm306_vm0, %v3879_v3  ;;  %v2449_v43 = vadd.f32 %v10233_v61, %v2413_v31  ;;  %v4158_v3 = vld [vmem:[%s11920_s5 + $0x30] sm:$0xff] }
 0x27c   : > { %8332 = vmatprep.mubr.msk.f32.mxu1 %vm8875_vm1, %v11924_v1  ;;  %v7919_v2 = vpop.f32.mrf.mxu1  ;;  %8360 = vmatpush3.msra.mxu0 %v4158_v3 }
 0x27d   : > { %v7972_v60 = vpop.f32.mrf.mxu0  ;;  %v10649_v63 = vadd.f32 %v2616_v55, %v2449_v43  ;;  %8361 = vmatprep.subr.mxu0 %v11924_v1 }
 0x27e   : > { %v2418_v41 = vpop.f32.mrf.mxu1 }
 0x27f   : > { %v2621_v6 = vpop.f32.mrf.mxu0  ;;  %8333 = vmatmul.mubr.msk.f32.gmra.mxu1 %vm306_vm0, %v3880_v5  ;;  %v2450_v57 = vadd.f32 %v10233_v61, %v2418_v41  ;;  %v3884_v41 = vld [vmem:[#allocation3 + $0x5b] sm:$0xff] }
 0x280   : > { %8335 = vmatprep.mubr.msk.f32.mxu1 %vm8875_vm1, %v11924_v1  ;;  %v7922_v45 = vpop.f32.mrf.mxu1 }
 0x281   : > { %v7975_v48 = vpop.f32.mrf.mxu0  ;;  %v10655_v51 = vadd.f32 %v2621_v6, %v2450_v57 }
 0x282   : > { %v2423_v40 = vpop.f32.mrf.mxu1 }
 0x283   : > { %v2626_v53 = vpop.f32.mrf.mxu0  ;;  %8336 = vmatmul.mubr.msk.f32.gmra.mxu1 %vm306_vm0, %v3881_v19  ;;  %v2451_v56 = vadd.f32 %v10233_v61, %v2423_v40 }
 0x284   : > { %8338 = vmatprep.mubr.msk.f32.mxu1 %vm8875_vm1, %v11924_v1  ;;  %v7925_v42 = vpop.f32.mrf.mxu1 }
 0x285   : > { %v7978_v22 = vpop.f32.mrf.mxu0  ;;  %v10661_v44 = vadd.f32 %v2626_v53, %v2451_v56  ;;  %v3885_v53 = vld [vmem:[#allocation3 + $0x63] sm:$0xff] }
 0x286   : > { %v2428_v58 = vpop.f32.mrf.mxu1  ;;  %v4157_v56 = vld [vmem:[%s11920_s5 + $0x28] sm:$0xff] }
 0x287   : > { %v2631_v27 = vpop.f32.mrf.mxu0  ;;  %8339 = vmatmul.mubr.msk.f32.gmra.mxu1 %vm306_vm0, %v3882_v36  ;;  %v2452_v28 = vadd.f32 %v10233_v61, %v2428_v58  ;;  %8362 = vmatpush3.msra.mxu0 %v4157_v56 }
 0x288   : > { %8341 = vmatprep.mubr.msk.f32.mxu1 %vm8875_vm1, %v11924_v1  ;;  %v7928_v25 = vpop.f32.mrf.mxu1  ;;  %8363 = vmatprep.subr.mxu0 %v11924_v1 }
 0x289   : > { %v7981_v59 = vpop.f32.mrf.mxu0  ;;  %v10667_v37 = vadd.f32 %v2631_v27, %v2452_v28  ;;  %v3886_v28 = vld [vmem:[#allocation3 + $0x6b] sm:$0xff] }
 0x28a   : > { %v2433_v31 = vpop.f32.mrf.mxu1 }
 0x28b   : > { %v2636_v55 = vpop.f32.mrf.mxu0  ;;  %8342 = vmatmul.mubr.msk.f32.gmra.mxu1 %vm306_vm0, %v3883_v54  ;;  %v2453_v43 = vadd.f32 %v10233_v61, %v2433_v31 }
 0x28c   : > { %8344 = vmatprep.mubr.msk.f32.mxu1 %vm8875_vm1, %v11924_v1  ;;  %v7931_v2 = vpop.f32.mrf.mxu1 }
 0x28d   : > { %v7984_v60 = vpop.f32.mrf.mxu0  ;;  %v10677_v5 = vadd.f32 %v2636_v55, %v2453_v43  ;;  %v3887_v55 = vld [vmem:[#allocation3 + $0x73] sm:$0xff] }
 0x28e   : > { %v2438_v6 = vpop.f32.mrf.mxu1  ;;  %v4156_v43 = vld [vmem:[%s11920_s5 + $0x20] sm:$0xff] }
 0x28f   : > { %v2641_v57 = vpop.f32.mrf.mxu0  ;;  %8345 = vmatmul.mubr.msk.f32.gmra.mxu1 %vm306_vm0, %v3884_v41  ;;  %v2454_v45 = vadd.f32 %v10233_v61, %v2438_v6  ;;  %8364 = vmatpush3.msra.mxu0 %v4156_v43 }
 0x290   : > { %8347 = vmatprep.mubr.msk.f32.mxu1 %vm8875_vm1, %v11924_v1  ;;  %v7934_v48 = vpop.f32.mrf.mxu1  ;;  %8365 = vmatprep.subr.mxu0 %v11924_v1 }
 0x291   : > { %v7987_v19 = vpop.f32.mrf.mxu0  ;;  %v10683_v40 = vadd.f32 %v2641_v57, %v2454_v45 }
 0x292   : > { %v2784_v42 = vpop.f32.mrf.mxu1 }
 0x293   : > { %v2987_v22 = vpop.f32.mrf.mxu0  ;;  %8348 = vmatmul.mubr.msk.f32.gmra.mxu1 %vm306_vm0, %v3885_v53  ;;  %v2848_v36 = vadd.f32 %v2784_v42, %v10254_v49 }
 0x294   : > { %8350 = vmatprep.mubr.msk.f32.mxu1 %vm8875_vm1, %v11924_v1  ;;  %v8004_v61 = vpop.f32.mrf.mxu1 }
 0x295   : > { %v8057_v58 = vpop.f32.mrf.mxu0  ;;  %v10693_v27 = vadd.f32 %v2987_v22, %v2848_v36  ;;  %v4155_v22 = vld [vmem:[%s11920_s5 + $0x18] sm:$0xff] }
 0x296   : > { %8366 = vmatpush3.msra.mxu0 %v4155_v22 }
 0x297   : > { %v2789_v25 = vpop.f32.mrf.mxu1  ;;  %v2992_v59 = vpop.f32.mrf.mxu0  ;;  %8351 = vmatmul.mubr.msk.f32.gmra.mxu1 %vm306_vm0, %v3886_v28  ;;  %8367 = vmatprep.subr.mxu0 %v11924_v1 }
 0x298   : > { %v2849_v54 = vadd.f32 %v2789_v25, %v10607_v39  ;;  %8353 = vmatprep.mubr.msk.f32.mxu1 %vm8875_vm1, %v11924_v1  ;;  %v3888_v39 = vld [vmem:[#allocation3 + $0x7b] sm:$0xf] }
 0x299   : > { %v8007_v49 = vpop.f32.mrf.mxu1  ;;  %v8060_v3 = vpop.f32.mrf.mxu0 }
 0x29a   : > { %v10699_v31 = vadd.f32 %v2992_v59, %v2849_v54  ;;  %v4154_v59 = vld [vmem:[%s11920_s5 + $0x10] sm:$0xff] }
 0x29b   : > { %v2794_v2 = vpop.f32.mrf.mxu1  ;;  %v2997_v60 = vpop.f32.mrf.mxu0  ;;  %8354 = vmatmul.mubr.msk.f32.gmra.mxu1 %vm306_vm0, %v3887_v55  ;;  %8368 = vmatpush3.msra.mxu0 %v4154_v59 }
 0x29c   : > { %v2850_v41 = vadd.f32 %v2794_v2, %v10616_v52  ;;  %8356 = vmatprep.mubr.msk.f32.mxu1 %vm8875_vm1, %v11924_v1  ;;  %8369 = vmatprep.subr.mxu0 %v11924_v1 }
 0x29d   : > { %v8010_v6 = vpop.f32.mrf.mxu1  ;;  %v8063_v57 = vpop.f32.mrf.mxu0 }
 0x29e   : > { %v10709_v45 = vadd.f32 %v2997_v60, %v2850_v41 }
 0x29f   : > { %v2799_v48 = vpop.f32.mrf.mxu1  ;;  %v3002_v19 = vpop.f32.mrf.mxu0  ;;  %8357 = vmatmul.mubr.msk.f32.gmra.mxu1 %vm306_vm0, %v3888_v39 }
 0x2a0   : > { %v2851_v53 = vadd.f32 %v2799_v48, %v10625_v34  ;;  %8426 = vmatprep.mubr.msk.f32.mxu1 %vm8875_vm1, %v11924_v1  ;;  %v4153_v48 = vld [vmem:[%s11920_s5 + $0x8] sm:$0xff] }
 0x2a1   : > { %v8013_v52 = vpop.f32.mrf.mxu1  ;;  %v8066_v56 = vpop.f32.mrf.mxu0  ;;  %8370 = vmatpush3.msra.mxu0 %v4153_v48 }
 0x2a2   : > { %v10715_v42 = vadd.f32 %v3002_v19, %v2851_v53  ;;  %8371 = vmatprep.subr.mxu0 %v11924_v1 }
 0x2a3   : > { %v2804_v36 = vpop.f32.mrf.mxu1  ;;  %v3007_v61 = vpop.f32.mrf.mxu0 }
 0x2a4   : > { %v2852_v58 = vadd.f32 %v2804_v36, %v10631_v26  ;;  %v6708_v36 = vld [vmem:[%s11920_s5 + $0x60] sm:$0xff] }
 0x2a5   : > { %v8016_v28 = vpop.f32.mrf.mxu1  ;;  %v8069_v34 = vpop.f32.mrf.mxu0 }
 0x2a6   : > { %v10722_v25 = vadd.f32 %v3007_v61, %v2852_v58 }
 0x2a7   : > { %v2809_v54 = vpop.f32.mrf.mxu1  ;;  %v3012_v49 = vpop.f32.mrf.mxu0 }
 0x2a8   : > { %v2853_v3 = vadd.f32 %v2809_v54, %v10637_v23  ;;  %v6709_v23 = vld [vmem:[%s11920_s5 + $0x68] sm:$0xff] }
 0x2a9   : > { %v8019_v55 = vpop.f32.mrf.mxu1  ;;  %v8072_v43 = vpop.f32.mrf.mxu0  ;;  %8413 = vmatpush3.msra.mxu1 %v6709_v23  ;;  %v4139_v23 = vld [vmem:[#allocation4 + $0x5] sm:$0xff] }
 0x2aa   : > { %v10729_v26 = vadd.f32 %v3012_v49, %v2853_v3  ;;  %8414 = vmatprep.subr.mxu1 %v11924_v1  ;;  %v6706_v49 = vld [vmem:[%s11920_s5 + $0x50] sm:$0xff]  ;;  %v6705_v43 = vld [vmem:[%s11920_s5 + $0x48] sm:$0xff] }
 0x2ab   : > { %v2814_v2 = vpop.f32.mrf.mxu1  ;;  %v3017_v60 = vpop.f32.mrf.mxu0  ;;  %8415 = vmatpush3.msra.mxu1 %v6708_v36 }
 0x2ac   : > { %v2854_v41 = vadd.f32 %v2814_v2, %v10643_v24  ;;  %8416 = vmatprep.subr.mxu1 %v11924_v1 }
 0x2ad   : > { %v8022_v39 = vpop.f32.mrf.mxu1  ;;  %v8075_v6 = vpop.f32.mrf.mxu0 }
 0x2ae   : > { %v10732_v57 = vadd.f32 %v3017_v60, %v2854_v41  ;;  %v4152_v39 = vld [vmem:[%s11920_s5] sm:$0xff] }
 0x2af   : > { %v2819_v19 = vpop.f32.mrf.mxu1  ;;  %v3022_v53 = vpop.f32.mrf.mxu0  ;;  %8372 = vmatpush3.msra.mxu0 %v4152_v39 }
 0x2b0   : > { %v2855_v52 = vadd.f32 %v2819_v19, %v10649_v63  ;;  %v6707_v63 = vld [vmem:[%s11920_s5 + $0x58] sm:$0xff]  ;;  %8374 = vmatmul.mubr.msk.f32.vlgmr.msra.gmra.mxu0 %vm306_vm0, %v4139_v23  ;;  %8465 = vmatprep.subr.mxu0 %v11924_v1 }
 0x2b1   : > { %v8025_v24 = vpop.f32.mrf.mxu1  ;;  %v8078_v56 = vpop.f32.mrf.mxu0  ;;  %8417 = vmatpush3.msra.mxu1 %v6707_v63  ;;  %8376 = vmatprep.mubr.msk.f32.mxu0 %vm8875_vm1, %v11924_v1 }
 0x2b2   : > { %v10743_v22 = vadd.f32 %v3022_v53, %v2855_v52  ;;  %8418 = vmatprep.subr.mxu1 %v11924_v1  ;;  %v6703_v53 = vld [vmem:[%s11920_s5 + $0x38] sm:$0xff] }
 0x2b3   : > { %v2824_v61 = vpop.f32.mrf.mxu1  ;;  %v3027_v58 = vpop.f32.mrf.mxu0  ;;  %8419 = vmatpush3.msra.mxu1 %v6706_v49  ;;  %v4341_v56 = vld [vmem:[#allocation4 + $0x6] sm:$0xff] }
 0x2b4   : > { %v2856_v28 = vadd.f32 %v2824_v61, %v10655_v51  ;;  %8420 = vmatprep.subr.mxu1 %v11924_v1 }
 0x2b5   : > { %v8028_v34 = vpop.f32.mrf.mxu1  ;;  %v8081_v59 = vpop.f32.mrf.mxu0  ;;  %8421 = vmatpush3.msra.mxu1 %v6705_v43 }
 0x2b6   : > { %v10753_v54 = vadd.f32 %v3027_v58, %v2856_v28  ;;  %8422 = vmatprep.subr.mxu1 %v11924_v1 }
 0x2b7   : > { %v2829_v3 = vpop.f32.mrf.mxu1  ;;  %v3032_v55 = vpop.f32.mrf.mxu0 }
 0x2b8   : > { %v2857_v51 = vadd.f32 %v2829_v3, %v10661_v44  ;;  %v6704_v44 = vld [vmem:[%s11920_s5 + $0x40] sm:$0xff] }
 0x2b9   : > { %v8031_v2 = vpop.f32.mrf.mxu1  ;;  %v8084_v60 = vpop.f32.mrf.mxu0  ;;  %8423 = vmatpush3.msra.mxu1 %v6704_v44  ;;  %v6729_v3 = vld [vmem:[%s11920_s5 + $0xa0] sm:$0xff] }
 0x2ba   : > { %v10764_v41 = vadd.f32 %v3032_v55, %v2857_v51  ;;  %8424 = vmatprep.subr.mxu1 %v11924_v1  ;;  %8466 = vmatpush3.msra.mxu0 %v6729_v3 }
 0x2bb   : > { %v2834_v6 = vpop.f32.mrf.mxu1  ;;  %v3037_v48 = vpop.f32.mrf.mxu0  ;;  %8425 = vmatpush3.msra.mxu1 %v6703_v53  ;;  %8467 = vmatprep.subr.mxu0 %v11924_v1 }
 0x2bc   : > { %v2858_v19 = vadd.f32 %v2834_v6, %v10667_v37  ;;  %8427 = vmatmul.mubr.msk.f32.vlgmr.msra.gmra.mxu1 %vm306_vm0, %v4341_v56  ;;  %8518 = vmatprep.subr.mxu1 %v11924_v1 }
 0x2bd   : > { %v8034_v52 = vpop.f32.mrf.mxu1  ;;  %v8087_v24 = vpop.f32.mrf.mxu0  ;;  %8429 = vmatprep.mubr.msk.f32.mxu1 %vm8875_vm1, %v11924_v1 }
 0x2be   : > { %v10780_v36 = vadd.f32 %v3037_v48, %v2858_v19 }
 0x2bf   : > { %v2839_v37 = vpop.f32.mrf.mxu1  ;;  %v3042_v61 = vpop.f32.mrf.mxu0 }
 0x2c0   : > { %v2859_v58 = vadd.f32 %v2839_v37, %v10677_v5 }
 0x2c1   : > { %v8037_v28 = vpop.f32.mrf.mxu1  ;;  %v8090_v63 = vpop.f32.mrf.mxu0 }
 0x2c2   : > { %v10789_v34 = vadd.f32 %v3042_v61, %v2859_v58 }
 0x2c3   : > { %v2844_v59 = vpop.f32.mrf.mxu1  ;;  %v3047_v49 = vpop.f32.mrf.mxu0 }
 0x2c4   : > { %v2860_v55 = vadd.f32 %v2844_v59, %v10683_v40  ;;  %v6728_v40 = vld [vmem:[%s11920_s5 + $0x98] sm:$0xff] }
 0x2c5   : > { %v8040_v51 = vpop.f32.mrf.mxu1  ;;  %v8093_v43 = vpop.f32.mrf.mxu0  ;;  %8468 = vmatpush3.msra.mxu0 %v6728_v40 }
 0x2c6   : > { %v10796_v2 = vadd.f32 %v3047_v49, %v2860_v55  ;;  %8469 = vmatprep.subr.mxu0 %v11924_v1 }
 0x2c7   : > { %v3190_v5 = vpop.f32.mrf.mxu1  ;;  %v3393_v60 = vpop.f32.mrf.mxu0 }
 0x2c8   : > { %v3254_v39 = vadd.f32 %v3190_v5, %v10693_v27 }
 0x2c9   : > { %v8110_v44 = vpop.f32.mrf.mxu1  ;;  %v8163_v6 = vpop.f32.mrf.mxu0 }
 0x2ca   : > { %v10799_v48 = vadd.f32 %v3393_v60, %v3254_v39 }
 0x2cb   : > { %v3195_v23 = vpop.f32.mrf.mxu1  ;;  %v3398_v19 = vpop.f32.mrf.mxu0 }
 0x2cc   : > { %v3255_v53 = vadd.f32 %v3195_v23, %v10699_v31  ;;  %v6727_v31 = vld [vmem:[%s11920_s5 + $0x90] sm:$0xff] }
 0x2cd   : > { %v8113_v52 = vpop.f32.mrf.mxu1  ;;  %v8166_v24 = vpop.f32.mrf.mxu0  ;;  %8470 = vmatpush3.msra.mxu0 %v6727_v31 }
 0x2ce   : > { %v10806_v56 = vadd.f32 %v3398_v19, %v3255_v53  ;;  %8471 = vmatprep.subr.mxu0 %v11924_v1 }
 0x2cf   : > { %v3200_v27 = vpop.f32.mrf.mxu1  ;;  %v3403_v37 = vpop.f32.mrf.mxu0 }
 0x2d0   : > { %v3256_v61 = vadd.f32 %v3200_v27, %v10709_v45 }
 0x2d1   : > { %v8116_v58 = vpop.f32.mrf.mxu1  ;;  %v8169_v28 = vpop.f32.mrf.mxu0 }
 0x2d2   : > { %v10809_v63 = vadd.f32 %v3403_v37, %v3256_v61  ;;  %v6725_v37 = vld [vmem:[%s11920_s5 + $0x80] sm:$0xff] }
 0x2d3   : > { %v3205_v59 = vpop.f32.mrf.mxu1  ;;  %v3408_v49 = vpop.f32.mrf.mxu0 }
 0x2d4   : > { %v3257_v3 = vadd.f32 %v3205_v59, %v10715_v42  ;;  %v6726_v42 = vld [vmem:[%s11920_s5 + $0x88] sm:$0xff] }
 0x2d5   : > { %v8119_v55 = vpop.f32.mrf.mxu1  ;;  %v8172_v51 = vpop.f32.mrf.mxu0  ;;  %8472 = vmatpush3.msra.mxu0 %v6726_v42 }
 0x2d6   : > { %v10816_v43 = vadd.f32 %v3408_v49, %v3257_v3  ;;  %8473 = vmatprep.subr.mxu0 %v11924_v1  ;;  %v6749_v3 = vld [vmem:[%s11920_s5 + $0xd8] sm:$0xff] }
 0x2d7   : > { %v3210_v45 = vpop.f32.mrf.mxu1  ;;  %v3413_v5 = vpop.f32.mrf.mxu0  ;;  %8474 = vmatpush3.msra.mxu0 %v6725_v37  ;;  %8519 = vmatpush3.msra.mxu1 %v6749_v3  ;;  %v6744_v37 = vld [vmem:[%s11920_s5 + $0xb0] sm:$0xff] }
 0x2d8   : > { %v3258_v60 = vadd.f32 %v3210_v45, %v10722_v25  ;;  %8475 = vmatprep.subr.mxu0 %v11924_v1  ;;  %8520 = vmatprep.subr.mxu1 %v11924_v1 }
 0x2d9   : > { %v8122_v39 = vpop.f32.mrf.mxu1  ;;  %v8175_v44 = vpop.f32.mrf.mxu0 }
 0x2da   : > { %v10819_v6 = vadd.f32 %v3413_v5, %v3258_v60  ;;  %v6747_v39 = vld [vmem:[%s11920_s5 + $0xc8] sm:$0xff] }
 0x2db   : > { %v3215_v23 = vpop.f32.mrf.mxu1  ;;  %v3418_v19 = vpop.f32.mrf.mxu0 }
 0x2dc   : > { %v3259_v40 = vadd.f32 %v3215_v23, %v10729_v26  ;;  %v6746_v23 = vld [vmem:[%s11920_s5 + $0xc0] sm:$0xff] }
 0x2dd   : > { %v8125_v53 = vpop.f32.mrf.mxu1  ;;  %v8178_v52 = vpop.f32.mrf.mxu0 }
 0x2de   : > { %v10826_v24 = vadd.f32 %v3418_v19, %v3259_v40  ;;  %v6723_v19 = vld [vmem:[%s11920_s5 + $0x70] sm:$0xff] }
 0x2df   : > { %v3220_v25 = vpop.f32.mrf.mxu1  ;;  %v3423_v27 = vpop.f32.mrf.mxu0 }
 0x2e0   : > { %v3260_v61 = vadd.f32 %v3220_v25, %v10732_v57  ;;  %v6748_v57 = vld [vmem:[%s11920_s5 + $0xd0] sm:$0xff] }
 0x2e1   : > { %v8128_v58 = vpop.f32.mrf.mxu1  ;;  %v8181_v28 = vpop.f32.mrf.mxu0  ;;  %8521 = vmatpush3.msra.mxu1 %v6748_v57 }
 0x2e2   : > { %v10833_v26 = vadd.f32 %v3423_v27, %v3260_v61  ;;  %8522 = vmatprep.subr.mxu1 %v11924_v1 }
 0x2e3   : > { %v3225_v59 = vpop.f32.mrf.mxu1  ;;  %v3428_v49 = vpop.f32.mrf.mxu0  ;;  %8523 = vmatpush3.msra.mxu1 %v6747_v39 }
 0x2e4   : > { %v3261_v31 = vadd.f32 %v3225_v59, %v10743_v22  ;;  %v6724_v22 = vld [vmem:[%s11920_s5 + $0x78] sm:$0xff]  ;;  %8524 = vmatprep.subr.mxu1 %v11924_v1  ;;  %v6743_v59 = vld [vmem:[%s11920_s5 + $0xa8] sm:$0xff] }
 0x2e5   : > { %v8131_v55 = vpop.f32.mrf.mxu1  ;;  %v8184_v51 = vpop.f32.mrf.mxu0  ;;  %8476 = vmatpush3.msra.mxu0 %v6724_v22  ;;  %8525 = vmatpush3.msra.mxu1 %v6746_v23 }
 0x2e6   : > { %v10839_v45 = vadd.f32 %v3428_v49, %v3261_v31  ;;  %8477 = vmatprep.subr.mxu0 %v11924_v1  ;;  %8526 = vmatprep.subr.mxu1 %v11924_v1 }
 0x2e7   : > { %v3230_v5 = vpop.f32.mrf.mxu1  ;;  %v3433_v60 = vpop.f32.mrf.mxu0  ;;  %8478 = vmatpush3.msra.mxu0 %v6723_v19 }
 0x2e8   : > { %v3262_v44 = vadd.f32 %v3230_v5, %v10753_v54  ;;  %v6745_v54 = vld [vmem:[%s11920_s5 + $0xb8] sm:$0xff]  ;;  %8571 = vmatprep.subr.mxu0 %v11924_v1 }
 0x2e9   : > { %v8134_v42 = vpop.f32.mrf.mxu1  ;;  %v8187_v40 = vpop.f32.mrf.mxu0  ;;  %8527 = vmatpush3.msra.mxu1 %v6745_v54 }
 0x2ea   : > { %v10860_v53 = vadd.f32 %v3433_v60, %v3262_v44  ;;  %8528 = vmatprep.subr.mxu1 %v11924_v1 }
 0x2eb   : > { %v3235_v52 = vpop.f32.mrf.mxu1  ;;  %v3438_v25 = vpop.f32.mrf.mxu0  ;;  %8529 = vmatpush3.msra.mxu1 %v6744_v37 }
 0x2ec   : > { %v3263_v27 = vadd.f32 %v3235_v52, %v10764_v41  ;;  %8530 = vmatprep.subr.mxu1 %v11924_v1 }
 0x2ed   : > { %v8137_v61 = vpop.f32.mrf.mxu1  ;;  %v8190_v58 = vpop.f32.mrf.mxu0  ;;  %8531 = vmatpush3.msra.mxu1 %v6743_v59 }
 0x2ee   : > { %v10872_v28 = vadd.f32 %v3438_v25, %v3263_v27  ;;  %8624 = vmatprep.subr.mxu1 %v11924_v1 }
 0x2ef   : > { %v3240_v49 = vpop.f32.mrf.mxu1  ;;  %v3443_v31 = vpop.f32.mrf.mxu0 }
 0x2f0   : > { %v3264_v41 = vadd.f32 %v3240_v49, %v10780_v36 }
 0x2f1   : > { %v8140_v3 = vpop.f32.mrf.mxu1  ;;  %v8193_v55 = vpop.f32.mrf.mxu0 }
 0x2f2   : > { %v10880_v51 = vadd.f32 %v3443_v31, %v3264_v41 }
 0x2f3   : > { %v3245_v57 = vpop.f32.mrf.mxu1  ;;  %v3448_v5 = vpop.f32.mrf.mxu0 }
 0x2f4   : > { %v3265_v60 = vadd.f32 %v3245_v57, %v10789_v34 }
 0x2f5   : > { %v8143_v22 = vpop.f32.mrf.mxu1  ;;  %v8196_v39 = vpop.f32.mrf.mxu0 }
 0x2f6   : > { %v10884_v44 = vadd.f32 %v3448_v5, %v3265_v60 }
 0x2f7   : > { %v3250_v23 = vpop.f32.mrf.mxu1  ;;  %v3453_v19 = vpop.f32.mrf.mxu0 }
 0x2f8   : > { %11944 = vst [vmem:[#allocation14_spill] sm:$0xff] %v10884_v44  ;;  %v3266_v36 = vadd.f32 %v3250_v23, %v10796_v2 }
 0x2f9   : > { %v8146_v42 = vpop.f32.mrf.mxu1  ;;  %v8199_v40 = vpop.f32.mrf.mxu0 }
 0x2fa   : > { %v10887_v54 = vadd.f32 %v3453_v19, %v3266_v36 }
 0x2fb   : > { %v3596_v52 = vpop.f32.mrf.mxu1  ;;  %v3799_v25 = vpop.f32.mrf.mxu0 }
 0x2fc   : > { %11945 = vst [vmem:[#allocation15_spill] sm:$0xff] %v10887_v54 }
 0x2fd   : > { %v8216_v27 = vpop.f32.mrf.mxu1  ;;  %v8269_v37 = vpop.f32.mrf.mxu0 }
 0x2ff   : > { %v3601_v61 = vpop.f32.mrf.mxu1  ;;  %v3804_v58 = vpop.f32.mrf.mxu0 }
 0x300   : > { %v3661_v4 = vadd.f32 %v3601_v61, %v10806_v56 }
 0x301   : > { %v8219_v59 = vpop.f32.mrf.mxu1  ;;  %v8272_v34 = vpop.f32.mrf.mxu0 }
 0x303   : > { %v3606_v49 = vpop.f32.mrf.mxu1  ;;  %v3809_v31 = vpop.f32.mrf.mxu0 }
 0x305   : > { %v8222_v41 = vpop.f32.mrf.mxu1  ;;  %v8275_v3 = vpop.f32.mrf.mxu0 }
 0x307   : > { %v3611_v55 = vpop.f32.mrf.mxu1  ;;  %v3814_v57 = vpop.f32.mrf.mxu0 }
 0x309   : > { %v8225_v5 = vpop.f32.mrf.mxu1  ;;  %v8278_v2 = vpop.f32.mrf.mxu0 }
 0x30b   : > { %v3616_v60 = vpop.f32.mrf.mxu1  ;;  %v10889_v22 = vpop.f32.mrf.mxu0 }
 0x30d   : > { %v8228_v39 = vpop.f32.mrf.mxu1  ;;  %v8281_v23 = vpop.f32.mrf.mxu0 }
 0x30f   : > { %v10891_v19 = vpop.f32.mrf.mxu1  ;;  %v10893_v36 = vpop.f32.mrf.mxu0 }
 0x311   : > { %v8231_v42 = vpop.f32.mrf.mxu1  ;;  %v8284_v40 = vpop.f32.mrf.mxu0 }
 0x313   : > { %v10895_v27 = vpop.f32.mrf.mxu1  ;;  %v10897_v37 = vpop.f32.mrf.mxu0 }
 0x315   : > { %v8234_v59 = vpop.f32.mrf.mxu1  ;;  %v8287_v34 = vpop.f32.mrf.mxu0 }
 0x317   : > { %v10899_v41 = vpop.f32.mrf.mxu1  ;;  %v10901_v3 = vpop.f32.mrf.mxu0 }
 0x319   : > { %v8237_v5 = vpop.f32.mrf.mxu1  ;;  %v8290_v2 = vpop.f32.mrf.mxu0 }
 0x31b   : > { %v10903_v39 = vpop.f32.mrf.mxu1  ;;  %v10905_v23 = vpop.f32.mrf.mxu0 }
 0x31d   : > { %v8240_v1 = vpop.f32.mrf.mxu1  ;;  %v8293_v35 = vpop.f32.mrf.mxu0 }
 0x31e   : > { %v3660_v1 = vadd.f32 %v3596_v52, %v10799_v48 }
 0x31f   : > { %v10907_v42 = vpop.f32.mrf.mxu1  ;;  %v10909_v40 = vpop.f32.mrf.mxu0 }
 0x320   : > { %v3863_v15 = vadd.f32 %v3799_v25, %v3660_v1 }
 0x321   : > { %v8243_v46 = vpop.f32.mrf.mxu1  ;;  %v8296_v9 = vpop.f32.mrf.mxu0 }
 0x323   : > { %v10911_v59 = vpop.f32.mrf.mxu1  ;;  %v10913_v34 = vpop.f32.mrf.mxu0 }
 0x324   : > { %11946 = vst [vmem:[#allocation16_spill] sm:$0xff] %v10913_v34  ;;  %v3864_v34 = vadd.f32 %v3804_v58, %v3661_v4 }
 0x325   : > { %v8246_v20 = vpop.f32.mrf.mxu1  ;;  %v8299_v30 = vpop.f32.mrf.mxu0 }
 0x327   : > { %v10915_v5 = vpop.f32.mrf.mxu1  ;;  %v10917_v2 = vpop.f32.mrf.mxu0 }
 0x328   : > { %11947 = vst [vmem:[#allocation17_spill] sm:$0xff] %v10915_v5  ;;  %11948 = vst [vmem:[#allocation18_spill] sm:$0xff] %v10917_v2  ;;  %v3662_v5 = vadd.f32 %v3606_v49, %v10809_v63 }
 0x329   : > { %v8249_v17 = vpop.f32.mrf.mxu1  ;;  %v8302_v0 = vpop.f32.mrf.mxu0 }
 0x32b   : > { %v10920_v35 = vpop.f32.mrf.mxu1  ;;  %v10922_v54 = vpop.f32.mrf.mxu0 }
 0x32c   : > { %11949 = vst [vmem:[#allocation19_spill] sm:$0xff] %v10920_v35  ;;  %11950 = vst [vmem:[#allocation20_spill] sm:$0xff] %v10922_v54  ;;  %v3865_v35 = vadd.f32 %v3809_v31, %v3662_v5  ;;  %v3663_v54 = vadd.f32 %v3611_v55, %v10816_v43 }
 0x32d   : > { %v8252_v46 = vpop.f32.mrf.mxu1  ;;  %v8305_v9 = vpop.f32.mrf.mxu0 }
 0x32e   : > { %v3866_v61 = vadd.f32 %v3814_v57, %v3663_v54 }
 0x32f   : > { %v4002_v44 = vpop.f32.mrf.mxu1 }
 0x330   : > { %v4066_v20 = vadd.f32 %v4002_v44, %v3863_v15 }
 0x331   : > { %v8322_v30 = vpop.f32.mrf.mxu1 }
 0x332   : > { %v4079_v17 = vadd.f32 %v4066_v20, %v9010_v10  ;;  %v3664_v10 = vadd.f32 %v3616_v60, %v10819_v6 }
 0x333   : > { %v4007_v0 = vpop.f32.mrf.mxu1 }
 0x334   : > { %v4092_v2 = vmax.f32 %v4079_v17, 0.0  ;;  %v4067_v48 = vadd.f32 %v4007_v0, %v3864_v34  ;;  %v3867_v55 = vadd.f32 %v10889_v22, %v3664_v10  ;;  %v3665_v34 = vadd.f32 %v10891_v19, %v10826_v24 }
 0x335   : > { %v8325_v52 = vpop.f32.mrf.mxu1  ;;  %v11951_v22 = vmov 0.0   ;;  %v3666_v24 = vadd.f32 %v10895_v27, %v10833_v26  ;;  %v3667_v26 = vadd.f32 %v10899_v41, %v10839_v45  ;;  %v3668_v45 = vadd.f32 %v10903_v39, %v10860_v53 }
 0x336   : > { %v4105_v25 = vsel %vm345_vm3, %v4092_v2, 0.0  ;;  %v4080_v56 = vadd.f32 %v4067_v48, %v9016_v12  ;;  %v3669_v53 = vadd.f32 %v10907_v42, %v10872_v28  ;;  %v3670_v28 = vadd.f32 %v10911_v59, %v10880_v51  ;;  %v11952_v51 = vld [vmem:[#allocation16_spill] sm:$0xff]  ;;  %v11954_v59 = vld [vmem:[#allocation17_spill] sm:$0xff] }
 0x337   : > { %4118 = vst.msk [vmem:[#allocation4 + $0x10] sm:$0xff] %vm306_vm0, %v4105_v25  ;;  %v4012_v15 = vpop.f32.mrf.mxu1 }
 0x338   : > { %v4093_v4 = vmax.f32 %v4080_v56, 0.0  ;;  %v4068_v44 = vadd.f32 %v4012_v15, %v3865_v35 }
 0x339   : > { %v8328_v63 = vpop.f32.mrf.mxu1 }
 0x33a   : > { %v4106_v58 = vsel %vm346_vm4, %v4093_v4, 0.0  ;;  %v4081_v49 = vadd.f32 %v4068_v44, %v9028_v14 }
 0x33b   : > { %4119 = vst.msk [vmem:[#allocation4 + $0x18] sm:$0xff] %vm306_vm0, %v4106_v58  ;;  %v4017_v21 = vpop.f32.mrf.mxu1 }
 0x33c   : > { %v4094_v43 = vmax.f32 %v4081_v49, 0.0  ;;  %v4069_v31 = vadd.f32 %v4017_v21, %v3866_v61 }
 0x33d   : > { %v8331_v12 = vpop.f32.mrf.mxu1 }
 0x33e   : > { %v4107_v54 = vsel %vm347_vm5, %v4094_v43, 0.0  ;;  %v4082_v6 = vadd.f32 %v4069_v31, %v9042_v16  ;;  %v4140_v29 = vld [vmem:[#allocation4 + $0xd] sm:$0xff]  ;;  %v3868_v16 = vadd.f32 %v10893_v36, %v3665_v34 }
 0x33f   : > { %v4342_v57 = vld [vmem:[#allocation4 + $0xe] sm:$0xff]  ;;  %4120 = vst.msk [vmem:[#allocation4 + $0x20] sm:$0xff] %vm306_vm0, %v4107_v54  ;;  %v4022_v14 = vpop.f32.mrf.mxu1  ;;  %8377 = vmatmul.mubr.msk.f32.gmra.mxu0 %vm306_vm0, %v4140_v29  ;;  %v6765_v54 = vld [vmem:[%s11920_s5 + $0xf0] sm:$0xff] }
 0x340   : > { %8430 = vmatmul.mubr.msk.f32.gmra.mxu1 %vm306_vm0, %v4342_v57  ;;  %v4095_v60 = vmax.f32 %v4082_v6, 0.0  ;;  %v4070_v5 = vadd.f32 %v4022_v14, %v3867_v55  ;;  %8379 = vmatprep.mubr.msk.f32.mxu0 %vm8875_vm1, %v11951_v22  ;;  %v11956_v29 = vld [vmem:[#allocation5_spill] sm:$0xff] }
 0x341   : > { %8432 = vmatprep.mubr.msk.f32.mxu1 %vm8875_vm1, %v11951_v22  ;;  %v8334_v50 = vpop.f32.mrf.mxu1 }
 0x342   : > { %v4108_v19 = vsel %vm348_vm6, %v4095_v60, 0.0  ;;  %v4083_v2 = vadd.f32 %v4070_v5, %v9048_v18  ;;  %v4141_v1 = vld [vmem:[#allocation4 + $0x15] sm:$0xff]  ;;  %v3869_v18 = vadd.f32 %v10897_v37, %v3666_v24 }
 0x343   : > { %v4343_v35 = vld [vmem:[#allocation4 + $0x16] sm:$0xff]  ;;  %4121 = vst.msk [vmem:[#allocation4 + $0x28] sm:$0xff] %vm306_vm0, %v4108_v19  ;;  %v4027_v46 = vpop.f32.mrf.mxu1  ;;  %8380 = vmatmul.mubr.msk.f32.gmra.mxu0 %vm306_vm0, %v4141_v1 }
 0x344   : > { %8433 = vmatmul.mubr.msk.f32.gmra.mxu1 %vm306_vm0, %v4343_v35  ;;  %v4096_v9 = vmax.f32 %v4083_v2, 0.0  ;;  %v4071_v20 = vadd.f32 %v4027_v46, %v3868_v16  ;;  %8382 = vmatprep.mubr.msk.f32.mxu0 %vm8875_vm1, %v11951_v22  ;;  %v11957_v19 = vld [vmem:[#allocation18_spill] sm:$0xff]  ;;  %v11958_v1 = vld [vmem:[#allocation15_spill] sm:$0xff] }
 0x345   : > { %8435 = vmatprep.mubr.msk.f32.mxu1 %vm8875_vm1, %v11951_v22  ;;  %v8337_v33 = vpop.f32.mrf.mxu1  ;;  %v11959_v35 = vld [vmem:[#allocation19_spill] sm:$0xff] }
 0x346   : > { %v4109_v36 = vsel %vm349_vm7, %v4096_v9, 0.0  ;;  %v4084_v27 = vadd.f32 %v4071_v20, %v8995_v7  ;;  %v4142_v30 = vld [vmem:[#allocation4 + $0x1d] sm:$0xff]  ;;  %v3870_v7 = vadd.f32 %v10901_v3, %v3667_v26  ;;  %v3672_v46 = vadd.f32 %v11959_v35, %v11958_v1  ;;  %v11961_v33 = vld [vmem:[#allocation6_spill] sm:$0xff]  ;;  %v6783_v9 = vld [vmem:[%s11920_s5 + $0x118] sm:$0xff] }
 0x347   : > { %v4344_v17 = vld [vmem:[#allocation4 + $0x1e] sm:$0xff]  ;;  %4122 = vst.msk [vmem:[#allocation4 + $0x30] sm:$0xff] %vm306_vm0, %v4109_v36  ;;  %v4032_v0 = vpop.f32.mrf.mxu1  ;;  %8383 = vmatmul.mubr.msk.f32.gmra.mxu0 %vm306_vm0, %v4142_v30  ;;  %v6763_v1 = vld [vmem:[%s11920_s5 + $0xe0] sm:$0xff] }
 0x348   : > { %8436 = vmatmul.mubr.msk.f32.gmra.mxu1 %vm306_vm0, %v4344_v17  ;;  %v4097_v48 = vmax.f32 %v4084_v27, 0.0  ;;  %v4072_v52 = vadd.f32 %v4032_v0, %v3869_v18  ;;  %8385 = vmatprep.mubr.msk.f32.mxu0 %vm8875_vm1, %v11951_v22  ;;  %v6784_v35 = vld [vmem:[%s11920_s5 + $0x120] sm:$0xff] }
 0x349   : > { %8438 = vmatprep.mubr.msk.f32.mxu1 %vm8875_vm1, %v11951_v22  ;;  %v8340_v62 = vpop.f32.mrf.mxu1 }
 0x34a   : > { %v4110_v37 = vsel %vm350_vm8, %v4097_v48, 0.0  ;;  %v4085_v41 = vadd.f32 %v4072_v52, %v8998_v8  ;;  %v4143_v25 = vld [vmem:[#allocation4 + $0x25] sm:$0xff]  ;;  %v3871_v8 = vadd.f32 %v10905_v23, %v3668_v45  ;;  %v11964_v45 = vld [vmem:[#allocation7_spill] sm:$0xff] }
 0x34b   : > { %v4345_v56 = vld [vmem:[#allocation4 + $0x26] sm:$0xff]  ;;  %4123 = vst.msk [vmem:[#allocation4 + $0x38] sm:$0xff] %vm306_vm0, %v4110_v37  ;;  %v4037_v15 = vpop.f32.mrf.mxu1  ;;  %8386 = vmatmul.mubr.msk.f32.gmra.mxu0 %vm306_vm0, %v4143_v25 }
 0x34c   : > { %8439 = vmatmul.mubr.msk.f32.gmra.mxu1 %vm306_vm0, %v4345_v56  ;;  %v4098_v4 = vmax.f32 %v4085_v41, 0.0  ;;  %v4073_v44 = vadd.f32 %v4037_v15, %v3870_v7  ;;  %8388 = vmatprep.mubr.msk.f32.mxu0 %vm8875_vm1, %v11951_v22  ;;  %v11962_v48 = vld [vmem:[#allocation20_spill] sm:$0xff]  ;;  %v6829_v62 = vld [vmem:[%s11920_s5 + $0x1b8] sm:$0xff] }
 0x34d   : > { %8441 = vmatprep.mubr.msk.f32.mxu1 %vm8875_vm1, %v11951_v22  ;;  %v8343_v38 = vpop.f32.mrf.mxu1  ;;  %v3875_v52 = vadd.f32 %v11962_v48, %v3672_v46  ;;  %v5153_v48 = vld [vmem:[#allocation4 + $0x11] sm:$0xff] }
 0x34e   : > { %v4111_v3 = vsel %vm351_vm9, %v4098_v4, 0.0  ;;  %v4086_v39 = vadd.f32 %v4073_v44, %v9013_v11  ;;  %v4144_v63 = vld [vmem:[#allocation4 + $0x2d] sm:$0xff]  ;;  %v3872_v11 = vadd.f32 %v10909_v40, %v3669_v53  ;;  %v11966_v53 = vld [vmem:[#allocation8_spill] sm:$0xff] }
 0x34f   : > { %v4346_v61 = vld [vmem:[#allocation4 + $0x2e] sm:$0xff]  ;;  %4124 = vst.msk [vmem:[#allocation4 + $0x40] sm:$0xff] %vm306_vm0, %v4111_v3  ;;  %v4042_v10 = vpop.f32.mrf.mxu1  ;;  %8389 = vmatmul.mubr.msk.f32.gmra.mxu0 %vm306_vm0, %v4144_v63 }
 0x350   : > { %8442 = vmatmul.mubr.msk.f32.gmra.mxu1 %vm306_vm0, %v4346_v61  ;;  %v4099_v58 = vmax.f32 %v4086_v39, 0.0  ;;  %v4074_v49 = vadd.f32 %v4042_v10, %v3871_v8  ;;  %8391 = vmatprep.mubr.msk.f32.mxu0 %vm8875_vm1, %v11951_v22  ;;  %v11953_v40 = vld [vmem:[#allocation14_spill] sm:$0xff] }
 0x351   : > { %8444 = vmatprep.mubr.msk.f32.mxu1 %vm8875_vm1, %v11951_v22  ;;  %v8346_v47 = vpop.f32.mrf.mxu1  ;;  %v3671_v34 = vadd.f32 %v11954_v59, %v11953_v40  ;;  %v6787_v40 = vld [vmem:[%s11920_s5 + $0x138] sm:$0xff] }
 0x352   : > { %v4112_v23 = vsel %vm352_vm10, %v4099_v58, 0.0  ;;  %v4087_v42 = vadd.f32 %v4074_v49, %v9025_v13  ;;  %v4145_v21 = vld [vmem:[#allocation4 + $0x35] sm:$0xff]  ;;  %v3873_v13 = vadd.f32 %v11952_v51, %v3670_v28  ;;  %v4749_v51 = vld [vmem:[#allocation4 + $0x1f] sm:$0xff]  ;;  %v4750_v59 = vld [vmem:[#allocation4 + $0x27] sm:$0xff] }
 0x353   : > { %v4347_v43 = vld [vmem:[#allocation4 + $0x36] sm:$0xff]  ;;  %4125 = vst.msk [vmem:[#allocation4 + $0x48] sm:$0xff] %vm306_vm0, %v4112_v23  ;;  %v4047_v31 = vpop.f32.mrf.mxu1  ;;  %8392 = vmatmul.mubr.msk.f32.gmra.mxu0 %vm306_vm0, %v4145_v21  ;;  %v3874_v2 = vadd.f32 %v11957_v19, %v3671_v34  ;;  %v4544_v23 = vld [vmem:[#allocation4 + $0x7] sm:$0xff]  ;;  %v11124_v34 = vld [vmem:[%s11921_s6] ss:$0 sm:$0xff] }
 0x354   : > { %8445 = vmatmul.mubr.msk.f32.gmra.mxu1 %vm306_vm0, %v4347_v43  ;;  %v4100_v12 = vmax.f32 %v4087_v42, 0.0  ;;  %v4075_v55 = vadd.f32 %v4047_v31, %v3872_v11  ;;  %8394 = vmatprep.mubr.msk.f32.mxu0 %vm8875_vm1, %v11951_v22  ;;  %v6769_v42 = vld [vmem:[%s11920_s5 + $0x110] sm:$0xff]  ;;  %v4747_v21 = vld [vmem:[#allocation4 + $0xf] sm:$0xff]  ;;  %v6768_v43 = vld [vmem:[%s11920_s5 + $0x108] sm:$0xff] }
 0x355   : > { %8447 = vmatprep.mubr.msk.f32.mxu1 %vm8875_vm1, %v11951_v22  ;;  %v8349_v32 = vpop.f32.mrf.mxu1  ;;  %v6789_v31 = vld [vmem:[%s11920_s5 + $0x148] sm:$0xff]  ;;  %v11269_v38 = vld [vmem:[#allocation4 + $0x29] sm:$0xff] }
 0x356   : > { %v4113_v6 = vsel %vm353_vm11, %v4100_v12, 0.0  ;;  %v4088_v57 = vadd.f32 %v4075_v55, %v11956_v29  ;;  %v4146_v14 = vld [vmem:[#allocation4 + $0x3d] sm:$0xff]  ;;  %v6767_v55 = vld [vmem:[%s11920_s5 + $0x100] sm:$0xff] }
 0x357   : > { %v4348_v60 = vld [vmem:[#allocation4 + $0x3e] sm:$0xff]  ;;  %4126 = vst.msk [vmem:[#allocation4 + $0x50] sm:$0xff] %vm306_vm0, %v4113_v6  ;;  %v4052_v5 = vpop.f32.mrf.mxu1  ;;  %8395 = vmatmul.mubr.msk.f32.gmra.mxu0 %vm306_vm0, %v4146_v14  ;;  %v6788_v32 = vld [vmem:[%s11920_s5 + $0x140] sm:$0xff] }
 0x358   : > { %8448 = vmatmul.mubr.msk.f32.gmra.mxu1 %vm306_vm0, %v4348_v60  ;;  %v4101_v50 = vmax.f32 %v4088_v57, 0.0  ;;  %v4076_v16 = vadd.f32 %v4052_v5, %v3873_v13  ;;  %8397 = vmatprep.mubr.msk.f32.mxu0 %vm8875_vm1, %v11951_v22  ;;  %v4748_v12 = vld [vmem:[#allocation4 + $0x17] sm:$0xff]  ;;  %v6766_v13 = vld [vmem:[%s11920_s5 + $0xf8] sm:$0xff]  ;;  %v6786_v6 = vld [vmem:[%s11920_s5 + $0x130] sm:$0xff] }
 0x359   : > { %8450 = vmatprep.mubr.msk.f32.mxu1 %vm8875_vm1, %v11951_v22  ;;  %v8352_v24 = vpop.f32.mrf.mxu1  ;;  %v4751_v14 = vld [vmem:[#allocation4 + $0x2f] sm:$0xff]  ;;  %v4753_v46 = vld [vmem:[#allocation4 + $0x3f] sm:$0xff] }
 0x35a   : > { %v4114_v20 = vsel %vm354_vm12, %v4101_v50, 0.0  ;;  %v4089_v18 = vadd.f32 %v4076_v16, %v11961_v33  ;;  %v4147_v26 = vld [vmem:[#allocation4 + $0x45] sm:$0xff]  ;;  %v6764_v50 = vld [vmem:[%s11920_s5 + $0xe8] sm:$0xff] }
 0x35b   : > { %v4349_v36 = vld [vmem:[#allocation4 + $0x46] sm:$0xff]  ;;  %4127 = vst.msk [vmem:[#allocation4 + $0x58] sm:$0xff] %vm306_vm0, %v4114_v20  ;;  %v4057_v27 = vpop.f32.mrf.mxu1  ;;  %8398 = vmatmul.mubr.msk.f32.gmra.mxu0 %vm306_vm0, %v4147_v26  ;;  %v6785_v16 = vld [vmem:[%s11920_s5 + $0x128] sm:$0xff] }
 0x35c   : > { %8451 = vmatmul.mubr.msk.f32.gmra.mxu1 %vm306_vm0, %v4349_v36  ;;  %v4102_v30 = vmax.f32 %v4089_v18, 0.0  ;;  %v4077_v17 = vadd.f32 %v4057_v27, %v3874_v2  ;;  %8400 = vmatprep.mubr.msk.f32.mxu0 %vm8875_vm1, %v11951_v22  ;;  %v4752_v2 = vld [vmem:[#allocation4 + $0x37] sm:$0xff]  ;;  %v4754_v20 = vld [vmem:[#allocation4 + $0x47] sm:$0xff] }
 0x35d   : > { %8453 = vmatprep.mubr.msk.f32.mxu1 %vm8875_vm1, %v11951_v22  ;;  %v8355_v0 = vpop.f32.mrf.mxu1  ;;  %v4955_v10 = vld [vmem:[#allocation4 + $0x38] sm:$0xff] }
 0x35e   : > { %v4115_v7 = vsel %vm355_vm13, %v4102_v30, 0.0  ;;  %v4090_v37 = vadd.f32 %v4077_v17, %v11964_v45  ;;  %v4148_v41 = vld [vmem:[#allocation4 + $0x4d] sm:$0xff]  ;;  %v11235_v45 = vld [vmem:[#allocation4 + $0x19] sm:$0xff] }
 0x35f   : > { %v4350_v25 = vld [vmem:[#allocation4 + $0x4e] sm:$0xff]  ;;  %4128 = vst.msk [vmem:[#allocation4 + $0x60] sm:$0xff] %vm306_vm0, %v4115_v7  ;;  %v4062_v56 = vpop.f32.mrf.mxu1  ;;  %8401 = vmatmul.mubr.msk.f32.gmra.mxu0 %vm306_vm0, %v4148_v41  ;;  %v4951_v7 = vld [vmem:[#allocation4 + $0x18] sm:$0xff]  ;;  %v6828_v41 = vld [vmem:[%s11920_s5 + $0x1b0] sm:$0xff] }
 0x360   : > { %8454 = vmatmul.mubr.msk.f32.gmra.mxu1 %vm306_vm0, %v4350_v25  ;;  %v4103_v15 = vmax.f32 %v4090_v37, 0.0  ;;  %v4078_v4 = vadd.f32 %v4062_v56, %v3875_v52  ;;  %8403 = vmatprep.mubr.msk.f32.mxu0 %vm8875_vm1, %v11951_v22  ;;  %v4755_v33 = vld [vmem:[#allocation4 + $0x4f] sm:$0xff]  ;;  %v6807_v37 = vld [vmem:[%s11920_s5 + $0x170] sm:$0xff] }
 0x361   : > { %8456 = vmatprep.mubr.msk.f32.mxu1 %vm8875_vm1, %v11951_v22  ;;  %v8358_v44 = vpop.f32.mrf.mxu1  ;;  %v6809_v17 = vld [vmem:[%s11920_s5 + $0x180] sm:$0xff]  ;;  %v6808_v52 = vld [vmem:[%s11920_s5 + $0x178] sm:$0xff]  ;;  %v4952_v25 = vld [vmem:[#allocation4 + $0x20] sm:$0xff] }
 0x362   : > { %v4116_v8 = vsel %vm356_vm14, %v4103_v15, 0.0  ;;  %v4091_v3 = vadd.f32 %v4078_v4, %v11966_v53  ;;  %v4149_v39 = vld [vmem:[#allocation4 + $0x55] sm:$0xff]  ;;  %v11252_v56 = vld [vmem:[#allocation4 + $0x21] sm:$0xff] }
 0x363   : > { %v4351_v63 = vld [vmem:[#allocation4 + $0x56] sm:$0xff]  ;;  %4129 = vst.msk [vmem:[#allocation4 + $0x68] sm:$0xff] %vm306_vm0, %v4116_v8  ;;  %8404 = vmatmul.mubr.msk.f32.gmra.mxu0 %vm306_vm0, %v4149_v39  ;;  %v4953_v44 = vld [vmem:[#allocation4 + $0x28] sm:$0xff] }
 0x364   : > { %8457 = vmatmul.mubr.msk.f32.gmra.mxu1 %vm306_vm0, %v4351_v63  ;;  %v4104_v61 = vmax.f32 %v4091_v3, 0.0  ;;  %8406 = vmatprep.mubr.msk.f32.mxu0 %vm8875_vm1, %v11951_v22  ;;  %v4756_v18 = vld [vmem:[#allocation4 + $0x57] sm:$0xff]  ;;  %v6804_v63 = vld [vmem:[%s11920_s5 + $0x158] sm:$0xff] }
 0x365   : > { %8459 = vmatprep.mubr.msk.f32.mxu1 %vm8875_vm1, %v11951_v22  ;;  %v4950_v0 = vld [vmem:[#allocation4 + $0x10] sm:$0xff]  ;;  %v6806_v15 = vld [vmem:[%s11920_s5 + $0x168] sm:$0xff] }
 0x366   : > { %v4117_v58 = vsel %vm357_vm15, %v4104_v61, 0.0  ;;  %v4150_v49 = vld [vmem:[#allocation4 + $0x5d] sm:$0xff]  ;;  %v6805_v8 = vld [vmem:[%s11920_s5 + $0x160] sm:$0xff]  ;;  %v6825_v61 = vld [vmem:[%s11920_s5 + $0x198] sm:$0xff] }
 0x367   : > { %v4352_v47 = vld [vmem:[#allocation4 + $0x5e] sm:$0xff]  ;;  %4130 = vst.msk [vmem:[#allocation4 + $0x70] sm:$0xf] %vm370_vm2, %v4117_v58  ;;  %8407 = vmatmul.mubr.msk.f32.gmra.mxu0 %vm306_vm0, %v4150_v49  ;;  %v6826_v53 = vld [vmem:[%s11920_s5 + $0x1a0] sm:$0xff] }
 0x368   : > { %8460 = vmatmul.mubr.msk.f32.gmra.mxu1 %vm306_vm0, %v4352_v47  ;;  %8409 = vmatprep.mubr.msk.f32.mxu0 %vm8875_vm1, %v11951_v22  ;;  %v4757_v26 = vld [vmem:[#allocation4 + $0x5f] sm:$0xff]  ;;  %v4954_v3 = vld [vmem:[#allocation4 + $0x30] sm:$0xff] }
 0x369   : > { %8462 = vmatprep.mubr.msk.f32.mxu1 %vm8875_vm1, %v11951_v22  ;;  %v6827_v4 = vld [vmem:[%s11920_s5 + $0x1a8] sm:$0xff]  ;;  %v6803_v49 = vld [vmem:[%s11920_s5 + $0x150] sm:$0xff] }
 0x36a   : > { %v4151_v11 = vld [vmem:[#allocation4 + $0x65] sm:$0xf]  ;;  %v11286_v39 = vld [vmem:[#allocation4 + $0x31] sm:$0xff]  ;;  %v11303_v58 = vld [vmem:[#allocation4 + $0x39] sm:$0xff] }
 0x36b   : > { %v4353_v28 = vld [vmem:[#allocation4 + $0x66] sm:$0xf]  ;;  %8410 = vmatmul.mubr.msk.f32.gmra.mxu0 %vm306_vm0, %v4151_v11 }
 0x36c   : > { %8463 = vmatmul.mubr.msk.f32.gmra.mxu1 %vm306_vm0, %v4353_v28  ;;  %8479 = vmatprep.mubr.msk.f32.mxu0 %vm8875_vm1, %v11951_v22  ;;  %v4758_v36 = vld [vmem:[#allocation4 + $0x67] sm:$0xff] }
 0x36d   : > { %8532 = vmatprep.mubr.msk.f32.mxu1 %vm8875_vm1, %v11951_v22  ;;  %v4556_v27 = vld [vmem:[#allocation4 + $0x67] sm:$0xf] }
 0x36e   : > { %v4759_v30 = vld [vmem:[#allocation4 + $0x6f] sm:$0xf]  ;;  %v6824_v47 = vld [vmem:[%s11920_s5 + $0x190] sm:$0xff] }
 0x36f   : > { %8480 = vmatmul.mubr.msk.f32.vlgmr.msra.gmra.mxu0 %vm306_vm0, %v4544_v23  ;;  %v4956_v11 = vld [vmem:[#allocation4 + $0x40] sm:$0xff]  ;;  %v6823_v23 = vld [vmem:[%s11920_s5 + $0x188] sm:$0xff] }
 0x370   : > { %8533 = vmatmul.mubr.msk.f32.vlgmr.msra.gmra.mxu1 %vm306_vm0, %v4747_v21  ;;  %8572 = vmatpush3.msra.mxu0 %v6769_v42  ;;  %v4264_v29 = vpop.f32.mrf.mxu0  ;;  %v11320_v28 = vld [vmem:[#allocation4 + $0x41] sm:$0xff] }
 0x371   : > { %8482 = vmatprep.mubr.msk.f32.mxu0 %vm8875_vm1, %v11951_v22  ;;  %8535 = vmatprep.mubr.msk.f32.mxu1 %vm8875_vm1, %v11951_v22  ;;  %v4328_v57 = vadd.f32 %v11124_v34, %v4264_v29  ;;  %v4957_v42 = vld [vmem:[#allocation4 + $0x48] sm:$0xff]  ;;  %v5559_v29 = vld [vmem:[#allocation4 + $0x1a] sm:$0xff] }
 0x372   : > { %8573 = vmatprep.subr.mxu0 %v11951_v22  ;;  %8625 = vmatpush3.msra.mxu1 %v6789_v31  ;;  %v8375_v5 = vpop.f32.mrf.mxu0  ;;  %v11343_v31 = vld [vmem:[#allocation4 + $0x51] sm:$0xff] }
 0x373   : > { %8574 = vmatpush3.msra.mxu0 %v6768_v43  ;;  %8626 = vmatprep.subr.mxu1 %v11951_v22  ;;  %v4958_v43 = vld [vmem:[#allocation4 + $0x50] sm:$0xff] }
 0x374   : > { %8483 = vmatmul.mubr.msk.f32.gmra.mxu0 %vm306_vm0, %v4747_v21  ;;  %8536 = vmatmul.mubr.msk.f32.gmra.mxu1 %vm306_vm0, %v4748_v12  ;;  %v11334_v21 = vld [vmem:[#allocation4 + $0x49] sm:$0xff] }
 0x375   : > { %8485 = vmatprep.mubr.msk.f32.mxu0 %vm8875_vm1, %v11951_v22  ;;  %8538 = vmatprep.mubr.msk.f32.mxu1 %vm8875_vm1, %v11951_v22  ;;  %v5561_v5 = vld [vmem:[#allocation4 + $0x2a] sm:$0xff] }
 0x376   : > { %8575 = vmatprep.subr.mxu0 %v11951_v22  ;;  %8627 = vmatpush3.msra.mxu1 %v6788_v32  ;;  %v4960_v32 = vld [vmem:[#allocation4 + $0x60] sm:$0xff] }
 0x377   : > { %8576 = vmatpush3.msra.mxu0 %v6767_v55  ;;  %8628 = vmatprep.subr.mxu1 %v11951_v22  ;;  %v11352_v55 = vld [vmem:[#allocation4 + $0x59] sm:$0xff] }
 0x378   : > { %8486 = vmatmul.mubr.msk.f32.gmra.mxu0 %vm306_vm0, %v4748_v12  ;;  %8539 = vmatmul.mubr.msk.f32.gmra.mxu1 %vm306_vm0, %v4749_v51  ;;  %v4959_v12 = vld [vmem:[#allocation4 + $0x58] sm:$0xff] }
 0x379   : > { %8488 = vmatprep.mubr.msk.f32.mxu0 %vm8875_vm1, %v11951_v22  ;;  %8541 = vmatprep.mubr.msk.f32.mxu1 %vm8875_vm1, %v11951_v22 }
 0x37a   : > { %8577 = vmatprep.subr.mxu0 %v11951_v22  ;;  %8629 = vmatpush3.msra.mxu1 %v6787_v40  ;;  %v11370_v40 = vld [vmem:[#allocation4 + $0x69] sm:$0xff] }
 0x37b   : > { %8578 = vmatpush3.msra.mxu0 %v6766_v13  ;;  %8630 = vmatprep.subr.mxu1 %v11951_v22  ;;  %v4961_v13 = vld [vmem:[#allocation4 + $0x68] sm:$0xff] }
 0x37c   : > { %8489 = vmatmul.mubr.msk.f32.gmra.mxu0 %vm306_vm0, %v4749_v51  ;;  %8542 = vmatmul.mubr.msk.f32.gmra.mxu1 %vm306_vm0, %v4750_v59  ;;  %v4467_v60 = vpop.f32.mrf.mxu1  ;;  %v11361_v51 = vld [vmem:[#allocation4 + $0x61] sm:$0xff] }
 0x37d   : > { %8491 = vmatprep.mubr.msk.f32.mxu0 %vm8875_vm1, %v11951_v22  ;;  %8544 = vmatprep.mubr.msk.f32.mxu1 %vm8875_vm1, %v11951_v22  ;;  %v11149_v24 = vadd.f32 %v4467_v60, %v4328_v57  ;;  %v6848_v57 = vld [vmem:[%s11920_s5 + $0x1e8] sm:$0xff]  ;;  %v6847_v60 = vld [vmem:[%s11920_s5 + $0x1e0] sm:$0xff] }
 0x37e   : > { %8579 = vmatprep.subr.mxu0 %v11951_v22  ;;  %8631 = vmatpush3.msra.mxu1 %v6786_v6  ;;  %v8428_v19 = vpop.f32.mrf.mxu1  ;;  %v6849_v6 = vld [vmem:[%s11920_s5 + $0x1f0] sm:$0xff] }
 0x37f   : > { %8580 = vmatpush3.msra.mxu0 %v6765_v54  ;;  %8632 = vmatprep.subr.mxu1 %v11951_v22  ;;  %v5165_v54 = vld [vmem:[#allocation4 + $0x71] sm:$0xf]  ;;  %v6845_v19 = vld [vmem:[%s11920_s5 + $0x1d0] sm:$0xff] }
 0x380   : > { %8492 = vmatmul.mubr.msk.f32.gmra.mxu0 %vm306_vm0, %v4750_v59  ;;  %8545 = vmatmul.mubr.msk.f32.gmra.mxu1 %vm306_vm0, %v4751_v14  ;;  %v4962_v59 = vld [vmem:[#allocation4 + $0x70] sm:$0xf] }
 0x381   : > { %8494 = vmatprep.mubr.msk.f32.mxu0 %vm8875_vm1, %v11951_v22  ;;  %8547 = vmatprep.mubr.msk.f32.mxu1 %vm8875_vm1, %v11951_v22 }
 0x382   : > { %8581 = vmatprep.subr.mxu0 %v11951_v22  ;;  %8633 = vmatpush3.msra.mxu1 %v6785_v16  ;;  %v5562_v16 = vld [vmem:[#allocation4 + $0x32] sm:$0xff] }
 0x383   : > { %8582 = vmatpush3.msra.mxu0 %v6764_v50  ;;  %8634 = vmatprep.subr.mxu1 %v11951_v22  ;;  %v6846_v50 = vld [vmem:[%s11920_s5 + $0x1d8] sm:$0xff] }
 0x384   : > { %8495 = vmatmul.mubr.msk.f32.gmra.mxu0 %vm306_vm0, %v4751_v14  ;;  %8548 = vmatmul.mubr.msk.f32.gmra.mxu1 %vm306_vm0, %v4752_v2  ;;  %v5560_v14 = vld [vmem:[#allocation4 + $0x22] sm:$0xff] }
 0x385   : > { %8497 = vmatprep.mubr.msk.f32.mxu0 %vm8875_vm1, %v11951_v22  ;;  %8550 = vmatprep.mubr.msk.f32.mxu1 %vm8875_vm1, %v11951_v22 }
 0x386   : > { %8583 = vmatprep.subr.mxu0 %v11951_v22  ;;  %8635 = vmatpush3.msra.mxu1 %v6784_v35  ;;  %v5564_v35 = vld [vmem:[#allocation4 + $0x42] sm:$0xff] }
 0x387   : > { %8584 = vmatpush3.msra.mxu0 %v6763_v1  ;;  %8636 = vmatprep.subr.mxu1 %v11951_v22  ;;  %v6844_v1 = vld [vmem:[%s11920_s5 + $0x1c8] sm:$0xff] }
 0x388   : > { %8498 = vmatmul.mubr.msk.f32.gmra.mxu0 %vm306_vm0, %v4752_v2  ;;  %8551 = vmatmul.mubr.msk.f32.gmra.mxu1 %vm306_vm0, %v4753_v46  ;;  %v5563_v2 = vld [vmem:[#allocation4 + $0x3a] sm:$0xff] }
 0x389   : > { %8500 = vmatprep.mubr.msk.f32.mxu0 %vm8875_vm1, %v11951_v22  ;;  %8553 = vmatprep.mubr.msk.f32.mxu1 %vm8875_vm1, %v11951_v22 }
 0x38a   : > { %8677 = vmatprep.subr.mxu0 %v11951_v22  ;;  %8637 = vmatpush3.msra.mxu1 %v6783_v9  ;;  %v5565_v9 = vld [vmem:[#allocation4 + $0x4a] sm:$0xff] }
 0x38b   : > { %8730 = vmatprep.subr.mxu1 %v11951_v22 }
 0x38c   : > { %8501 = vmatmul.mubr.msk.f32.gmra.mxu0 %vm306_vm0, %v4753_v46  ;;  %8554 = vmatmul.mubr.msk.f32.gmra.mxu1 %vm306_vm0, %v4754_v20  ;;  %v6843_v46 = vld [vmem:[%s11920_s5 + $0x1c0] sm:$0xff] }
 0x38d   : > { %8503 = vmatprep.mubr.msk.f32.mxu0 %vm8875_vm1, %v11951_v22  ;;  %8556 = vmatprep.mubr.msk.f32.mxu1 %vm8875_vm1, %v11951_v22 }
 0x390   : > { %8504 = vmatmul.mubr.msk.f32.gmra.mxu0 %vm306_vm0, %v4754_v20  ;;  %8557 = vmatmul.mubr.msk.f32.gmra.mxu1 %vm306_vm0, %v4755_v33  ;;  %v5566_v20 = vld [vmem:[#allocation4 + $0x52] sm:$0xff] }
 0x391   : > { %8506 = vmatprep.mubr.msk.f32.mxu0 %vm8875_vm1, %v11951_v22  ;;  %8559 = vmatprep.mubr.msk.f32.mxu1 %vm8875_vm1, %v11951_v22 }
 0x394   : > { %8507 = vmatmul.mubr.msk.f32.gmra.mxu0 %vm306_vm0, %v4755_v33  ;;  %8560 = vmatmul.mubr.msk.f32.gmra.mxu1 %vm306_vm0, %v4756_v18  ;;  %v5567_v33 = vld [vmem:[#allocation4 + $0x5a] sm:$0xff] }
 0x395   : > { %8509 = vmatprep.mubr.msk.f32.mxu0 %vm8875_vm1, %v11951_v22  ;;  %8562 = vmatprep.mubr.msk.f32.mxu1 %vm8875_vm1, %v11951_v22 }
 0x398   : > { %8510 = vmatmul.mubr.msk.f32.gmra.mxu0 %vm306_vm0, %v4756_v18  ;;  %8563 = vmatmul.mubr.msk.f32.gmra.mxu1 %vm306_vm0, %v4757_v26  ;;  %v5568_v18 = vld [vmem:[#allocation4 + $0x62] sm:$0xff] }
 0x399   : > { %8512 = vmatprep.mubr.msk.f32.mxu0 %vm8875_vm1, %v11951_v22  ;;  %8565 = vmatprep.mubr.msk.f32.mxu1 %vm8875_vm1, %v11951_v22 }
 0x39c   : > { %8513 = vmatmul.mubr.msk.f32.gmra.mxu0 %vm306_vm0, %v4757_v26  ;;  %8566 = vmatmul.mubr.msk.f32.gmra.mxu1 %vm306_vm0, %v4758_v36  ;;  %v5569_v26 = vld [vmem:[#allocation4 + $0x6a] sm:$0xff] }
 0x39d   : > { %8515 = vmatprep.mubr.msk.f32.mxu0 %vm8875_vm1, %v11951_v22  ;;  %8568 = vmatprep.mubr.msk.f32.mxu1 %vm8875_vm1, %v11951_v22 }
 0x3a0   : > { %8516 = vmatmul.mubr.msk.f32.gmra.mxu0 %vm306_vm0, %v4556_v27  ;;  %8569 = vmatmul.mubr.msk.f32.gmra.mxu1 %vm306_vm0, %v4759_v30 }
 0x3a1   : > { %8585 = vmatprep.mubr.msk.f32.mxu0 %vm8875_vm1, %v11951_v22  ;;  %8638 = vmatprep.mubr.msk.f32.mxu1 %vm8875_vm1, %v11951_v22 }
 0x3a4   : > { %8586 = vmatmul.mubr.msk.f32.vlgmr.msra.gmra.mxu0 %vm306_vm0, %v4950_v0  ;;  %8639 = vmatmul.mubr.msk.f32.vlgmr.msra.gmra.mxu1 %vm306_vm0, %v5153_v48 }
 0x3a5   : > { %8678 = vmatpush3.msra.mxu0 %v6809_v17  ;;  %8588 = vmatprep.mubr.msk.f32.mxu0 %vm8875_vm1, %v11951_v22 }
 0x3a6   : > { %8641 = vmatprep.mubr.msk.f32.mxu1 %vm8875_vm1, %v11951_v22  ;;  %8679 = vmatprep.subr.mxu0 %v11951_v22 }
 0x3a7   : > { %8680 = vmatpush3.msra.mxu0 %v6808_v52  ;;  %8731 = vmatpush3.msra.mxu1 %v6829_v62  ;;  %v5367_v52 = vld [vmem:[#allocation4 + $0x71] sm:$0xff] }
 0x3a8   : > { %8589 = vmatmul.mubr.msk.f32.gmra.mxu0 %vm306_vm0, %v4951_v7  ;;  %8642 = vmatmul.mubr.msk.f32.gmra.mxu1 %vm306_vm0, %v11235_v45  ;;  %v5570_v62 = vld [vmem:[#allocation4 + $0x72] sm:$0xff] }
 0x3a9   : > { %8591 = vmatprep.mubr.msk.f32.mxu0 %vm8875_vm1, %v11951_v22  ;;  %8644 = vmatprep.mubr.msk.f32.mxu1 %vm8875_vm1, %v11951_v22 }
 0x3aa   : > { %8681 = vmatprep.subr.mxu0 %v11951_v22  ;;  %8732 = vmatprep.subr.mxu1 %v11951_v22 }
 0x3ab   : > { %8682 = vmatpush3.msra.mxu0 %v6807_v37  ;;  %8733 = vmatpush3.msra.mxu1 %v6828_v41  ;;  %v5368_v41 = vld [vmem:[#allocation4 + $0x79] sm:$0xf] }
 0x3ac   : > { %8592 = vmatmul.mubr.msk.f32.gmra.mxu0 %vm306_vm0, %v4952_v25  ;;  %8645 = vmatmul.mubr.msk.f32.gmra.mxu1 %vm306_vm0, %v11252_v56  ;;  %v5571_v25 = vld [vmem:[#allocation4 + $0x7a] sm:$0xf] }
 0x3ad   : > { %8594 = vmatprep.mubr.msk.f32.mxu0 %vm8875_vm1, %v11951_v22  ;;  %8647 = vmatprep.mubr.msk.f32.mxu1 %vm8875_vm1, %v11951_v22 }
 0x3ae   : > { %8683 = vmatprep.subr.mxu0 %v11951_v22  ;;  %8734 = vmatprep.subr.mxu1 %v11951_v22 }
 0x3af   : > { %8684 = vmatpush3.msra.mxu0 %v6806_v15  ;;  %8735 = vmatpush3.msra.mxu1 %v6827_v4 }
 0x3b0   : > { %8595 = vmatmul.mubr.msk.f32.gmra.mxu0 %vm306_vm0, %v4953_v44  ;;  %8648 = vmatmul.mubr.msk.f32.gmra.mxu1 %vm306_vm0, %v11269_v38 }
 0x3b1   : > { %8597 = vmatprep.mubr.msk.f32.mxu0 %vm8875_vm1, %v11951_v22  ;;  %8650 = vmatprep.mubr.msk.f32.mxu1 %vm8875_vm1, %v11951_v22 }
 0x3b2   : > { %8685 = vmatprep.subr.mxu0 %v11951_v22  ;;  %8736 = vmatprep.subr.mxu1 %v11951_v22 }
 0x3b3   : > { %8686 = vmatpush3.msra.mxu0 %v6805_v8  ;;  %8737 = vmatpush3.msra.mxu1 %v6826_v53 }
 0x3b4   : > { %8598 = vmatmul.mubr.msk.f32.gmra.mxu0 %vm306_vm0, %v4954_v3  ;;  %8651 = vmatmul.mubr.msk.f32.gmra.mxu1 %vm306_vm0, %v11286_v39 }
 0x3b5   : > { %8600 = vmatprep.mubr.msk.f32.mxu0 %vm8875_vm1, %v11951_v22  ;;  %8653 = vmatprep.mubr.msk.f32.mxu1 %vm8875_vm1, %v11951_v22 }
 0x3b6   : > { %8687 = vmatprep.subr.mxu0 %v11951_v22  ;;  %8738 = vmatprep.subr.mxu1 %v11951_v22 }
 0x3b7   : > { %8688 = vmatpush3.msra.mxu0 %v6804_v63  ;;  %8739 = vmatpush3.msra.mxu1 %v6825_v61  ;;  %v5762_v63 = vld [vmem:[#allocation4 + $0x1b] sm:$0xff] }
 0x3b8   : > { %8601 = vmatmul.mubr.msk.f32.gmra.mxu0 %vm306_vm0, %v4955_v10  ;;  %8654 = vmatmul.mubr.msk.f32.gmra.mxu1 %vm306_vm0, %v11303_v58 }
 0x3b9   : > { %8603 = vmatprep.mubr.msk.f32.mxu0 %vm8875_vm1, %v11951_v22  ;;  %8656 = vmatprep.mubr.msk.f32.mxu1 %vm8875_vm1, %v11951_v22 }
 0x3ba   : > { %8689 = vmatprep.subr.mxu0 %v11951_v22  ;;  %8740 = vmatprep.subr.mxu1 %v11951_v22 }
 0x3bb   : > { %8690 = vmatpush3.msra.mxu0 %v6803_v49  ;;  %8741 = vmatpush3.msra.mxu1 %v6824_v47 }
 0x3bc   : > { %8604 = vmatmul.mubr.msk.f32.gmra.mxu0 %vm306_vm0, %v4956_v11  ;;  %8657 = vmatmul.mubr.msk.f32.gmra.mxu1 %vm306_vm0, %v11320_v28 }
 0x3bd   : > { %8606 = vmatprep.mubr.msk.f32.mxu0 %vm8875_vm1, %v11951_v22  ;;  %8659 = vmatprep.mubr.msk.f32.mxu1 %vm8875_vm1, %v11951_v22 }
 0x3be   : > { %8742 = vmatprep.subr.mxu1 %v11951_v22  ;;  %8783 = vmatprep.subr.mxu0 %v11951_v22 }
 0x3bf   : > { %8743 = vmatpush3.msra.mxu1 %v6823_v23 }
 0x3c0   : > { %8607 = vmatmul.mubr.msk.f32.gmra.mxu0 %vm306_vm0, %v4957_v42  ;;  %8660 = vmatmul.mubr.msk.f32.gmra.mxu1 %vm306_vm0, %v11334_v21 }
 0x3c1   : > { %8609 = vmatprep.mubr.msk.f32.mxu0 %vm8875_vm1, %v11951_v22  ;;  %8662 = vmatprep.mubr.msk.f32.mxu1 %vm8875_vm1, %v11951_v22 }
 0x3c4   : > { %8610 = vmatmul.mubr.msk.f32.gmra.mxu0 %vm306_vm0, %v4958_v43  ;;  %8663 = vmatmul.mubr.msk.f32.gmra.mxu1 %vm306_vm0, %v11343_v31 }
 0x3c5   : > { %8612 = vmatprep.mubr.msk.f32.mxu0 %vm8875_vm1, %v11951_v22  ;;  %8665 = vmatprep.mubr.msk.f32.mxu1 %vm8875_vm1, %v11951_v22 }
 0x3c8   : > { %8613 = vmatmul.mubr.msk.f32.gmra.mxu0 %vm306_vm0, %v4959_v12  ;;  %8666 = vmatmul.mubr.msk.f32.gmra.mxu1 %vm306_vm0, %v11352_v55 }
 0x3c9   : > { %8615 = vmatprep.mubr.msk.f32.mxu0 %vm8875_vm1, %v11951_v22  ;;  %8668 = vmatprep.mubr.msk.f32.mxu1 %vm8875_vm1, %v11951_v22 }
 0x3cc   : > { %8616 = vmatmul.mubr.msk.f32.gmra.mxu0 %vm306_vm0, %v4960_v32  ;;  %8669 = vmatmul.mubr.msk.f32.gmra.mxu1 %vm306_vm0, %v11361_v51 }
 0x3cd   : > { %8618 = vmatprep.mubr.msk.f32.mxu0 %vm8875_vm1, %v11951_v22  ;;  %8671 = vmatprep.mubr.msk.f32.mxu1 %vm8875_vm1, %v11951_v22 }
 0x3d0   : > { %8619 = vmatmul.mubr.msk.f32.gmra.mxu0 %vm306_vm0, %v4961_v13  ;;  %8672 = vmatmul.mubr.msk.f32.gmra.mxu1 %vm306_vm0, %v11370_v40 }
 0x3d1   : > { %8621 = vmatprep.mubr.msk.f32.mxu0 %vm8875_vm1, %v11951_v22  ;;  %8674 = vmatprep.mubr.msk.f32.mxu1 %vm8875_vm1, %v11951_v22 }
 0x3d4   : > { %8622 = vmatmul.mubr.msk.f32.gmra.mxu0 %vm306_vm0, %v4962_v59  ;;  %8675 = vmatmul.mubr.msk.f32.gmra.mxu1 %vm306_vm0, %v5165_v54 }
 0x3d5   : > { %8691 = vmatprep.mubr.msk.f32.mxu0 %vm8875_vm1, %v11951_v22  ;;  %8744 = vmatprep.mubr.msk.f32.mxu1 %vm8875_vm1, %v11951_v22 }
 0x3d8   : > { %8692 = vmatmul.mubr.msk.f32.vlgmr.msra.gmra.mxu0 %vm306_vm0, %v11235_v45  ;;  %8745 = vmatmul.mubr.msk.f32.vlgmr.msra.gmra.mxu1 %vm306_vm0, %v5559_v29 }
 0x3d9   : > { %8784 = vmatpush3.msra.mxu0 %v6849_v6  ;;  %8694 = vmatprep.mubr.msk.f32.mxu0 %vm8875_vm1, %v11951_v22  ;;  %v5765_v6 = vld [vmem:[#allocation4 + $0x33] sm:$0xff] }
 0x3da   : > { %8747 = vmatprep.mubr.msk.f32.mxu1 %vm8875_vm1, %v11951_v22  ;;  %8785 = vmatprep.subr.mxu0 %v11951_v22 }
 0x3db   : > { %8786 = vmatpush3.msra.mxu0 %v6848_v57 }
 0x3dc   : > { %8695 = vmatmul.mubr.msk.f32.gmra.mxu0 %vm306_vm0, %v11252_v56  ;;  %8748 = vmatmul.mubr.msk.f32.gmra.mxu1 %vm306_vm0, %v5560_v14 }
 0x3dd   : > { %8697 = vmatprep.mubr.msk.f32.mxu0 %vm8875_vm1, %v11951_v22  ;;  %8750 = vmatprep.mubr.msk.f32.mxu1 %vm8875_vm1, %v11951_v22 }
 0x3de   : > { %8787 = vmatprep.subr.mxu0 %v11951_v22 }
 0x3df   : > { %8788 = vmatpush3.msra.mxu0 %v6847_v60 }
 0x3e0   : > { %8698 = vmatmul.mubr.msk.f32.gmra.mxu0 %vm306_vm0, %v11269_v38  ;;  %8751 = vmatmul.mubr.msk.f32.gmra.mxu1 %vm306_vm0, %v5561_v5 }
 0x3e1   : > { %8700 = vmatprep.mubr.msk.f32.mxu0 %vm8875_vm1, %v11951_v22  ;;  %8753 = vmatprep.mubr.msk.f32.mxu1 %vm8875_vm1, %v11951_v22 }
 0x3e2   : > { %8789 = vmatprep.subr.mxu0 %v11951_v22 }
 0x3e3   : > { %8790 = vmatpush3.msra.mxu0 %v6846_v50 }
 0x3e4   : > { %8701 = vmatmul.mubr.msk.f32.gmra.mxu0 %vm306_vm0, %v11286_v39  ;;  %8754 = vmatmul.mubr.msk.f32.gmra.mxu1 %vm306_vm0, %v5562_v16  ;;  %v5766_v16 = vld [vmem:[#allocation4 + $0x3b] sm:$0xff] }
 0x3e5   : > { %8703 = vmatprep.mubr.msk.f32.mxu0 %vm8875_vm1, %v11951_v22  ;;  %8756 = vmatprep.mubr.msk.f32.mxu1 %vm8875_vm1, %v11951_v22 }
 0x3e6   : > { %8791 = vmatprep.subr.mxu0 %v11951_v22 }
 0x3e7   : > { %8792 = vmatpush3.msra.mxu0 %v6845_v19 }
 0x3e8   : > { %8704 = vmatmul.mubr.msk.f32.gmra.mxu0 %vm306_vm0, %v11303_v58  ;;  %8757 = vmatmul.mubr.msk.f32.gmra.mxu1 %vm306_vm0, %v5563_v2 }
 0x3e9   : > { %8706 = vmatprep.mubr.msk.f32.mxu0 %vm8875_vm1, %v11951_v22  ;;  %8759 = vmatprep.mubr.msk.f32.mxu1 %vm8875_vm1, %v11951_v22 }
 0x3ea   : > { %8793 = vmatprep.subr.mxu0 %v11951_v22 }
 0x3eb   : > { %8794 = vmatpush3.msra.mxu0 %v6844_v1 }
 0x3ec   : > { %8707 = vmatmul.mubr.msk.f32.gmra.mxu0 %vm306_vm0, %v11320_v28  ;;  %8760 = vmatmul.mubr.msk.f32.gmra.mxu1 %vm306_vm0, %v5564_v35  ;;  %v5763_v28 = vld [vmem:[#allocation4 + $0x23] sm:$0xff] }
 0x3ed   : > { %8709 = vmatprep.mubr.msk.f32.mxu0 %vm8875_vm1, %v11951_v22  ;;  %8762 = vmatprep.mubr.msk.f32.mxu1 %vm8875_vm1, %v11951_v22 }
 0x3ee   : > { %8795 = vmatprep.subr.mxu0 %v11951_v22 }
 0x3ef   : > { %8796 = vmatpush3.msra.mxu0 %v6843_v46 }
 0x3f0   : > { %8710 = vmatmul.mubr.msk.f32.gmra.mxu0 %vm306_vm0, %v11334_v21  ;;  %8763 = vmatmul.mubr.msk.f32.gmra.mxu1 %vm306_vm0, %v5565_v9 }
 0x3f1   : > { %8712 = vmatprep.mubr.msk.f32.mxu0 %vm8875_vm1, %v11951_v22  ;;  %8765 = vmatprep.mubr.msk.f32.mxu1 %vm8875_vm1, %v11951_v22 }
 0x3f4   : > { %8713 = vmatmul.mubr.msk.f32.gmra.mxu0 %vm306_vm0, %v11343_v31  ;;  %8766 = vmatmul.mubr.msk.f32.gmra.mxu1 %vm306_vm0, %v5566_v20  ;;  %v5767_v20 = vld [vmem:[#allocation4 + $0x43] sm:$0xff] }
 0x3f5   : > { %8715 = vmatprep.mubr.msk.f32.mxu0 %vm8875_vm1, %v11951_v22  ;;  %8768 = vmatprep.mubr.msk.f32.mxu1 %vm8875_vm1, %v11951_v22 }
 0x3f8   : > { %8716 = vmatmul.mubr.msk.f32.gmra.mxu0 %vm306_vm0, %v11352_v55  ;;  %8769 = vmatmul.mubr.msk.f32.gmra.mxu1 %vm306_vm0, %v5567_v33  ;;  %v5764_v55 = vld [vmem:[#allocation4 + $0x2b] sm:$0xff] }
 0x3f9   : > { %8718 = vmatprep.mubr.msk.f32.mxu0 %vm8875_vm1, %v11951_v22  ;;  %8771 = vmatprep.mubr.msk.f32.mxu1 %vm8875_vm1, %v11951_v22 }
 0x3fc   : > { %8719 = vmatmul.mubr.msk.f32.gmra.mxu0 %vm306_vm0, %v11361_v51  ;;  %8772 = vmatmul.mubr.msk.f32.gmra.mxu1 %vm306_vm0, %v5568_v18 }
 0x3fd   : > { %8721 = vmatprep.mubr.msk.f32.mxu0 %vm8875_vm1, %v11951_v22  ;;  %8774 = vmatprep.mubr.msk.f32.mxu1 %vm8875_vm1, %v11951_v22 }
 0x3ff   : > { %v4269_v36 = vpop.f32.mrf.mxu0 }
 0x400   : > { %v4472_v27 = vpop.f32.mrf.mxu1  ;;  %8722 = vmatmul.mubr.msk.f32.gmra.mxu0 %vm306_vm0, %v11370_v40  ;;  %8775 = vmatmul.mubr.msk.f32.gmra.mxu1 %vm306_vm0, %v5569_v26  ;;  %v4329_v30 = vadd.f32 %v11124_v34, %v4269_v36 }
 0x401   : > { %8724 = vmatprep.mubr.msk.f32.mxu0 %vm8875_vm1, %v11951_v22  ;;  %8777 = vmatprep.mubr.msk.f32.mxu1 %vm8875_vm1, %v11951_v22  ;;  %v8378_v17 = vpop.f32.mrf.mxu0 }
 0x402   : > { %v8431_v0 = vpop.f32.mrf.mxu1  ;;  %v11490_v48 = vadd.f32 %v4472_v27, %v4329_v30  ;;  %v5768_v17 = vld [vmem:[#allocation4 + $0x4b] sm:$0xff] }
 0x403   : > { %v4274_v7 = vpop.f32.mrf.mxu0 }
 0x404   : > { %v4477_v45 = vpop.f32.mrf.mxu1  ;;  %8725 = vmatmul.mubr.msk.f32.gmra.mxu0 %vm306_vm0, %v5367_v52  ;;  %8778 = vmatmul.mubr.msk.f32.gmra.mxu1 %vm306_vm0, %v5570_v62  ;;  %v4330_v37 = vadd.f32 %v11124_v34, %v4274_v7 }
 0x405   : > { %8727 = vmatprep.mubr.msk.f32.mxu0 %vm8875_vm1, %v11951_v22  ;;  %8780 = vmatprep.mubr.msk.f32.mxu1 %vm8875_vm1, %v11951_v22  ;;  %v8381_v56 = vpop.f32.mrf.mxu0 }
 0x406   : > { %v8434_v15 = vpop.f32.mrf.mxu1  ;;  %v11499_v4 = vadd.f32 %v4477_v45, %v4330_v37 }
 0x407   : > { %v4279_v44 = vpop.f32.mrf.mxu0 }
 0x408   : > { %v4482_v38 = vpop.f32.mrf.mxu1  ;;  %8728 = vmatmul.mubr.msk.f32.gmra.mxu0 %vm306_vm0, %v5368_v41  ;;  %8781 = vmatmul.mubr.msk.f32.gmra.mxu1 %vm306_vm0, %v5571_v25  ;;  %v4331_v8 = vadd.f32 %v11124_v34, %v4279_v44  ;;  %v5769_v41 = vld [vmem:[#allocation4 + $0x53] sm:$0xff] }
 0x409   : > { %8797 = vmatprep.mubr.msk.f32.mxu0 %vm8875_vm1, %v11951_v22  ;;  %v8384_v53 = vpop.f32.mrf.mxu0 }
 0x40a   : > { %v8437_v3 = vpop.f32.mrf.mxu1  ;;  %v11506_v39 = vadd.f32 %v4482_v38, %v4331_v8  ;;  %v5770_v53 = vld [vmem:[#allocation4 + $0x5b] sm:$0xff] }
 0x40b   : > { %v4284_v61 = vpop.f32.mrf.mxu0 }
 0x40c   : > { %v4487_v10 = vpop.f32.mrf.mxu1  ;;  %8798 = vmatmul.mubr.msk.f32.vlgmr.msra.gmra.mxu0 %vm306_vm0, %v5762_v63  ;;  %v4332_v58 = vadd.f32 %v11124_v34, %v4284_v61 }
 0x40d   : > { %8800 = vmatprep.mubr.msk.f32.mxu0 %vm8875_vm1, %v11951_v22  ;;  %v8387_v49 = vpop.f32.mrf.mxu0 }
 0x40e   : > { %v8440_v47 = vpop.f32.mrf.mxu1  ;;  %v11512_v11 = vadd.f32 %v4487_v10, %v4332_v58 }
 0x40f   : > { %v4289_v23 = vpop.f32.mrf.mxu0  ;;  %v5771_v47 = vld [vmem:[#allocation4 + $0x63] sm:$0xff] }
 0x410   : > { %v4492_v42 = vpop.f32.mrf.mxu1  ;;  %8801 = vmatmul.mubr.msk.f32.gmra.mxu0 %vm306_vm0, %v5763_v28  ;;  %v4333_v21 = vadd.f32 %v11124_v34, %v4289_v23 }
 0x411   : > { %8803 = vmatprep.mubr.msk.f32.mxu0 %vm8875_vm1, %v11951_v22  ;;  %v8390_v43 = vpop.f32.mrf.mxu0 }
 0x412   : > { %v8443_v31 = vpop.f32.mrf.mxu1  ;;  %v11518_v12 = vadd.f32 %v4492_v42, %v4333_v21 }
 0x413   : > { %v4294_v32 = vpop.f32.mrf.mxu0  ;;  %v5772_v31 = vld [vmem:[#allocation4 + $0x6b] sm:$0xff] }
 0x414   : > { %v4497_v51 = vpop.f32.mrf.mxu1  ;;  %8804 = vmatmul.mubr.msk.f32.gmra.mxu0 %vm306_vm0, %v5764_v55  ;;  %v4334_v13 = vadd.f32 %v11124_v34, %v4294_v32 }
 0x415   : > { %8806 = vmatprep.mubr.msk.f32.mxu0 %vm8875_vm1, %v11951_v22  ;;  %v8393_v40 = vpop.f32.mrf.mxu0 }
 0x416   : > { %v8446_v59 = vpop.f32.mrf.mxu1  ;;  %v11524_v54 = vadd.f32 %v4497_v51, %v4334_v13 }
 0x417   : > { %v4299_v29 = vpop.f32.mrf.mxu0  ;;  %v5773_v59 = vld [vmem:[#allocation4 + $0x73] sm:$0xff] }
 0x418   : > { %v4502_v57 = vpop.f32.mrf.mxu1  ;;  %8807 = vmatmul.mubr.msk.f32.gmra.mxu0 %vm306_vm0, %v5765_v6  ;;  %v4335_v14 = vadd.f32 %v11124_v34, %v4299_v29 }
 0x419   : > { %8809 = vmatprep.mubr.msk.f32.mxu0 %vm8875_vm1, %v11951_v22  ;;  %v8396_v60 = vpop.f32.mrf.mxu0 }
 0x41a   : > { %v8449_v5 = vpop.f32.mrf.mxu1  ;;  %v11530_v50 = vadd.f32 %v4502_v57, %v4335_v14  ;;  %v5774_v14 = vld [vmem:[#allocation4 + $0x7b] sm:$0xf] }
 0x41b   : > { %v4304_v19 = vpop.f32.mrf.mxu0 }
 0x41c   : > { %v4507_v2 = vpop.f32.mrf.mxu1  ;;  %8810 = vmatmul.mubr.msk.f32.gmra.mxu0 %vm306_vm0, %v5766_v16  ;;  %v4336_v1 = vadd.f32 %v11124_v34, %v4304_v19 }
 0x41d   : > { %8812 = vmatprep.mubr.msk.f32.mxu0 %vm8875_vm1, %v11951_v22  ;;  %v8399_v35 = vpop.f32.mrf.mxu0 }
 0x41e   : > { %v8452_v46 = vpop.f32.mrf.mxu1  ;;  %v11536_v9 = vadd.f32 %v4507_v2, %v4336_v1 }
 0x41f   : > { %v4309_v33 = vpop.f32.mrf.mxu0 }
 0x420   : > { %v4512_v18 = vpop.f32.mrf.mxu1  ;;  %8813 = vmatmul.mubr.msk.f32.gmra.mxu0 %vm306_vm0, %v5767_v20  ;;  %v4337_v26 = vadd.f32 %v11124_v34, %v4309_v33 }
 0x421   : > { %8815 = vmatprep.mubr.msk.f32.mxu0 %vm8875_vm1, %v11951_v22  ;;  %v8402_v36 = vpop.f32.mrf.mxu0 }
 0x422   : > { %v8455_v27 = vpop.f32.mrf.mxu1  ;;  %v11542_v30 = vadd.f32 %v4512_v18, %v4337_v26 }
 0x423   : > { %v4314_v0 = vpop.f32.mrf.mxu0 }
 0x424   : > { %v4517_v52 = vpop.f32.mrf.mxu1  ;;  %8816 = vmatmul.mubr.msk.f32.gmra.mxu0 %vm306_vm0, %v5768_v17  ;;  %v4338_v62 = vadd.f32 %v11124_v34, %v4314_v0 }
 0x425   : > { %8818 = vmatprep.mubr.msk.f32.mxu0 %vm8875_vm1, %v11951_v22  ;;  %v8405_v7 = vpop.f32.mrf.mxu0 }
 0x426   : > { %v8458_v45 = vpop.f32.mrf.mxu1  ;;  %v11548_v37 = vadd.f32 %v4517_v52, %v4338_v62 }
 0x427   : > { %v4319_v25 = vpop.f32.mrf.mxu0 }
 0x428   : > { %v4522_v56 = vpop.f32.mrf.mxu1  ;;  %8819 = vmatmul.mubr.msk.f32.gmra.mxu0 %vm306_vm0, %v5769_v41  ;;  %v4339_v15 = vadd.f32 %v11124_v34, %v4319_v25 }
 0x429   : > { %8821 = vmatprep.mubr.msk.f32.mxu0 %vm8875_vm1, %v11951_v22  ;;  %v8408_v44 = vpop.f32.mrf.mxu0 }
 0x42a   : > { %v8461_v38 = vpop.f32.mrf.mxu1  ;;  %v11554_v8 = vadd.f32 %v4522_v56, %v4339_v15 }
 0x42b   : > { %v4324_v3 = vpop.f32.mrf.mxu0 }
 0x42c   : > { %v4527_v63 = vpop.f32.mrf.mxu1  ;;  %8822 = vmatmul.mubr.msk.f32.gmra.mxu0 %vm306_vm0, %v5770_v53  ;;  %v4340_v61 = vadd.f32 %v11124_v34, %v4324_v3 }
 0x42d   : > { %8824 = vmatprep.mubr.msk.f32.mxu0 %vm8875_vm1, %v11951_v22  ;;  %v8411_v10 = vpop.f32.mrf.mxu0 }
 0x42e   : > { %v8464_v58 = vpop.f32.mrf.mxu1  ;;  %v11560_v49 = vadd.f32 %v4527_v63, %v4340_v61 }
 0x42f   : > { %v4670_v28 = vpop.f32.mrf.mxu0 }
 0x430   : > { %v4873_v23 = vpop.f32.mrf.mxu1  ;;  %8825 = vmatmul.mubr.msk.f32.gmra.mxu0 %vm306_vm0, %v5771_v47  ;;  %v4734_v42 = vadd.f32 %v4670_v28, %v11149_v24 }
 0x431   : > { %8827 = vmatprep.mubr.msk.f32.mxu0 %vm8875_vm1, %v11951_v22  ;;  %v8481_v21 = vpop.f32.mrf.mxu0 }
 0x432   : > { %v8534_v43 = vpop.f32.mrf.mxu1  ;;  %v11566_v34 = vadd.f32 %v4873_v23, %v4734_v42 }
 0x434   : > { %v4675_v55 = vpop.f32.mrf.mxu0  ;;  %v4878_v32 = vpop.f32.mrf.mxu1  ;;  %8828 = vmatmul.mubr.msk.f32.gmra.mxu0 %vm306_vm0, %v5772_v31 }
 0x435   : > { %v4735_v51 = vadd.f32 %v4675_v55, %v11490_v48  ;;  %8830 = vmatprep.mubr.msk.f32.mxu0 %vm8875_vm1, %v11951_v22 }
 0x436   : > { %v8484_v13 = vpop.f32.mrf.mxu0  ;;  %v8537_v40 = vpop.f32.mrf.mxu1 }
 0x437   : > { %v11572_v24 = vadd.f32 %v4878_v32, %v4735_v51 }
 0x438   : > { %v4680_v6 = vpop.f32.mrf.mxu0  ;;  %v4883_v29 = vpop.f32.mrf.mxu1  ;;  %8831 = vmatmul.mubr.msk.f32.gmra.mxu0 %vm306_vm0, %v5773_v59 }
 0x439   : > { %v4736_v57 = vadd.f32 %v4680_v6, %v11499_v4  ;;  %8833 = vmatprep.mubr.msk.f32.mxu0 %vm8875_vm1, %v11951_v22  ;;  %vm6277_vm1 = vcmask 60416  }
 0x43a   : > { %v8487_v60 = vpop.f32.mrf.mxu0  ;;  %v8540_v48 = vpop.f32.mrf.mxu1 }
 0x43b   : > { %v11578_v5 = vadd.f32 %v4883_v29, %v4736_v57 }
 0x43c   : > { %v4685_v16 = vpop.f32.mrf.mxu0  ;;  %v4888_v19 = vpop.f32.mrf.mxu1  ;;  %8834 = vmatmul.mubr.msk.f32.gmra.mxu0 %vm306_vm0, %v5774_v14  ;;  %vm6264_vm0 = vcmask 64512  }
 0x43d   : > { %v4737_v2 = vadd.f32 %v4685_v16, %v11506_v39 }
 0x43e   : > { %v8490_v1 = vpop.f32.mrf.mxu0  ;;  %v8543_v35 = vpop.f32.mrf.mxu1 }
 0x43f   : > { %v11582_v46 = vadd.f32 %v4888_v19, %v4737_v2 }
 0x440   : > { %v4690_v20 = vpop.f32.mrf.mxu0  ;;  %v4893_v4 = vpop.f32.mrf.mxu1 }
 0x441   : > { %v4738_v33 = vadd.f32 %v4690_v20, %v11512_v11 }
 0x442   : > { %v8493_v22 = vpop.f32.mrf.mxu0  ;;  %v8546_v18 = vpop.f32.mrf.mxu1 }
 0x443   : > { %v11585_v26 = vadd.f32 %v4893_v4, %v4738_v33 }
 0x444   : > { %v4695_v36 = vpop.f32.mrf.mxu0  ;;  %v4898_v27 = vpop.f32.mrf.mxu1 }
 0x445   : > { %v4739_v17 = vadd.f32 %v4695_v36, %v11518_v12 }
 0x446   : > { %v8496_v0 = vpop.f32.mrf.mxu0  ;;  %v8549_v52 = vpop.f32.mrf.mxu1 }
 0x447   : > { %v11588_v62 = vadd.f32 %v4898_v27, %v4739_v17 }
 0x448   : > { %v4700_v39 = vpop.f32.mrf.mxu0  ;;  %v4903_v7 = vpop.f32.mrf.mxu1 }
 0x449   : > { %v4740_v45 = vadd.f32 %v4700_v39, %v11524_v54 }
 0x44a   : > { %v8499_v41 = vpop.f32.mrf.mxu0  ;;  %v8552_v25 = vpop.f32.mrf.mxu1 }
 0x44b   : > { %v11591_v56 = vadd.f32 %v4903_v7, %v4740_v45 }
 0x44c   : > { %v4705_v11 = vpop.f32.mrf.mxu0  ;;  %v4908_v15 = vpop.f32.mrf.mxu1 }
 0x44d   : > { %v4741_v44 = vadd.f32 %v4705_v11, %v11530_v50 }
 0x44e   : > { %v8502_v38 = vpop.f32.mrf.mxu0  ;;  %v8555_v53 = vpop.f32.mrf.mxu1 }
 0x44f   : > { %v11594_v3 = vadd.f32 %v4908_v15, %v4741_v44 }
 0x450   : > { %v4710_v12 = vpop.f32.mrf.mxu0  ;;  %v4913_v63 = vpop.f32.mrf.mxu1 }
 0x451   : > { %v4742_v61 = vadd.f32 %v4710_v12, %v11536_v9 }
 0x452   : > { %v8505_v10 = vpop.f32.mrf.mxu0  ;;  %v8558_v58 = vpop.f32.mrf.mxu1 }
 0x453   : > { %v11597_v47 = vadd.f32 %v4913_v63, %v4742_v61 }
 0x454   : > { %v4715_v54 = vpop.f32.mrf.mxu0  ;;  %v4918_v28 = vpop.f32.mrf.mxu1 }
 0x455   : > { %v4743_v23 = vadd.f32 %v4715_v54, %v11542_v30 }
 0x456   : > { %v8508_v42 = vpop.f32.mrf.mxu0  ;;  %v8561_v21 = vpop.f32.mrf.mxu1 }
 0x457   : > { %v11600_v43 = vadd.f32 %v4918_v28, %v4743_v23 }
 0x458   : > { %v4720_v50 = vpop.f32.mrf.mxu0  ;;  %v4923_v31 = vpop.f32.mrf.mxu1 }
 0x459   : > { %v4744_v55 = vadd.f32 %v4720_v50, %v11548_v37 }
 0x45a   : > { %v8511_v32 = vpop.f32.mrf.mxu0  ;;  %v8564_v51 = vpop.f32.mrf.mxu1 }
 0x45b   : > { %v11603_v13 = vadd.f32 %v4923_v31, %v4744_v55 }
 0x45c   : > { %v4725_v9 = vpop.f32.mrf.mxu0  ;;  %v4928_v40 = vpop.f32.mrf.mxu1 }
 0x45d   : > { %v4745_v59 = vadd.f32 %v4725_v9, %v11554_v8 }
 0x45e   : > { %v8514_v6 = vpop.f32.mrf.mxu0  ;;  %v8567_v29 = vpop.f32.mrf.mxu1 }
 0x45f   : > { %v11606_v57 = vadd.f32 %v4928_v40, %v4745_v59 }
 0x460   : > { %v4730_v30 = vpop.f32.mrf.mxu0  ;;  %v4933_v14 = vpop.f32.mrf.mxu1 }
 0x461   : > { %v4746_v60 = vadd.f32 %v4730_v30, %v11560_v49 }
 0x462   : > { %v8517_v48 = vpop.f32.mrf.mxu0  ;;  %v8570_v16 = vpop.f32.mrf.mxu1 }
 0x463   : > { %v11609_v19 = vadd.f32 %v4933_v14, %v4746_v60 }
 0x464   : > { %v5076_v37 = vpop.f32.mrf.mxu0  ;;  %v5279_v2 = vpop.f32.mrf.mxu1 }
 0x465   : > { %v5140_v1 = vadd.f32 %v5076_v37, %v11566_v34 }
 0x466   : > { %v8587_v35 = vpop.f32.mrf.mxu0  ;;  %v8640_v20 = vpop.f32.mrf.mxu1 }
 0x467   : > { %v11612_v4 = vadd.f32 %v5279_v2, %v5140_v1 }
 0x468   : > { %v5081_v8 = vpop.f32.mrf.mxu0  ;;  %v5284_v33 = vpop.f32.mrf.mxu1 }
 0x469   : > { %v5141_v22 = vadd.f32 %v5081_v8, %v11572_v24 }
 0x46a   : > { %v8590_v18 = vpop.f32.mrf.mxu0  ;;  %v8643_v36 = vpop.f32.mrf.mxu1 }
 0x46b   : > { %v11615_v27 = vadd.f32 %v5284_v33, %v5141_v22 }
 0x46c   : > { %v5086_v49 = vpop.f32.mrf.mxu0  ;;  %v5289_v17 = vpop.f32.mrf.mxu1 }
 0x46d   : > { %v5142_v0 = vadd.f32 %v5086_v49, %v11578_v5 }
 0x46e   : > { %v8593_v52 = vpop.f32.mrf.mxu0  ;;  %v8646_v39 = vpop.f32.mrf.mxu1 }
 0x46f   : > { %v11618_v7 = vadd.f32 %v5289_v17, %v5142_v0 }
 0x470   : > { %v5091_v34 = vpop.f32.mrf.mxu0  ;;  %v5294_v45 = vpop.f32.mrf.mxu1 }
 0x471   : > { %v5143_v41 = vadd.f32 %v5091_v34, %v11582_v46 }
 0x472   : > { %v8596_v25 = vpop.f32.mrf.mxu0  ;;  %v8649_v11 = vpop.f32.mrf.mxu1 }
 0x473   : > { %v11621_v15 = vadd.f32 %v5294_v45, %v5143_v41 }
 0x474   : > { %v5096_v24 = vpop.f32.mrf.mxu0  ;;  %v5299_v44 = vpop.f32.mrf.mxu1 }
 0x475   : > { %v5144_v38 = vadd.f32 %v5096_v24, %v11585_v26 }
 0x476   : > { %v8599_v53 = vpop.f32.mrf.mxu0  ;;  %v8652_v12 = vpop.f32.mrf.mxu1 }
 0x477   : > { %v11624_v63 = vadd.f32 %v5299_v44, %v5144_v38 }
 0x478   : > { %v5101_v5 = vpop.f32.mrf.mxu0  ;;  %v5304_v61 = vpop.f32.mrf.mxu1 }
 0x479   : > { %v5145_v10 = vadd.f32 %v5101_v5, %v11588_v62 }
 0x47a   : > { %v8602_v58 = vpop.f32.mrf.mxu0  ;;  %v8655_v54 = vpop.f32.mrf.mxu1 }
 0x47b   : > { %v11627_v28 = vadd.f32 %v5304_v61, %v5145_v10 }
 0x47c   : > { %v5106_v46 = vpop.f32.mrf.mxu0  ;;  %v5309_v23 = vpop.f32.mrf.mxu1 }
 0x47d   : > { %v5146_v42 = vadd.f32 %v5106_v46, %v11591_v56 }
 0x47e   : > { %v8605_v21 = vpop.f32.mrf.mxu0  ;;  %v8658_v50 = vpop.f32.mrf.mxu1 }
 0x47f   : > { %v11630_v31 = vadd.f32 %v5309_v23, %v5146_v42 }
 0x480   : > { %v5111_v26 = vpop.f32.mrf.mxu0  ;;  %v5314_v55 = vpop.f32.mrf.mxu1 }
 0x481   : > { %v5147_v32 = vadd.f32 %v5111_v26, %v11594_v3 }
 0x482   : > { %v8608_v51 = vpop.f32.mrf.mxu0  ;;  %v8661_v9 = vpop.f32.mrf.mxu1 }
 0x483   : > { %v11633_v40 = vadd.f32 %v5314_v55, %v5147_v32 }
 0x484   : > { %v5116_v62 = vpop.f32.mrf.mxu0  ;;  %v5319_v59 = vpop.f32.mrf.mxu1 }
 0x485   : > { %v5148_v6 = vadd.f32 %v5116_v62, %v11597_v47 }
 0x486   : > { %v8611_v29 = vpop.f32.mrf.mxu0  ;;  %v8664_v30 = vpop.f32.mrf.mxu1 }
 0x487   : > { %v11636_v14 = vadd.f32 %v5319_v59, %v5148_v6 }
 0x488   : > { %v5121_v56 = vpop.f32.mrf.mxu0  ;;  %v5324_v60 = vpop.f32.mrf.mxu1 }
 0x489   : > { %v5149_v48 = vadd.f32 %v5121_v56, %v11600_v43 }
 0x48a   : > { %v8614_v16 = vpop.f32.mrf.mxu0  ;;  %v8667_v37 = vpop.f32.mrf.mxu1 }
 0x48b   : > { %v11639_v2 = vadd.f32 %v5324_v60, %v5149_v48 }
 0x48c   : > { %v5126_v3 = vpop.f32.mrf.mxu0  ;;  %v5329_v1 = vpop.f32.mrf.mxu1 }
 0x48d   : > { %v5150_v35 = vadd.f32 %v5126_v3, %v11603_v13 }
 0x48e   : > { %v8617_v20 = vpop.f32.mrf.mxu0  ;;  %v8670_v8 = vpop.f32.mrf.mxu1 }
 0x48f   : > { %v11642_v33 = vadd.f32 %v5329_v1, %v5150_v35 }
 0x490   : > { %v5131_v47 = vpop.f32.mrf.mxu0  ;;  %v5334_v22 = vpop.f32.mrf.mxu1 }
 0x491   : > { %v5151_v18 = vadd.f32 %v5131_v47, %v11606_v57 }
 0x492   : > { %v8620_v36 = vpop.f32.mrf.mxu0  ;;  %v8673_v49 = vpop.f32.mrf.mxu1 }
 0x493   : > { %v11645_v17 = vadd.f32 %v5334_v22, %v5151_v18 }
 0x494   : > { %v5136_v43 = vpop.f32.mrf.mxu0  ;;  %v5339_v0 = vpop.f32.mrf.mxu1 }
 0x495   : > { %v5152_v52 = vadd.f32 %v5136_v43, %v11609_v19 }
 0x496   : > { %v8623_v39 = vpop.f32.mrf.mxu0  ;;  %v8676_v34 = vpop.f32.mrf.mxu1 }
 0x497   : > { %v11648_v45 = vadd.f32 %v5339_v0, %v5152_v52 }
 0x498   : > { %v11650_v13 = vpop.f32.mrf.mxu0  ;;  %v11652_v41 = vpop.f32.mrf.mxu1 }
 0x49a   : > { %v8693_v25 = vpop.f32.mrf.mxu0  ;;  %v8746_v11 = vpop.f32.mrf.mxu1 }
 0x49c   : > { %v11654_v24 = vpop.f32.mrf.mxu0  ;;  %v11656_v57 = vpop.f32.mrf.mxu1 }
 0x49e   : > { %v8696_v44 = vpop.f32.mrf.mxu0  ;;  %v8749_v38 = vpop.f32.mrf.mxu1 }
 0x4a0   : > { %v11658_v53 = vpop.f32.mrf.mxu0  ;;  %v11660_v12 = vpop.f32.mrf.mxu1 }
 0x4a2   : > { %v8699_v19 = vpop.f32.mrf.mxu0  ;;  %v8752_v5 = vpop.f32.mrf.mxu1 }
 0x4a4   : > { %v5497_v61 = vpop.f32.mrf.mxu0  ;;  %v5700_v10 = vpop.f32.mrf.mxu1 }
 0x4a5   : > { %v5549_v58 = vadd.f32 %v5497_v61, %v11621_v15 }
 0x4a6   : > { %v8702_v54 = vpop.f32.mrf.mxu0  ;;  %v8755_v46 = vpop.f32.mrf.mxu1 }
 0x4a7   : > { %v11663_v23 = vadd.f32 %v5700_v10, %v5549_v58 }
 0x4a8   : > { %v5502_v42 = vpop.f32.mrf.mxu0  ;;  %v5705_v21 = vpop.f32.mrf.mxu1 }
 0x4a9   : > { %v5550_v50 = vadd.f32 %v5502_v42, %v11624_v63 }
 0x4aa   : > { %v8705_v26 = vpop.f32.mrf.mxu0  ;;  %v8758_v55 = vpop.f32.mrf.mxu1 }
 0x4ab   : > { %v11666_v32 = vadd.f32 %v5705_v21, %v5550_v50 }
 0x4ac   : > { %v5507_v51 = vpop.f32.mrf.mxu0  ;;  %v5710_v9 = vpop.f32.mrf.mxu1 }
 0x4ad   : > { %v5551_v62 = vadd.f32 %v5507_v51, %v11627_v28 }
 0x4ae   : > { %v8708_v59 = vpop.f32.mrf.mxu0  ;;  %v8761_v6 = vpop.f32.mrf.mxu1 }
 0x4af   : > { %v11669_v29 = vadd.f32 %v5710_v9, %v5551_v62 }
 0x4b0   : > { %v5512_v15 = vpop.f32.mrf.mxu0  ;;  %v5715_v30 = vpop.f32.mrf.mxu1 }
 0x4b1   : > { %v5552_v56 = vadd.f32 %v5512_v15, %v11630_v31 }
 0x4b2   : > { %v8711_v60 = vpop.f32.mrf.mxu0  ;;  %v8764_v48 = vpop.f32.mrf.mxu1 }
 0x4b3   : > { %v11672_v16 = vadd.f32 %v5715_v30, %v5552_v56 }
 0x4b4   : > { %v5517_v63 = vpop.f32.mrf.mxu0  ;;  %v5720_v37 = vpop.f32.mrf.mxu1 }
 0x4b5   : > { %v5553_v3 = vadd.f32 %v5517_v63, %v11633_v40 }
 0x4b6   : > { %v8714_v1 = vpop.f32.mrf.mxu0  ;;  %v8767_v35 = vpop.f32.mrf.mxu1 }
 0x4b7   : > { %v11675_v20 = vadd.f32 %v5720_v37, %v5553_v3 }
 0x4b8   : > { %v5522_v28 = vpop.f32.mrf.mxu0  ;;  %v5725_v8 = vpop.f32.mrf.mxu1 }
 0x4b9   : > { %v5554_v47 = vadd.f32 %v5522_v28, %v11636_v14 }
 0x4ba   : > { %v8717_v22 = vpop.f32.mrf.mxu0  ;;  %v8770_v18 = vpop.f32.mrf.mxu1 }
 0x4bb   : > { %v11678_v36 = vadd.f32 %v5725_v8, %v5554_v47 }
 0x4bc   : > { %v5527_v31 = vpop.f32.mrf.mxu0  ;;  %v5730_v49 = vpop.f32.mrf.mxu1 }
 0x4bd   : > { %v5555_v43 = vadd.f32 %v5527_v31, %v11639_v2  ;;  %v5546_v2 = vadd.f32 %v11650_v13, %v11612_v4 }
 0x4be   : > { %v8720_v0 = vpop.f32.mrf.mxu0  ;;  %v8773_v52 = vpop.f32.mrf.mxu1 }
 0x4bf   : > { %v11681_v39 = vadd.f32 %v5730_v49, %v5555_v43  ;;  %v5749_v50 = vadd.f32 %v11652_v41, %v5546_v2 }
 0x4c0   : > { %v5532_v40 = vpop.f32.mrf.mxu0  ;;  %v5735_v34 = vpop.f32.mrf.mxu1 }
 0x4c1   : > { %v5556_v25 = vadd.f32 %v5532_v40, %v11642_v33 }
 0x4c2   : > { %v8723_v11 = vpop.f32.mrf.mxu0  ;;  %v8776_v44 = vpop.f32.mrf.mxu1 }
 0x4c3   : > { %v11684_v38 = vadd.f32 %v5735_v34, %v5556_v25 }
 0x4c4   : > { %v5537_v14 = vpop.f32.mrf.mxu0  ;;  %v5740_v19 = vpop.f32.mrf.mxu1 }
 0x4c5   : > { %v5557_v5 = vadd.f32 %v5537_v14, %v11645_v17  ;;  %v5547_v17 = vadd.f32 %v11654_v24, %v11615_v27  ;;  %v5548_v27 = vadd.f32 %v11658_v53, %v11618_v7 }
 0x4c6   : > { %v8726_v61 = vpop.f32.mrf.mxu0  ;;  %v8779_v10 = vpop.f32.mrf.mxu1 }
 0x4c7   : > { %v11689_v58 = vadd.f32 %v5740_v19, %v5557_v5  ;;  %v5750_v13 = vadd.f32 %v11656_v57, %v5547_v17  ;;  %v5751_v15 = vadd.f32 %v11660_v12, %v5548_v27 }
 0x4c8   : > { %v5542_v54 = vpop.f32.mrf.mxu0  ;;  %v5745_v46 = vpop.f32.mrf.mxu1 }
 0x4c9   : > { %v5558_v42 = vadd.f32 %v5542_v54, %v11648_v45 }
 0x4ca   : > { %v8729_v33 = vpop.f32.mrf.mxu0  ;;  %v8782_v21 = vpop.f32.mrf.mxu1 }
 0x4cb   : > { %v11693_v26 = vadd.f32 %v5745_v46, %v5558_v42 }
 0x4cc   : > { %v5888_v55 = vpop.f32.mrf.mxu0 }
 0x4cd   : > { %v5952_v51 = vadd.f32 %v5888_v55, %v5749_v50 }
 0x4ce   : > { %v8799_v9 = vpop.f32.mrf.mxu0 }
 0x4cf   : > { %v11697_v62 = vmax.f32 %v5952_v51, 0.0 }
 0x4d0   : > { %v5893_v4 = vpop.f32.mrf.mxu0 }
 0x4d1   : > { %6043 = vrot.lane.b32.xlu1 %v11697_v62, %s8876_s23  ;;  %5991 = vrot.lane.b32.xlu0 %v11697_v62, %s8877_s24  ;;  %v5953_v41 = vadd.f32 %v5893_v4, %v5750_v13 }
 0x4d2   : > { %v8802_v45 = vpop.f32.mrf.mxu0 }
 0x4d3   : > { %v11710_v57 = vmax.f32 %v5953_v41, 0.0 }
 0x4d4   : > { %v5898_v59 = vpop.f32.mrf.mxu0 }
 0x4d5   : > { %6147 = vrot.lane.b32.xlu1 %v11697_v62, %s8878_s25  ;;  %6095 = vrot.lane.b32.xlu0 %v11697_v62, %s8879_s26  ;;  %v5954_v53 = vadd.f32 %v5898_v59, %v5751_v15 }
 0x4d6   : > { %v8805_v24 = vpop.f32.mrf.mxu0 }
 0x4d7   : > { %v11721_v60 = vmax.f32 %v5954_v53, 0.0 }
 0x4d8   : > { %v5903_v6 = vpop.f32.mrf.mxu0 }
 0x4d9   : > { %6199 = vrot.lane.b32.xlu0 %v11697_v62, %s8880_s29  ;;  %6097 = vrot.lane.b32.xlu1 %v11710_v57, %s8879_s26  ;;  %v5955_v3 = vadd.f32 %v5903_v6, %v11663_v23 }
 0x4da   : > { %v8808_v7 = vpop.f32.mrf.mxu0 }
 0x4db   : > { %v11736_v28 = vmax.f32 %v5955_v3, 0.0 }
 0x4dc   : > { %v5908_v30 = vpop.f32.mrf.mxu0 }
 0x4dd   : > { %6201 = vrot.lane.b32.xlu1 %v11710_v57, %s8880_s29  ;;  %5993 = vrot.lane.b32.xlu0 %v11710_v57, %s8877_s24  ;;  %v5956_v18 = vadd.f32 %v5908_v30, %v11666_v32 }
 0x4de   : > { %v8811_v56 = vpop.f32.mrf.mxu0 }
 0x4df   : > { %v11751_v43 = vmax.f32 %v5956_v18, 0.0 }
 0x4e0   : > { %v5913_v12 = vpop.f32.mrf.mxu0 }
 0x4e1   : > { %6045 = vrot.lane.b32.xlu0 %v11710_v57, %s8876_s23  ;;  %5995 = vrot.lane.b32.xlu1 %v11721_v60, %s8877_s24  ;;  %v5957_v40 = vadd.f32 %v5913_v12, %v11669_v29 }
 0x4e2   : > { %v8814_v48 = vpop.f32.mrf.mxu0 }
 0x4e3   : > { %v11764_v44 = vmax.f32 %v5957_v40, 0.0 }
 0x4e4   : > { %v5918_v63 = vpop.f32.mrf.mxu0 }
 0x4e5   : > { %6149 = vrot.lane.b32.xlu0 %v11710_v57, %s8878_s25  ;;  %6047 = vrot.lane.b32.xlu1 %v11721_v60, %s8876_s23  ;;  %v5958_v29 = vadd.f32 %v5918_v63, %v11672_v16 }
 0x4e6   : > { %v8817_v37 = vpop.f32.mrf.mxu0 }
 0x4e7   : > { %v11779_v14 = vmax.f32 %v5958_v29, 0.0 }
 0x4e8   : > { %v5923_v1 = vpop.f32.mrf.mxu0 }
 0x4e9   : > { %6099 = vrot.lane.b32.xlu0 %v11721_v60, %s8879_s26  ;;  %6151 = vrot.lane.b32.xlu1 %v11721_v60, %s8878_s25  ;;  %v5959_v19 = vadd.f32 %v5923_v1, %v11675_v20 }
 0x4ea   : > { %v8820_v35 = vpop.f32.mrf.mxu0 }
 0x4eb   : > { %v11790_v16 = vmax.f32 %v5959_v19, 0.0 }
 0x4ec   : > { %v5928_v8 = vpop.f32.mrf.mxu0 }
 0x4ed   : > { %6203 = vrot.lane.b32.xlu0 %v11721_v60, %s8880_s29  ;;  %5997 = vrot.lane.b32.xlu1 %v11736_v28, %s8877_s24  ;;  %v5960_v20 = vadd.f32 %v5928_v8, %v11678_v36 }
 0x4ee   : > { %v8823_v47 = vpop.f32.mrf.mxu0 }
 0x4ef   : > { %v11805_v5 = vmax.f32 %v5960_v20, 0.0 }
 0x4f0   : > { %v5933_v22 = vpop.f32.mrf.mxu0 }
 0x4f1   : > { %6049 = vrot.lane.b32.xlu0 %v11736_v28, %s8876_s23  ;;  %6101 = vrot.lane.b32.xlu1 %v11736_v28, %s8879_s26  ;;  %v5961_v61 = vadd.f32 %v5933_v22, %v11681_v39 }
 0x4f2   : > { %v8826_v23 = vpop.f32.mrf.mxu0 }
 0x4f3   : > { %v11816_v36 = vmax.f32 %v5961_v61, 0.0 }
 0x4f4   : > { %v5938_v31 = vpop.f32.mrf.mxu0 }
 0x4f5   : > { %6153 = vrot.lane.b32.xlu0 %v11736_v28, %s8878_s25  ;;  %6205 = vrot.lane.b32.xlu1 %v11736_v28, %s8880_s29  ;;  %v5962_v39 = vadd.f32 %v5938_v31, %v11684_v38 }
 0x4f6   : > { %v8829_v49 = vpop.f32.mrf.mxu0 }
 0x4f7   : > { %v11831_v10 = vmax.f32 %v5962_v39, 0.0 }
 0x4f8   : > { %v5943_v0 = vpop.f32.mrf.mxu0 }
 0x4f9   : > { %v5963_v52 = vadd.f32 %v5943_v0, %v11689_v58  ;;  %6051 = vrot.lane.b32.xlu1 %v11751_v43, %s8876_s23  ;;  %5999 = vrot.lane.b32.xlu0 %v11751_v43, %s8877_s24 }
 0x4fa   : > { %v8832_v32 = vpop.f32.mrf.mxu0 }
 0x4fb   : > { %v11841_v38 = vmax.f32 %v5963_v52, 0.0 }
 0x4fc   : > { %v5948_v34 = vpop.f32.mrf.mxu0 }
 0x4fd   : > { %v5964_v25 = vadd.f32 %v5948_v34, %v11693_v26  ;;  %6155 = vrot.lane.b32.xlu1 %v11751_v43, %s8878_s25  ;;  %6103 = vrot.lane.b32.xlu0 %v11751_v43, %s8879_s26 }
 0x4fe   : > { %v8835_v11 = vpop.f32.mrf.mxu0 }
 0x4ff   : > { %v11851_v2 = vmax.f32 %v5964_v25, 0.0 }
 0x501   : > { %6207 = vrot.lane.b32.xlu0 %v11751_v43, %s8880_s29  ;;  %6001 = vrot.lane.b32.xlu1 %v11764_v44, %s8877_s24 }
 0x505   : > { %6053 = vrot.lane.b32.xlu0 %v11764_v44, %s8876_s23  ;;  %6105 = vrot.lane.b32.xlu1 %v11764_v44, %s8879_s26 }
 0x509   : > { %6157 = vrot.lane.b32.xlu0 %v11764_v44, %s8878_s25  ;;  %6209 = vrot.lane.b32.xlu1 %v11764_v44, %s8880_s29 }
 0x50d   : > { %6055 = vrot.lane.b32.xlu1 %v11779_v14, %s8876_s23  ;;  %6003 = vrot.lane.b32.xlu0 %v11779_v14, %s8877_s24 }
 0x511   : > { %6159 = vrot.lane.b32.xlu1 %v11779_v14, %s8878_s25  ;;  %6107 = vrot.lane.b32.xlu0 %v11779_v14, %s8879_s26 }
 0x515   : > { %6211 = vrot.lane.b32.xlu0 %v11779_v14, %s8880_s29  ;;  %6005 = vrot.lane.b32.xlu1 %v11790_v16, %s8877_s24 }
 0x519   : > { %6057 = vrot.lane.b32.xlu0 %v11790_v16, %s8876_s23  ;;  %6109 = vrot.lane.b32.xlu1 %v11790_v16, %s8879_s26 }
 0x51d   : > { %6161 = vrot.lane.b32.xlu0 %v11790_v16, %s8878_s25  ;;  %6213 = vrot.lane.b32.xlu1 %v11790_v16, %s8880_s29 }
 0x521   : > { %6059 = vrot.lane.b32.xlu1 %v11805_v5, %s8876_s23  ;;  %6007 = vrot.lane.b32.xlu0 %v11805_v5, %s8877_s24 }
 0x525   : > { %6163 = vrot.lane.b32.xlu1 %v11805_v5, %s8878_s25  ;;  %6111 = vrot.lane.b32.xlu0 %v11805_v5, %s8879_s26 }
 0x529   : > { %6215 = vrot.lane.b32.xlu0 %v11805_v5, %s8880_s29  ;;  %6009 = vrot.lane.b32.xlu1 %v11816_v36, %s8877_s24 }
 0x52d   : > { %6061 = vrot.lane.b32.xlu0 %v11816_v36, %s8876_s23  ;;  %6113 = vrot.lane.b32.xlu1 %v11816_v36, %s8879_s26 }
 0x531   : > { %6165 = vrot.lane.b32.xlu0 %v11816_v36, %s8878_s25  ;;  %6217 = vrot.lane.b32.xlu1 %v11816_v36, %s8880_s29 }
 0x535   : > { %6063 = vrot.lane.b32.xlu1 %v11831_v10, %s8876_s23  ;;  %6011 = vrot.lane.b32.xlu0 %v11831_v10, %s8877_s24 }
 0x539   : > { %6167 = vrot.lane.b32.xlu1 %v11831_v10, %s8878_s25  ;;  %6115 = vrot.lane.b32.xlu0 %v11831_v10, %s8879_s26 }
 0x53d   : > { %6219 = vrot.lane.b32.xlu0 %v11831_v10, %s8880_s29  ;;  %6013 = vrot.lane.b32.xlu1 %v11841_v38, %s8877_s24 }
 0x541   : > { %6065 = vrot.lane.b32.xlu0 %v11841_v38, %s8876_s23  ;;  %6117 = vrot.lane.b32.xlu1 %v11841_v38, %s8879_s26 }
 0x543   : > { %v6044_v58 = vpop.permute.xlu1 %6043  ;;  %v5992_v54 = vpop.permute.xlu0 %5991 }
 0x544   : > { %v6030_v46 = vadd.f32 %v5992_v54, %v11697_v62 }
 0x545   : > { %6169 = vrot.lane.b32.xlu0 %v11841_v38, %s8878_s25  ;;  %6067 = vrot.lane.b32.xlu1 %v11851_v2, %s8876_s23 }
 0x546   : > { %v6082_v42 = vadd.f32 %v6044_v58, %v6030_v46 }
 0x547   : > { %v6148_v33 = vpop.permute.xlu1 %6147  ;;  %v6096_v21 = vpop.permute.xlu0 %6095 }
 0x548   : > { %v6134_v50 = vadd.f32 %v6096_v21, %v6082_v42 }
 0x549   : > { %6171 = vrot.lane.b32.xlu1 %v11851_v2, %s8878_s25  ;;  %6015 = vrot.lane.b32.xlu0 %v11851_v2, %s8877_s24 }
 0x54a   : > { %v6186_v26 = vadd.f32 %v6148_v33, %v6134_v50 }
 0x54b   : > { %v6200_v55 = vpop.permute.xlu0 %6199  ;;  %v6098_v17 = vpop.permute.xlu1 %6097 }
 0x54c   : > { %v6238_v51 = vadd.f32 %v6200_v55, %v6186_v26 }
 0x54d   : > { %6221 = vrot.lane.b32.xlu1 %v11841_v38, %s8880_s29  ;;  %6119 = vrot.lane.b32.xlu0 %v11851_v2, %s8879_s26 }
 0x54e   : > { %v6251_v9 = vmul.f32 0.16666667, %v6238_v51 }
 0x54f   : > { %v6202_v62 = vpop.permute.xlu1 %6201  ;;  %v5994_v4 = vpop.permute.xlu0 %5993 }
 0x550   : > { %6265 = vst.msk [vmem:[%s11867_s10] sm:$0xff] %vm6264_vm0, %v6251_v9  ;;  %v6031_v13 = vadd.f32 %v5994_v4, %v11710_v57 }
 0x551   : > { %6223 = vrot.lane.b32.xlu0 %v11851_v2, %s8880_s29 }
 0x553   : > { %v6046_v45 = vpop.permute.xlu0 %6045  ;;  %v5996_v41 = vpop.permute.xlu1 %5995 }
 0x554   : > { %v6083_v59 = vadd.f32 %v6046_v45, %v6031_v13  ;;  %v6032_v15 = vadd.f32 %v5996_v41, %v11721_v60 }
 0x556   : > { %v6135_v27 = vadd.f32 %v6098_v17, %v6083_v59 }
 0x557   : > { %v6150_v24 = vpop.permute.xlu0 %6149  ;;  %v6048_v6 = vpop.permute.xlu1 %6047 }
 0x558   : > { %v6187_v7 = vadd.f32 %v6150_v24, %v6135_v27  ;;  %v6084_v30 = vadd.f32 %v6048_v6, %v6032_v15 }
 0x55a   : > { %v6239_v53 = vadd.f32 %v6202_v62, %v6187_v7 }
 0x55b   : > { %v6100_v56 = vpop.permute.xlu0 %6099  ;;  %v6152_v12 = vpop.permute.xlu1 %6151 }
 0x55c   : > { %v6252_v48 = vmul.f32 0.16666667, %v6239_v53  ;;  %v6136_v63 = vadd.f32 %v6100_v56, %v6084_v30 }
 0x55e   : > { %6266 = vst.msk [vmem:[%s11867_s10 + $0x8] sm:$0xff] %vm6264_vm0, %v6252_v48  ;;  %v6188_v37 = vadd.f32 %v6152_v12, %v6136_v63 }
 0x55f   : > { %v6204_v57 = vpop.permute.xlu0 %6203  ;;  %v5998_v3 = vpop.permute.xlu1 %5997 }
 0x560   : > { %v6240_v1 = vadd.f32 %v6204_v57, %v6188_v37  ;;  %v6033_v8 = vadd.f32 %v5998_v3, %v11736_v28 }
 0x562   : > { %v6253_v35 = vmul.f32 0.16666667, %v6240_v1 }
 0x563   : > { %v6050_v47 = vpop.permute.xlu0 %6049  ;;  %v6102_v60 = vpop.permute.xlu1 %6101 }
 0x564   : > { %6267 = vst.msk [vmem:[%s11867_s10 + $0x10] sm:$0xff] %vm6264_vm0, %v6253_v35  ;;  %v6085_v22 = vadd.f32 %v6050_v47, %v6033_v8 }
 0x566   : > { %v6137_v23 = vadd.f32 %v6102_v60, %v6085_v22 }
 0x567   : > { %v6154_v18 = vpop.permute.xlu0 %6153  ;;  %v6206_v31 = vpop.permute.xlu1 %6205 }
 0x568   : > { %v6189_v49 = vadd.f32 %v6154_v18, %v6137_v23 }
 0x56a   : > { %v6241_v0 = vadd.f32 %v6206_v31, %v6189_v49 }
 0x56b   : > { %v6052_v52 = vpop.permute.xlu1 %6051  ;;  %v6000_v32 = vpop.permute.xlu0 %5999 }
 0x56c   : > { %v6254_v40 = vmul.f32 0.16666667, %v6241_v0  ;;  %v6034_v34 = vadd.f32 %v6000_v32, %v11751_v43 }
 0x56e   : > { %6268 = vst.msk [vmem:[%s11867_s10 + $0x18] sm:$0xff] %vm6264_vm0, %v6254_v40  ;;  %v6086_v25 = vadd.f32 %v6052_v52, %v6034_v34 }
 0x56f   : > { %v6156_v28 = vpop.permute.xlu1 %6155  ;;  %v6104_v11 = vpop.permute.xlu0 %6103 }
 0x570   : > { %v6138_v29 = vadd.f32 %v6104_v11, %v6086_v25 }
 0x572   : > { %v6190_v19 = vadd.f32 %v6156_v28, %v6138_v29 }
 0x573   : > { %v6208_v20 = vpop.permute.xlu0 %6207  ;;  %v6002_v61 = vpop.permute.xlu1 %6001 }
 0x574   : > { %v6242_v39 = vadd.f32 %v6208_v20, %v6190_v19  ;;  %v6035_v54 = vadd.f32 %v6002_v61, %v11764_v44 }
 0x576   : > { %v6255_v58 = vmul.f32 0.16666667, %v6242_v39 }
 0x577   : > { %v6054_v46 = vpop.permute.xlu0 %6053  ;;  %v6106_v42 = vpop.permute.xlu1 %6105 }
 0x578   : > { %6269 = vst.msk [vmem:[%s11867_s10 + $0x20] sm:$0xff] %vm6264_vm0, %v6255_v58  ;;  %v6087_v33 = vadd.f32 %v6054_v46, %v6035_v54 }
 0x57a   : > { %v6139_v43 = vadd.f32 %v6106_v42, %v6087_v33 }
 0x57b   : > { %v6158_v21 = vpop.permute.xlu0 %6157  ;;  %v6210_v50 = vpop.permute.xlu1 %6209 }
 0x57c   : > { %v6191_v26 = vadd.f32 %v6158_v21, %v6139_v43 }
 0x57e   : > { %v6243_v55 = vadd.f32 %v6210_v50, %v6191_v26 }
 0x57f   : > { %v6056_v17 = vpop.permute.xlu1 %6055  ;;  %v6004_v51 = vpop.permute.xlu0 %6003 }
 0x580   : > { %v6256_v9 = vmul.f32 0.16666667, %v6243_v55  ;;  %v6036_v62 = vadd.f32 %v6004_v51, %v11779_v14 }
 0x582   : > { %6270 = vst.msk [vmem:[%s11867_s10 + $0x28] sm:$0xff] %vm6264_vm0, %v6256_v9  ;;  %v6088_v4 = vadd.f32 %v6056_v17, %v6036_v62 }
 0x583   : > { %v6160_v44 = vpop.permute.xlu1 %6159  ;;  %v6108_v13 = vpop.permute.xlu0 %6107 }
 0x584   : > { %v6140_v45 = vadd.f32 %v6108_v13, %v6088_v4 }
 0x586   : > { %v6192_v41 = vadd.f32 %v6160_v44, %v6140_v45 }
 0x587   : > { %v6212_v59 = vpop.permute.xlu0 %6211  ;;  %v6006_v27 = vpop.permute.xlu1 %6005 }
 0x588   : > { %v6244_v24 = vadd.f32 %v6212_v59, %v6192_v41  ;;  %v6037_v15 = vadd.f32 %v6006_v27, %v11790_v16 }
 0x58a   : > { %v6257_v6 = vmul.f32 0.16666667, %v6244_v24 }
 0x58b   : > { %v6058_v7 = vpop.permute.xlu0 %6057  ;;  %v6110_v53 = vpop.permute.xlu1 %6109 }
 0x58c   : > { %6271 = vst.msk [vmem:[%s11867_s10 + $0x30] sm:$0xff] %vm6264_vm0, %v6257_v6  ;;  %v6089_v30 = vadd.f32 %v6058_v7, %v6037_v15 }
 0x58e   : > { %v6141_v14 = vadd.f32 %v6110_v53, %v6089_v30 }
 0x58f   : > { %v6162_v56 = vpop.permute.xlu0 %6161  ;;  %v6214_v12 = vpop.permute.xlu1 %6213 }
 0x590   : > { %v6193_v48 = vadd.f32 %v6162_v56, %v6141_v14 }
 0x592   : > { %v6245_v63 = vadd.f32 %v6214_v12, %v6193_v48 }
 0x593   : > { %v6060_v37 = vpop.permute.xlu1 %6059  ;;  %v6008_v57 = vpop.permute.xlu0 %6007 }
 0x594   : > { %v6258_v3 = vmul.f32 0.16666667, %v6245_v63  ;;  %v6038_v1 = vadd.f32 %v6008_v57, %v11805_v5 }
 0x596   : > { %6272 = vst.msk [vmem:[%s11867_s10 + $0x38] sm:$0xff] %vm6264_vm0, %v6258_v3  ;;  %v6090_v35 = vadd.f32 %v6060_v37, %v6038_v1 }
 0x597   : > { %v6164_v16 = vpop.permute.xlu1 %6163  ;;  %v6112_v8 = vpop.permute.xlu0 %6111 }
 0x598   : > { %v6142_v47 = vadd.f32 %v6112_v8, %v6090_v35 }
 0x59a   : > { %v6194_v60 = vadd.f32 %v6164_v16, %v6142_v47 }
 0x59b   : > { %v6216_v22 = vpop.permute.xlu0 %6215  ;;  %v6010_v23 = vpop.permute.xlu1 %6009 }
 0x59c   : > { %v6246_v18 = vadd.f32 %v6216_v22, %v6194_v60  ;;  %v6039_v49 = vadd.f32 %v6010_v23, %v11816_v36 }
 0x59e   : > { %v6259_v31 = vmul.f32 0.16666667, %v6246_v18 }
 0x59f   : > { %v6062_v0 = vpop.permute.xlu0 %6061  ;;  %v6114_v52 = vpop.permute.xlu1 %6113 }
 0x5a0   : > { %6273 = vst.msk [vmem:[%s11867_s10 + $0x40] sm:$0xff] %vm6264_vm0, %v6259_v31  ;;  %v6091_v32 = vadd.f32 %v6062_v0, %v6039_v49 }
 0x5a2   : > { %v6143_v5 = vadd.f32 %v6114_v52, %v6091_v32 }
 0x5a3   : > { %v6166_v40 = vpop.permute.xlu0 %6165  ;;  %v6218_v34 = vpop.permute.xlu1 %6217 }
 0x5a4   : > { %v6195_v25 = vadd.f32 %v6166_v40, %v6143_v5 }
 0x5a6   : > { %v6247_v28 = vadd.f32 %v6218_v34, %v6195_v25 }
 0x5a7   : > { %v6064_v11 = vpop.permute.xlu1 %6063  ;;  %v6012_v29 = vpop.permute.xlu0 %6011 }
 0x5a8   : > { %v6260_v19 = vmul.f32 0.16666667, %v6247_v28  ;;  %v6040_v20 = vadd.f32 %v6012_v29, %v11831_v10 }
 0x5aa   : > { %6274 = vst.msk [vmem:[%s11867_s10 + $0x48] sm:$0xff] %vm6264_vm0, %v6260_v19  ;;  %v6092_v61 = vadd.f32 %v6064_v11, %v6040_v20 }
 0x5ab   : > { %v6168_v36 = vpop.permute.xlu1 %6167  ;;  %v6116_v39 = vpop.permute.xlu0 %6115 }
 0x5ac   : > { %v6144_v58 = vadd.f32 %v6116_v39, %v6092_v61 }
 0x5ae   : > { %v6196_v54 = vadd.f32 %v6168_v36, %v6144_v58 }
 0x5af   : > { %v6220_v46 = vpop.permute.xlu0 %6219  ;;  %v6014_v42 = vpop.permute.xlu1 %6013 }
 0x5b0   : > { %v6248_v33 = vadd.f32 %v6220_v46, %v6196_v54  ;;  %v6041_v26 = vadd.f32 %v6014_v42, %v11841_v38 }
 0x5b2   : > { %v6261_v43 = vmul.f32 0.16666667, %v6248_v33 }
 0x5b3   : > { %v6066_v21 = vpop.permute.xlu0 %6065  ;;  %v6118_v50 = vpop.permute.xlu1 %6117 }
 0x5b4   : > { %6275 = vst.msk [vmem:[%s11867_s10 + $0x50] sm:$0xff] %vm6264_vm0, %v6261_v43  ;;  %v6093_v55 = vadd.f32 %v6066_v21, %v6041_v26 }
 0x5b6   : > { %v6145_v51 = vadd.f32 %v6118_v50, %v6093_v55 }
 0x5b7   : > { %v6170_v10 = vpop.permute.xlu0 %6169  ;;  %v6068_v17 = vpop.permute.xlu1 %6067 }
 0x5b8   : > { %v6197_v44 = vadd.f32 %v6170_v10, %v6145_v51 }
 0x5bb   : > { %v6172_v9 = vpop.permute.xlu1 %6171  ;;  %v6016_v62 = vpop.permute.xlu0 %6015 }
 0x5bc   : > { %v6042_v4 = vadd.f32 %v6016_v62, %v11851_v2 }
 0x5be   : > { %v6094_v13 = vadd.f32 %v6068_v17, %v6042_v4 }
 0x5bf   : > { %v6222_v45 = vpop.permute.xlu1 %6221  ;;  %v6120_v41 = vpop.permute.xlu0 %6119 }
 0x5c0   : > { %v6249_v59 = vadd.f32 %v6222_v45, %v6197_v44  ;;  %v6146_v27 = vadd.f32 %v6120_v41, %v6094_v13 }
 0x5c2   : > { %v6262_v24 = vmul.f32 0.16666667, %v6249_v59  ;;  %v6198_v6 = vadd.f32 %v6172_v9, %v6146_v27 }
 0x5c3   : > { %v6224_v15 = vpop.permute.xlu0 %6223 }
 0x5c4   : > { %6276 = vst.msk [vmem:[%s11867_s10 + $0x58] sm:$0xff] %vm6264_vm0, %v6262_v24  ;;  %v6250_v38 = vadd.f32 %v6224_v15, %v6198_v6 }
 0x5c6   : > { %v6263_v7 = vmul.f32 0.16666667, %v6250_v38 }
 0x5c8   : > { %6278 = vst.msk [vmem:[%s11867_s10 + $0x60] sm:$0xf] %vm6277_vm1, %v6263_v7 }
 0x5c9 PF: > { %s18_s27 = sadd.s32 1, %s8872_s27  }
 0x5ca   : > { %p15_p4 = scmp.ge.s32.totalorder %s18_s27, 4  }
 0x5cc   :  { %17 = sbr.rel (!%p15_p4) target bundleno = 1 (0x1), region = 106 }

</bundles_post_ra>
